<compile_context>
chip_gen: v7x
topology: tpu7x:2x2x1
jax: 0.10.0
libtpu: 0.0.40
codegen_flags: <defaults>
</compile_context>

<pallas_src>
import functools

import jax
import jax.numpy as jnp
import numpy as np
from jax.experimental import pallas as pl
from jax.experimental.pallas import tpu as pltpu


def _default_vmem_limit():
    """Per-generation scoped-VMEM ceiling (don't hard-code 32 MiB)."""
    try:
        info = pltpu.get_tpu_info()
        phys = int(getattr(info, "vmem_capacity_bytes", 64 * 1024 * 1024))
    except Exception:
        phys = 64 * 1024 * 1024          # conservative (v7x physical per TC)
    return int(min(phys * 3 // 4, 100 * 1024 * 1024))


_VMEM_LIMIT = _default_vmem_limit()


# ----------------------------------------------------------------------------
# Fused kernel: 2x bidirectional LSTM layer + self-attention + FC.
#   gate layout per direction (after weight reorder): [f, i, o, g]
#   combined layout along 8H columns: [fwd: f i o g | bwd: f i o g]
#   state layout (h / c carry): [:, :H] = forward, [:, H:] = backward
# ----------------------------------------------------------------------------
def _lstm_ner_kernel(x_ref, wih0_ref, whh0_ref, b0_ref,
                     wih1_ref, whh1_ref, b1_ref,
                     wkqv_ref, bkqv_ref, wfc_ref, bfc_ref,
                     o_ref, seq_sc,
                     *, hidden, seq_len, tagset, scale):
    H, S = hidden, seq_len
    F = 2 * H
    TB = x_ref.shape[0]

    def bilstm_layer(x_flat, wih_ref, whh_ref, b_ref):
        """x_flat: (TB*S, Din) bf16.  Writes the (TB, S, 2H) output to seq_sc."""
        # Input projection for every timestep & both directions as ONE flat
        # MXU matmul (bias hoisted out of the recurrence).
        gx = (jnp.dot(x_flat, wih_ref[...],
                      preferred_element_type=jnp.float32)
              + b_ref[...]).reshape(TB, S, 8 * H)
        # h/c live in the loop carry (vregs) -- no VMEM round-trips per step.
        h = jnp.zeros((TB, 2 * H), jnp.float32)
        c = jnp.zeros((TB, 2 * H), jnp.float32)
        # TODO(synk): for long sequences (S > ~16) switch to
        # lax.fori_loop(..., unroll=8) with gx staged in a bf16 VMEM scratch.
        for t in range(S):
            rt = S - 1 - t
            # Recurrent projection for BOTH directions in one block-diag matmul.
            gh = jnp.dot(h.astype(jnp.bfloat16), whh_ref[...],
                         preferred_element_type=jnp.float32)        # (TB, 8H)
            gf = gx[:, t, 0:4 * H] + gh[:, 0:4 * H]                 # fwd: x[t]
            gb = gx[:, rt, 4 * H:8 * H] + gh[:, 4 * H:8 * H]        # bwd: x[S-1-t]
            # [f, i, o, g] ordering: one contiguous sigmoid slice + one tanh.
            sf = jax.nn.sigmoid(gf[:, 0:3 * H])
            sb = jax.nn.sigmoid(gb[:, 0:3 * H])
            gtf = jnp.tanh(gf[:, 3 * H:4 * H])
            gtb = jnp.tanh(gb[:, 3 * H:4 * H])
            c_f = sf[:, 0:H] * c[:, 0:H] + sf[:, H:2 * H] * gtf
            c_b = sb[:, 0:H] * c[:, H:2 * H] + sb[:, H:2 * H] * gtb
            h_f = sf[:, 2 * H:3 * H] * jnp.tanh(c_f)
            h_b = sb[:, 2 * H:3 * H] * jnp.tanh(c_b)
            h = jnp.concatenate([h_f, h_b], axis=1)
            c = jnp.concatenate([c_f, c_b], axis=1)
            # Only the per-step outputs touch memory; the backward direction's
            # time reversal is folded into the write index.
            seq_sc[:, t, 0:H] = h_f
            seq_sc[:, rt, H:2 * H] = h_b

    # ---- layer 0 (embedded tokens, already bf16 from prep) ----
    bilstm_layer(x_ref[...].reshape(TB * S, x_ref.shape[-1]),
                 wih0_ref, whh0_ref, b0_ref)
    # ---- layer 1 reads layer 0's output straight from VMEM scratch ----
    # TODO(synk): inter-layer dropout(0.5) omitted (inference semantics).
    bilstm_layer(seq_sc[...].astype(jnp.bfloat16).reshape(TB * S, F),
                 wih1_ref, whh1_ref, b1_ref)        # overwrites seq_sc in place

    # ---- self-attention + FC, still in-VMEM ----
    xa = seq_sc[...]                                                 # (TB, S, F)
    kqv = (jnp.dot(xa.astype(jnp.bfloat16).reshape(TB * S, F), wkqv_ref[...],
                   preferred_element_type=jnp.float32)
           + bkqv_ref[...]).reshape(TB, S, 3 * F)
    k = kqv[:, :, 0:F]
    q = kqv[:, :, F:2 * F]
    v = kqv[:, :, 2 * F:3 * F]
    scores = jnp.einsum('bqf,bkf->bqk', q, k,
                        preferred_element_type=jnp.float32) * scale  # (TB, S, S)
    # TODO(synk): optional attention mask (mask=None in the reference call) and
    # padding masks are not wired in.
    m = jnp.max(scores, axis=-1, keepdims=True)
    p = jnp.exp(scores - m)
    attn = p / jnp.sum(p, axis=-1, keepdims=True)        # exact divide (parity)
    ctx = jnp.einsum('bqk,bkf->bqf', attn, v,
                     preferred_element_type=jnp.float32)             # (TB, S, F)
    logits = (jnp.dot(ctx.astype(jnp.bfloat16).reshape(TB * S, F), wfc_ref[...],
                      preferred_element_type=jnp.float32)
              + bfc_ref[...]).reshape(TB, S, wfc_ref.shape[-1])
    # Store only the real tagset columns: no post-kernel lane-slice copy.
    o_ref[...] = logits[:, :, 0:tagset]


def lstm_ner_fused(x_emb, wih0, whh0, b0, wih1, whh1, b1,
                   w_kqv, b_kqv, w_fc, b_fc, *, tagset):
    """x_emb: (B, S, E) bf16.  Returns (B, S, tagset) f32."""
    B, S, E = x_emb.shape
    H = whh0.shape[0] // 2
    # >=2 "parallel" batch chunks engage both TensorCores on v7x; on v5e/v6e
    # the extra grid step (~0.35us) is negligible next to the fused body.
    # (For production batches pick tb so each chunk carries >=8 rows to fill
    #  the recurrent matmul's M dimension.)
    nb = 2 if (B >= 2 and B % 2 == 0) else 1
    tb = B // nb
    kernel = functools.partial(_lstm_ner_kernel, hidden=H, seq_len=S,
                               tagset=tagset,
                               scale=float(1.0 / np.sqrt(np.float32(2 * H))))

    def full(a):
        return pl.BlockSpec(a.shape, lambda b, _nd=a.ndim: (0,) * _nd)

    return pl.pallas_call(
        kernel,
        out_shape=jax.ShapeDtypeStruct((B, S, tagset), jnp.float32),
        grid=(nb,),
        in_specs=[pl.BlockSpec((tb, S, E), lambda b: (b, 0, 0)),
                  full(wih0), full(whh0), full(b0),
                  full(wih1), full(whh1), full(b1),
                  full(w_kqv), full(b_kqv), full(w_fc), full(b_fc)],
        out_specs=pl.BlockSpec((tb, S, tagset), lambda b: (b, 0, 0)),
        scratch_shapes=[pltpu.VMEM((tb, S, 2 * H), jnp.float32)],
        compiler_params=pltpu.CompilerParams(
            dimension_semantics=("parallel",),
            vmem_limit_bytes=_VMEM_LIMIT),
    )(x_emb, wih0, whh0, b0, wih1, whh1, b1, w_kqv, b_kqv, w_fc, b_fc)


# ----------------------------------------------------------------------------
# Weight preparation (gate reorder, direction fusion, lane padding, bf16 cast).
# ----------------------------------------------------------------------------
def _reorder_gates(w, H):
    # PyTorch packs LSTM gates as [i, f, g, o]; repack as [f, i, o, g] so the
    # sigmoid block is one contiguous 3H slice and f*c is lane-aligned.
    return jnp.concatenate([w[H:2 * H], w[0:H], w[3 * H:4 * H], w[2 * H:3 * H]],
                           axis=0)


def _prep_bilstm_weights(p, layer, H):
    wih_cols, b_parts = [], []
    whh = jnp.zeros((2 * H, 8 * H), jnp.float32)
    for d, suf in enumerate((f'l{layer}', f'l{layer}r')):
        wih_cols.append(_reorder_gates(p[f'w_ih_{suf}'], H).T)          # (Din,4H)
        whh = whh.at[d * H:(d + 1) * H, d * 4 * H:(d + 1) * 4 * H].set(
            _reorder_gates(p[f'w_hh_{suf}'], H).T)
        b_parts.append(_reorder_gates(p[f'b_ih_{suf}'] + p[f'b_hh_{suf}'], H))
    wih = jnp.concatenate(wih_cols, axis=1).astype(jnp.bfloat16)        # (Din,8H)
    b = jnp.concatenate(b_parts).reshape(1, 8 * H).astype(jnp.float32)  # (1, 8H)
    return wih, whh.astype(jnp.bfloat16), b


def _prep_attn_fc_weights(p):
    F = p['w_key'].shape[0]
    T = p['b_fc'].shape[0]
    w_kqv = jnp.concatenate([p['w_key'].T, p['w_query'].T, p['w_value'].T],
                            axis=1).astype(jnp.bfloat16)                # (F, 3F)
    b_kqv = jnp.concatenate([p['b_key'], p['b_query'], p['b_value']]
                            ).reshape(1, 3 * F).astype(jnp.float32)
    # Lane-pad the FC output dim to 128 for the MXU; the kernel stores only the
    # first T columns so nothing has to be sliced after the kernel.
    w_fc = jnp.zeros((F, 128), jnp.float32).at[:, :T].set(p['w_fc'].T)
    b_fc = jnp.zeros((1, 128), jnp.float32).at[0, :T].set(p['b_fc'])
    return w_kqv, b_kqv, w_fc.astype(jnp.bfloat16), b_fc, T


# ----------------------------------------------------------------------------
# Full LSTM_NER forward.
# ----------------------------------------------------------------------------
def lstm_ner_forward(p, ids):
    H = p['w_hh_l0'].shape[1]
    # Embedding gather, batch-major, pre-cast to bf16 (halves input DMA bytes).
    x_emb = jnp.take(p['embedding'].astype(jnp.bfloat16), ids, axis=0)  # (B,S,E)
    wih0, whh0, b0 = _prep_bilstm_weights(p, 0, H)
    wih1, whh1, b1 = _prep_bilstm_weights(p, 1, H)
    w_kqv, b_kqv, w_fc, b_fc, T = _prep_attn_fc_weights(p)
    return lstm_ner_fused(x_emb, wih0, whh0, b0, wih1, whh1, b1,
                          w_kqv, b_kqv, w_fc, b_fc, tagset=T)


# ----------------------------------------------------------------------------
# Deterministic parameter init (shapes match the PyTorch module).
# ----------------------------------------------------------------------------
def init_params(key, vocab_size, tagset_size, embed_dim, hidden_dim):
    keys = iter(jax.random.split(key, 64))

    def rnd(shape, scale=0.1):
        return (scale * jax.random.normal(next(keys), shape)).astype(jnp.float32)

    H = hidden_dim
    p = {'embedding': rnd((vocab_size, embed_dim), 1.0)}
    layer_ins = {'l0': embed_dim, 'l0r': embed_dim, 'l1': 2 * H, 'l1r': 2 * H}
    for suf, din in layer_ins.items():
        p[f'w_ih_{suf}'] = rnd((4 * H, din))
        p[f'w_hh_{suf}'] = rnd((4 * H, H))
        p[f'b_ih_{suf}'] = rnd((4 * H,))
        p[f'b_hh_{suf}'] = rnd((4 * H,))
    F = 2 * H
    for nm in ('key', 'query', 'value'):
        p[f'w_{nm}'] = rnd((F, F))
        p[f'b_{nm}'] = rnd((F,))
    p['w_fc'] = rnd((tagset_size, F))
    p['b_fc'] = rnd((tagset_size,))
    return p


if __name__ == "__main__":
    vocab_size, tagset_size = 50, 7
    embed_dim, hidden_dim = 64, 32
    batch, seq = 2, 8

    key = jax.random.PRNGKey(0)
    k_params, k_ids = jax.random.split(key)
    params = init_params(k_params, vocab_size, tagset_size, embed_dim, hidden_dim)
    ids = jax.random.randint(k_ids, (batch, seq), 0, vocab_size)

    out = jax.jit(lstm_ner_forward)(params, ids)
    jax.block_until_ready(out)
    assert out.shape == (batch, seq, tagset_size)
    assert bool(jnp.all(jnp.isfinite(out)))
    print("KERNEL_OK")
</pallas_src>

<mosaic_0001>
module attributes {stable_mosaic.version = 11 : i64} {
  func.func @_lstm_ner_kernel(%arg0: i32, %arg1: memref<1x8x64xbf16, #tpu.memory_space<vmem>>, %arg2: memref<64x256xbf16, #tpu.memory_space<vmem>>, %arg3: memref<64x256xbf16, #tpu.memory_space<vmem>>, %arg4: memref<1x256xf32, #tpu.memory_space<vmem>>, %arg5: memref<64x256xbf16, #tpu.memory_space<vmem>>, %arg6: memref<64x256xbf16, #tpu.memory_space<vmem>>, %arg7: memref<1x256xf32, #tpu.memory_space<vmem>>, %arg8: memref<64x192xbf16, #tpu.memory_space<vmem>>, %arg9: memref<1x192xf32, #tpu.memory_space<vmem>>, %arg10: memref<64x128xbf16, #tpu.memory_space<vmem>>, %arg11: memref<1x128xf32, #tpu.memory_space<vmem>>, %arg12: memref<1x8x7xf32, #tpu.memory_space<vmem>>, %arg13: memref<1x8x64xf32, #tpu.memory_space<vmem>>) attributes {dimension_semantics = [#tpu.dimension_semantics<parallel>], iteration_bounds = array<i64: 2>, scalar_prefetch = 0 : i64, scratch_operands = 1 : i64, tpu.core_type = #tpu.core_type<tc>, window_params = [{transform_indices = @transform_0, window_bounds = array<i64: 1, 8, 64>}, {pipeline_mode = #tpu.pipeline_mode<synchronous>, transform_indices = @transform_1, window_bounds = array<i64: 64, 256>}, {pipeline_mode = #tpu.pipeline_mode<synchronous>, transform_indices = @transform_2, window_bounds = array<i64: 64, 256>}, {pipeline_mode = #tpu.pipeline_mode<synchronous>, transform_indices = @transform_3, window_bounds = array<i64: 1, 256>}, {pipeline_mode = #tpu.pipeline_mode<synchronous>, transform_indices = @transform_4, window_bounds = array<i64: 64, 256>}, {pipeline_mode = #tpu.pipeline_mode<synchronous>, transform_indices = @transform_5, window_bounds = array<i64: 64, 256>}, {pipeline_mode = #tpu.pipeline_mode<synchronous>, transform_indices = @transform_6, window_bounds = array<i64: 1, 256>}, {pipeline_mode = #tpu.pipeline_mode<synchronous>, transform_indices = @transform_7, window_bounds = array<i64: 64, 192>}, {pipeline_mode = #tpu.pipeline_mode<synchronous>, transform_indices = @transform_8, window_bounds = array<i64: 1, 192>}, {pipeline_mode = #tpu.pipeline_mode<synchronous>, transform_indices = @transform_9, window_bounds = array<i64: 64, 128>}, {pipeline_mode = #tpu.pipeline_mode<synchronous>, transform_indices = @transform_10, window_bounds = array<i64: 1, 128>}, {transform_indices = @transform_11, window_bounds = array<i64: 1, 8, 7>}]} {
    %c0 = arith.constant 0 : index
    %c0_0 = arith.constant 0 : index
    %c0_1 = arith.constant 0 : index
    %0 = vector.load %arg1[%c0, %c0_0, %c0_1] : memref<1x8x64xbf16, #tpu.memory_space<vmem>>, vector<1x8x64xbf16>
    %1 = vector.shape_cast %0 : vector<1x8x64xbf16> to vector<8x64xbf16>
    %c0_2 = arith.constant 0 : index
    %c0_3 = arith.constant 0 : index
    %2 = vector.load %arg2[%c0_2, %c0_3] : memref<64x256xbf16, #tpu.memory_space<vmem>>, vector<64x256xbf16>
    %cst = arith.constant dense<0.000000e+00> : vector<8x256xf32>
    %3 = tpu.matmul %1, %2, %cst {dimension_numbers = #tpu.dot_dimension_numbers<[1], [0], [0], [1], [0, 0, 1, 1], [], []>} : vector<8x64xbf16>, vector<64x256xbf16>, vector<8x256xf32> -> vector<8x256xf32>
    %c0_4 = arith.constant 0 : index
    %c0_5 = arith.constant 0 : index
    %4 = vector.load %arg4[%c0_4, %c0_5] : memref<1x256xf32, #tpu.memory_space<vmem>>, vector<1x256xf32>
    %5 = vector.broadcast %4 : vector<1x256xf32> to vector<8x256xf32>
    %6 = arith.addf %3, %5 : vector<8x256xf32>
    %7 = vector.shape_cast %6 : vector<8x256xf32> to vector<1x8x256xf32>
    %cst_6 = arith.constant 0.000000e+00 : f32
    %8 = vector.broadcast %cst_6 : f32 to vector<1x64xf32>
    %cst_7 = arith.constant 0.000000e+00 : f32
    %9 = vector.broadcast %cst_7 : f32 to vector<1x64xf32>
    %10 = arith.truncf %8 : vector<1x64xf32> to vector<1x64xbf16>
    %c0_8 = arith.constant 0 : index
    %c0_9 = arith.constant 0 : index
    %11 = vector.load %arg3[%c0_8, %c0_9] : memref<64x256xbf16, #tpu.memory_space<vmem>>, vector<64x256xbf16>
    %cst_10 = arith.constant dense<0.000000e+00> : vector<1x256xf32>
    %12 = tpu.matmul %10, %11, %cst_10 {dimension_numbers = #tpu.dot_dimension_numbers<[1], [0], [0], [1], [0, 0, 1, 1], [], []>} : vector<1x64xbf16>, vector<64x256xbf16>, vector<1x256xf32> -> vector<1x256xf32>
    %13 = vector.extract_strided_slice %7 {offsets = [0, 0, 0], sizes = [1, 1, 128], strides = [1, 1, 1]} : vector<1x8x256xf32> to vector<1x1x128xf32>
    %14 = vector.shape_cast %13 : vector<1x1x128xf32> to vector<1x128xf32>
    %15 = vector.extract_strided_slice %12 {offsets = [0, 0], sizes = [1, 128], strides = [1, 1]} : vector<1x256xf32> to vector<1x128xf32>
    %16 = arith.addf %14, %15 : vector<1x128xf32>
    %17 = vector.extract_strided_slice %7 {offsets = [0, 7, 128], sizes = [1, 1, 128], strides = [1, 1, 1]} : vector<1x8x256xf32> to vector<1x1x128xf32>
    %18 = vector.shape_cast %17 : vector<1x1x128xf32> to vector<1x128xf32>
    %19 = vector.extract_strided_slice %12 {offsets = [0, 128], sizes = [1, 128], strides = [1, 1]} : vector<1x256xf32> to vector<1x128xf32>
    %20 = arith.addf %18, %19 : vector<1x128xf32>
    %21 = vector.extract_strided_slice %16 {offsets = [0, 0], sizes = [1, 96], strides = [1, 1]} : vector<1x128xf32> to vector<1x96xf32>
    %22 = arith.negf %21 : vector<1x96xf32>
    %23 = math.exp %22 : vector<1x96xf32>
    %cst_11 = arith.constant 1.000000e+00 : f32
    %24 = vector.broadcast %cst_11 : f32 to vector<1x96xf32>
    %25 = arith.addf %24, %23 : vector<1x96xf32>
    %26 = arith.divf %24, %25 : vector<1x96xf32>
    %27 = vector.extract_strided_slice %20 {offsets = [0, 0], sizes = [1, 96], strides = [1, 1]} : vector<1x128xf32> to vector<1x96xf32>
    %28 = arith.negf %27 : vector<1x96xf32>
    %29 = math.exp %28 : vector<1x96xf32>
    %cst_12 = arith.constant 1.000000e+00 : f32
    %30 = vector.broadcast %cst_12 : f32 to vector<1x96xf32>
    %31 = arith.addf %30, %29 : vector<1x96xf32>
    %32 = arith.divf %30, %31 : vector<1x96xf32>
    %33 = vector.extract_strided_slice %16 {offsets = [0, 96], sizes = [1, 32], strides = [1, 1]} : vector<1x128xf32> to vector<1x32xf32>
    %34 = math.tanh %33 : vector<1x32xf32>
    %35 = vector.extract_strided_slice %20 {offsets = [0, 96], sizes = [1, 32], strides = [1, 1]} : vector<1x128xf32> to vector<1x32xf32>
    %36 = math.tanh %35 : vector<1x32xf32>
    %37 = vector.extract_strided_slice %26 {offsets = [0, 0], sizes = [1, 32], strides = [1, 1]} : vector<1x96xf32> to vector<1x32xf32>
    %38 = vector.extract_strided_slice %9 {offsets = [0, 0], sizes = [1, 32], strides = [1, 1]} : vector<1x64xf32> to vector<1x32xf32>
    %39 = arith.mulf %37, %38 : vector<1x32xf32>
    %40 = vector.extract_strided_slice %26 {offsets = [0, 32], sizes = [1, 32], strides = [1, 1]} : vector<1x96xf32> to vector<1x32xf32>
    %41 = arith.mulf %40, %34 : vector<1x32xf32>
    %42 = arith.addf %39, %41 : vector<1x32xf32>
    %43 = vector.extract_strided_slice %32 {offsets = [0, 0], sizes = [1, 32], strides = [1, 1]} : vector<1x96xf32> to vector<1x32xf32>
    %44 = vector.extract_strided_slice %9 {offsets = [0, 32], sizes = [1, 32], strides = [1, 1]} : vector<1x64xf32> to vector<1x32xf32>
    %45 = arith.mulf %43, %44 : vector<1x32xf32>
    %46 = vector.extract_strided_slice %32 {offsets = [0, 32], sizes = [1, 32], strides = [1, 1]} : vector<1x96xf32> to vector<1x32xf32>
    %47 = arith.mulf %46, %36 : vector<1x32xf32>
    %48 = arith.addf %45, %47 : vector<1x32xf32>
    %49 = vector.extract_strided_slice %26 {offsets = [0, 64], sizes = [1, 32], strides = [1, 1]} : vector<1x96xf32> to vector<1x32xf32>
    %50 = math.tanh %42 : vector<1x32xf32>
    %51 = arith.mulf %49, %50 : vector<1x32xf32>
    %52 = vector.extract_strided_slice %32 {offsets = [0, 64], sizes = [1, 32], strides = [1, 1]} : vector<1x96xf32> to vector<1x32xf32>
    %53 = math.tanh %48 : vector<1x32xf32>
    %54 = arith.mulf %52, %53 : vector<1x32xf32>
    %55 = tpu.concatenate %51, %54 in 1 : vector<1x32xf32>, vector<1x32xf32> -> vector<1x64xf32>
    %56 = tpu.concatenate %42, %48 in 1 : vector<1x32xf32>, vector<1x32xf32> -> vector<1x64xf32>
    %c0_13 = arith.constant 0 : index
    %c0_14 = arith.constant 0 : index
    %c0_15 = arith.constant 0 : index
    %57 = vector.load %arg13[%c0_13, %c0_14, %c0_15] : memref<1x8x64xf32, #tpu.memory_space<vmem>>, vector<1x1x32xf32>
    %58 = vector.shape_cast %57 : vector<1x1x32xf32> to vector<1x32xf32>
    %59 = vector.shape_cast %51 : vector<1x32xf32> to vector<1x1x32xf32>
    tpu.vector_store %arg13[%c0_13, %c0_14, %c0_15], %59 {strides = array<i32>} : memref<1x8x64xf32, #tpu.memory_space<vmem>>, vector<1x1x32xf32>,
    %c0_16 = arith.constant 0 : index
    %c7 = arith.constant 7 : index
    %c32 = arith.constant 32 : index
    %60 = vector.load %arg13[%c0_16, %c7, %c32] : memref<1x8x64xf32, #tpu.memory_space<vmem>>, vector<1x1x32xf32>
    %61 = vector.shape_cast %60 : vector<1x1x32xf32> to vector<1x32xf32>
    %62 = vector.shape_cast %54 : vector<1x32xf32> to vector<1x1x32xf32>
    tpu.vector_store %arg13[%c0_16, %c7, %c32], %62 {strides = array<i32>} : memref<1x8x64xf32, #tpu.memory_space<vmem>>, vector<1x1x32xf32>,
    %63 = arith.truncf %55 : vector<1x64xf32> to vector<1x64xbf16>
    %c0_17 = arith.constant 0 : index
    %c0_18 = arith.constant 0 : index
    %64 = vector.load %arg3[%c0_17, %c0_18] : memref<64x256xbf16, #tpu.memory_space<vmem>>, vector<64x256xbf16>
    %cst_19 = arith.constant dense<0.000000e+00> : vector<1x256xf32>
    %65 = tpu.matmul %63, %64, %cst_19 {dimension_numbers = #tpu.dot_dimension_numbers<[1], [0], [0], [1], [0, 0, 1, 1], [], []>} : vector<1x64xbf16>, vector<64x256xbf16>, vector<1x256xf32> -> vector<1x256xf32>
    %66 = vector.extract_strided_slice %7 {offsets = [0, 1, 0], sizes = [1, 1, 128], strides = [1, 1, 1]} : vector<1x8x256xf32> to vector<1x1x128xf32>
    %67 = vector.shape_cast %66 : vector<1x1x128xf32> to vector<1x128xf32>
    %68 = vector.extract_strided_slice %65 {offsets = [0, 0], sizes = [1, 128], strides = [1, 1]} : vector<1x256xf32> to vector<1x128xf32>
    %69 = arith.addf %67, %68 : vector<1x128xf32>
    %70 = vector.extract_strided_slice %7 {offsets = [0, 6, 128], sizes = [1, 1, 128], strides = [1, 1, 1]} : vector<1x8x256xf32> to vector<1x1x128xf32>
    %71 = vector.shape_cast %70 : vector<1x1x128xf32> to vector<1x128xf32>
    %72 = vector.extract_strided_slice %65 {offsets = [0, 128], sizes = [1, 128], strides = [1, 1]} : vector<1x256xf32> to vector<1x128xf32>
    %73 = arith.addf %71, %72 : vector<1x128xf32>
    %74 = vector.extract_strided_slice %69 {offsets = [0, 0], sizes = [1, 96], strides = [1, 1]} : vector<1x128xf32> to vector<1x96xf32>
    %75 = arith.negf %74 : vector<1x96xf32>
    %76 = math.exp %75 : vector<1x96xf32>
    %cst_20 = arith.constant 1.000000e+00 : f32
    %77 = vector.broadcast %cst_20 : f32 to vector<1x96xf32>
    %78 = arith.addf %77, %76 : vector<1x96xf32>
    %79 = arith.divf %77, %78 : vector<1x96xf32>
    %80 = vector.extract_strided_slice %73 {offsets = [0, 0], sizes = [1, 96], strides = [1, 1]} : vector<1x128xf32> to vector<1x96xf32>
    %81 = arith.negf %80 : vector<1x96xf32>
    %82 = math.exp %81 : vector<1x96xf32>
    %cst_21 = arith.constant 1.000000e+00 : f32
    %83 = vector.broadcast %cst_21 : f32 to vector<1x96xf32>
    %84 = arith.addf %83, %82 : vector<1x96xf32>
    %85 = arith.divf %83, %84 : vector<1x96xf32>
    %86 = vector.extract_strided_slice %69 {offsets = [0, 96], sizes = [1, 32], strides = [1, 1]} : vector<1x128xf32> to vector<1x32xf32>
    %87 = math.tanh %86 : vector<1x32xf32>
    %88 = vector.extract_strided_slice %73 {offsets = [0, 96], sizes = [1, 32], strides = [1, 1]} : vector<1x128xf32> to vector<1x32xf32>
    %89 = math.tanh %88 : vector<1x32xf32>
    %90 = vector.extract_strided_slice %79 {offsets = [0, 0], sizes = [1, 32], strides = [1, 1]} : vector<1x96xf32> to vector<1x32xf32>
    %91 = vector.extract_strided_slice %56 {offsets = [0, 0], sizes = [1, 32], strides = [1, 1]} : vector<1x64xf32> to vector<1x32xf32>
    %92 = arith.mulf %90, %91 : vector<1x32xf32>
    %93 = vector.extract_strided_slice %79 {offsets = [0, 32], sizes = [1, 32], strides = [1, 1]} : vector<1x96xf32> to vector<1x32xf32>
    %94 = arith.mulf %93, %87 : vector<1x32xf32>
    %95 = arith.addf %92, %94 : vector<1x32xf32>
    %96 = vector.extract_strided_slice %85 {offsets = [0, 0], sizes = [1, 32], strides = [1, 1]} : vector<1x96xf32> to vector<1x32xf32>
    %97 = vector.extract_strided_slice %56 {offsets = [0, 32], sizes = [1, 32], strides = [1, 1]} : vector<1x64xf32> to vector<1x32xf32>
    %98 = arith.mulf %96, %97 : vector<1x32xf32>
    %99 = vector.extract_strided_slice %85 {offsets = [0, 32], sizes = [1, 32], strides = [1, 1]} : vector<1x96xf32> to vector<1x32xf32>
    %100 = arith.mulf %99, %89 : vector<1x32xf32>
    %101 = arith.addf %98, %100 : vector<1x32xf32>
    %102 = vector.extract_strided_slice %79 {offsets = [0, 64], sizes = [1, 32], strides = [1, 1]} : vector<1x96xf32> to vector<1x32xf32>
    %103 = math.tanh %95 : vector<1x32xf32>
    %104 = arith.mulf %102, %103 : vector<1x32xf32>
    %105 = vector.extract_strided_slice %85 {offsets = [0, 64], sizes = [1, 32], strides = [1, 1]} : vector<1x96xf32> to vector<1x32xf32>
    %106 = math.tanh %101 : vector<1x32xf32>
    %107 = arith.mulf %105, %106 : vector<1x32xf32>
    %108 = tpu.concatenate %104, %107 in 1 : vector<1x32xf32>, vector<1x32xf32> -> vector<1x64xf32>
    %109 = tpu.concatenate %95, %101 in 1 : vector<1x32xf32>, vector<1x32xf32> -> vector<1x64xf32>
    %c0_22 = arith.constant 0 : index
    %c1 = arith.constant 1 : index
    %c0_23 = arith.constant 0 : index
    %110 = vector.load %arg13[%c0_22, %c1, %c0_23] : memref<1x8x64xf32, #tpu.memory_space<vmem>>, vector<1x1x32xf32>
    %111 = vector.shape_cast %110 : vector<1x1x32xf32> to vector<1x32xf32>
    %112 = vector.shape_cast %104 : vector<1x32xf32> to vector<1x1x32xf32>
    tpu.vector_store %arg13[%c0_22, %c1, %c0_23], %112 {strides = array<i32>} : memref<1x8x64xf32, #tpu.memory_space<vmem>>, vector<1x1x32xf32>,
    %c0_24 = arith.constant 0 : index
    %c6 = arith.constant 6 : index
    %c32_25 = arith.constant 32 : index
    %113 = vector.load %arg13[%c0_24, %c6, %c32_25] : memref<1x8x64xf32, #tpu.memory_space<vmem>>, vector<1x1x32xf32>
    %114 = vector.shape_cast %113 : vector<1x1x32xf32> to vector<1x32xf32>
    %115 = vector.shape_cast %107 : vector<1x32xf32> to vector<1x1x32xf32>
    tpu.vector_store %arg13[%c0_24, %c6, %c32_25], %115 {strides = array<i32>} : memref<1x8x64xf32, #tpu.memory_space<vmem>>, vector<1x1x32xf32>,
    %116 = arith.truncf %108 : vector<1x64xf32> to vector<1x64xbf16>
    %c0_26 = arith.constant 0 : index
    %c0_27 = arith.constant 0 : index
    %117 = vector.load %arg3[%c0_26, %c0_27] : memref<64x256xbf16, #tpu.memory_space<vmem>>, vector<64x256xbf16>
    %cst_28 = arith.constant dense<0.000000e+00> : vector<1x256xf32>
    %118 = tpu.matmul %116, %117, %cst_28 {dimension_numbers = #tpu.dot_dimension_numbers<[1], [0], [0], [1], [0, 0, 1, 1], [], []>} : vector<1x64xbf16>, vector<64x256xbf16>, vector<1x256xf32> -> vector<1x256xf32>
    %119 = vector.extract_strided_slice %7 {offsets = [0, 2, 0], sizes = [1, 1, 128], strides = [1, 1, 1]} : vector<1x8x256xf32> to vector<1x1x128xf32>
    %120 = vector.shape_cast %119 : vector<1x1x128xf32> to vector<1x128xf32>
    %121 = vector.extract_strided_slice %118 {offsets = [0, 0], sizes = [1, 128], strides = [1, 1]} : vector<1x256xf32> to vector<1x128xf32>
    %122 = arith.addf %120, %121 : vector<1x128xf32>
    %123 = vector.extract_strided_slice %7 {offsets = [0, 5, 128], sizes = [1, 1, 128], strides = [1, 1, 1]} : vector<1x8x256xf32> to vector<1x1x128xf32>
    %124 = vector.shape_cast %123 : vector<1x1x128xf32> to vector<1x128xf32>
    %125 = vector.extract_strided_slice %118 {offsets = [0, 128], sizes = [1, 128], strides = [1, 1]} : vector<1x256xf32> to vector<1x128xf32>
    %126 = arith.addf %124, %125 : vector<1x128xf32>
    %127 = vector.extract_strided_slice %122 {offsets = [0, 0], sizes = [1, 96], strides = [1, 1]} : vector<1x128xf32> to vector<1x96xf32>
    %128 = arith.negf %127 : vector<1x96xf32>
    %129 = math.exp %128 : vector<1x96xf32>
    %cst_29 = arith.constant 1.000000e+00 : f32
    %130 = vector.broadcast %cst_29 : f32 to vector<1x96xf32>
    %131 = arith.addf %130, %129 : vector<1x96xf32>
    %132 = arith.divf %130, %131 : vector<1x96xf32>
    %133 = vector.extract_strided_slice %126 {offsets = [0, 0], sizes = [1, 96], strides = [1, 1]} : vector<1x128xf32> to vector<1x96xf32>
    %134 = arith.negf %133 : vector<1x96xf32>
    %135 = math.exp %134 : vector<1x96xf32>
    %cst_30 = arith.constant 1.000000e+00 : f32
    %136 = vector.broadcast %cst_30 : f32 to vector<1x96xf32>
    %137 = arith.addf %136, %135 : vector<1x96xf32>
    %138 = arith.divf %136, %137 : vector<1x96xf32>
    %139 = vector.extract_strided_slice %122 {offsets = [0, 96], sizes = [1, 32], strides = [1, 1]} : vector<1x128xf32> to vector<1x32xf32>
    %140 = math.tanh %139 : vector<1x32xf32>
    %141 = vector.extract_strided_slice %126 {offsets = [0, 96], sizes = [1, 32], strides = [1, 1]} : vector<1x128xf32> to vector<1x32xf32>
    %142 = math.tanh %141 : vector<1x32xf32>
    %143 = vector.extract_strided_slice %132 {offsets = [0, 0], sizes = [1, 32], strides = [1, 1]} : vector<1x96xf32> to vector<1x32xf32>
    %144 = vector.extract_strided_slice %109 {offsets = [0, 0], sizes = [1, 32], strides = [1, 1]} : vector<1x64xf32> to vector<1x32xf32>
    %145 = arith.mulf %143, %144 : vector<1x32xf32>
    %146 = vector.extract_strided_slice %132 {offsets = [0, 32], sizes = [1, 32], strides = [1, 1]} : vector<1x96xf32> to vector<1x32xf32>
    %147 = arith.mulf %146, %140 : vector<1x32xf32>
    %148 = arith.addf %145, %147 : vector<1x32xf32>
    %149 = vector.extract_strided_slice %138 {offsets = [0, 0], sizes = [1, 32], strides = [1, 1]} : vector<1x96xf32> to vector<1x32xf32>
    %150 = vector.extract_strided_slice %109 {offsets = [0, 32], sizes = [1, 32], strides = [1, 1]} : vector<1x64xf32> to vector<1x32xf32>
    %151 = arith.mulf %149, %150 : vector<1x32xf32>
    %152 = vector.extract_strided_slice %138 {offsets = [0, 32], sizes = [1, 32], strides = [1, 1]} : vector<1x96xf32> to vector<1x32xf32>
    %153 = arith.mulf %152, %142 : vector<1x32xf32>
    %154 = arith.addf %151, %153 : vector<1x32xf32>
    %155 = vector.extract_strided_slice %132 {offsets = [0, 64], sizes = [1, 32], strides = [1, 1]} : vector<1x96xf32> to vector<1x32xf32>
    %156 = math.tanh %148 : vector<1x32xf32>
    %157 = arith.mulf %155, %156 : vector<1x32xf32>
    %158 = vector.extract_strided_slice %138 {offsets = [0, 64], sizes = [1, 32], strides = [1, 1]} : vector<1x96xf32> to vector<1x32xf32>
    %159 = math.tanh %154 : vector<1x32xf32>
    %160 = arith.mulf %158, %159 : vector<1x32xf32>
    %161 = tpu.concatenate %157, %160 in 1 : vector<1x32xf32>, vector<1x32xf32> -> vector<1x64xf32>
    %162 = tpu.concatenate %148, %154 in 1 : vector<1x32xf32>, vector<1x32xf32> -> vector<1x64xf32>
    %c0_31 = arith.constant 0 : index
    %c2 = arith.constant 2 : index
    %c0_32 = arith.constant 0 : index
    %163 = vector.load %arg13[%c0_31, %c2, %c0_32] : memref<1x8x64xf32, #tpu.memory_space<vmem>>, vector<1x1x32xf32>
    %164 = vector.shape_cast %163 : vector<1x1x32xf32> to vector<1x32xf32>
    %165 = vector.shape_cast %157 : vector<1x32xf32> to vector<1x1x32xf32>
    tpu.vector_store %arg13[%c0_31, %c2, %c0_32], %165 {strides = array<i32>} : memref<1x8x64xf32, #tpu.memory_space<vmem>>, vector<1x1x32xf32>,
    %c0_33 = arith.constant 0 : index
    %c5 = arith.constant 5 : index
    %c32_34 = arith.constant 32 : index
    %166 = vector.load %arg13[%c0_33, %c5, %c32_34] : memref<1x8x64xf32, #tpu.memory_space<vmem>>, vector<1x1x32xf32>
    %167 = vector.shape_cast %166 : vector<1x1x32xf32> to vector<1x32xf32>
    %168 = vector.shape_cast %160 : vector<1x32xf32> to vector<1x1x32xf32>
    tpu.vector_store %arg13[%c0_33, %c5, %c32_34], %168 {strides = array<i32>} : memref<1x8x64xf32, #tpu.memory_space<vmem>>, vector<1x1x32xf32>,
    %169 = arith.truncf %161 : vector<1x64xf32> to vector<1x64xbf16>
    %c0_35 = arith.constant 0 : index
    %c0_36 = arith.constant 0 : index
    %170 = vector.load %arg3[%c0_35, %c0_36] : memref<64x256xbf16, #tpu.memory_space<vmem>>, vector<64x256xbf16>
    %cst_37 = arith.constant dense<0.000000e+00> : vector<1x256xf32>
    %171 = tpu.matmul %169, %170, %cst_37 {dimension_numbers = #tpu.dot_dimension_numbers<[1], [0], [0], [1], [0, 0, 1, 1], [], []>} : vector<1x64xbf16>, vector<64x256xbf16>, vector<1x256xf32> -> vector<1x256xf32>
    %172 = vector.extract_strided_slice %7 {offsets = [0, 3, 0], sizes = [1, 1, 128], strides = [1, 1, 1]} : vector<1x8x256xf32> to vector<1x1x128xf32>
    %173 = vector.shape_cast %172 : vector<1x1x128xf32> to vector<1x128xf32>
    %174 = vector.extract_strided_slice %171 {offsets = [0, 0], sizes = [1, 128], strides = [1, 1]} : vector<1x256xf32> to vector<1x128xf32>
    %175 = arith.addf %173, %174 : vector<1x128xf32>
    %176 = vector.extract_strided_slice %7 {offsets = [0, 4, 128], sizes = [1, 1, 128], strides = [1, 1, 1]} : vector<1x8x256xf32> to vector<1x1x128xf32>
    %177 = vector.shape_cast %176 : vector<1x1x128xf32> to vector<1x128xf32>
    %178 = vector.extract_strided_slice %171 {offsets = [0, 128], sizes = [1, 128], strides = [1, 1]} : vector<1x256xf32> to vector<1x128xf32>
    %179 = arith.addf %177, %178 : vector<1x128xf32>
    %180 = vector.extract_strided_slice %175 {offsets = [0, 0], sizes = [1, 96], strides = [1, 1]} : vector<1x128xf32> to vector<1x96xf32>
    %181 = arith.negf %180 : vector<1x96xf32>
    %182 = math.exp %181 : vector<1x96xf32>
    %cst_38 = arith.constant 1.000000e+00 : f32
    %183 = vector.broadcast %cst_38 : f32 to vector<1x96xf32>
    %184 = arith.addf %183, %182 : vector<1x96xf32>
    %185 = arith.divf %183, %184 : vector<1x96xf32>
    %186 = vector.extract_strided_slice %179 {offsets = [0, 0], sizes = [1, 96], strides = [1, 1]} : vector<1x128xf32> to vector<1x96xf32>
    %187 = arith.negf %186 : vector<1x96xf32>
    %188 = math.exp %187 : vector<1x96xf32>
    %cst_39 = arith.constant 1.000000e+00 : f32
    %189 = vector.broadcast %cst_39 : f32 to vector<1x96xf32>
    %190 = arith.addf %189, %188 : vector<1x96xf32>
    %191 = arith.divf %189, %190 : vector<1x96xf32>
    %192 = vector.extract_strided_slice %175 {offsets = [0, 96], sizes = [1, 32], strides = [1, 1]} : vector<1x128xf32> to vector<1x32xf32>
    %193 = math.tanh %192 : vector<1x32xf32>
    %194 = vector.extract_strided_slice %179 {offsets = [0, 96], sizes = [1, 32], strides = [1, 1]} : vector<1x128xf32> to vector<1x32xf32>
    %195 = math.tanh %194 : vector<1x32xf32>
    %196 = vector.extract_strided_slice %185 {offsets = [0, 0], sizes = [1, 32], strides = [1, 1]} : vector<1x96xf32> to vector<1x32xf32>
    %197 = vector.extract_strided_slice %162 {offsets = [0, 0], sizes = [1, 32], strides = [1, 1]} : vector<1x64xf32> to vector<1x32xf32>
    %198 = arith.mulf %196, %197 : vector<1x32xf32>
    %199 = vector.extract_strided_slice %185 {offsets = [0, 32], sizes = [1, 32], strides = [1, 1]} : vector<1x96xf32> to vector<1x32xf32>
    %200 = arith.mulf %199, %193 : vector<1x32xf32>
    %201 = arith.addf %198, %200 : vector<1x32xf32>
    %202 = vector.extract_strided_slice %191 {offsets = [0, 0], sizes = [1, 32], strides = [1, 1]} : vector<1x96xf32> to vector<1x32xf32>
    %203 = vector.extract_strided_slice %162 {offsets = [0, 32], sizes = [1, 32], strides = [1, 1]} : vector<1x64xf32> to vector<1x32xf32>
    %204 = arith.mulf %202, %203 : vector<1x32xf32>
    %205 = vector.extract_strided_slice %191 {offsets = [0, 32], sizes = [1, 32], strides = [1, 1]} : vector<1x96xf32> to vector<1x32xf32>
    %206 = arith.mulf %205, %195 : vector<1x32xf32>
    %207 = arith.addf %204, %206 : vector<1x32xf32>
    %208 = vector.extract_strided_slice %185 {offsets = [0, 64], sizes = [1, 32], strides = [1, 1]} : vector<1x96xf32> to vector<1x32xf32>
    %209 = math.tanh %201 : vector<1x32xf32>
    %210 = arith.mulf %208, %209 : vector<1x32xf32>
    %211 = vector.extract_strided_slice %191 {offsets = [0, 64], sizes = [1, 32], strides = [1, 1]} : vector<1x96xf32> to vector<1x32xf32>
    %212 = math.tanh %207 : vector<1x32xf32>
    %213 = arith.mulf %211, %212 : vector<1x32xf32>
    %214 = tpu.concatenate %210, %213 in 1 : vector<1x32xf32>, vector<1x32xf32> -> vector<1x64xf32>
    %215 = tpu.concatenate %201, %207 in 1 : vector<1x32xf32>, vector<1x32xf32> -> vector<1x64xf32>
    %c0_40 = arith.constant 0 : index
    %c3 = arith.constant 3 : index
    %c0_41 = arith.constant 0 : index
    %216 = vector.load %arg13[%c0_40, %c3, %c0_41] : memref<1x8x64xf32, #tpu.memory_space<vmem>>, vector<1x1x32xf32>
    %217 = vector.shape_cast %216 : vector<1x1x32xf32> to vector<1x32xf32>
    %218 = vector.shape_cast %210 : vector<1x32xf32> to vector<1x1x32xf32>
    tpu.vector_store %arg13[%c0_40, %c3, %c0_41], %218 {strides = array<i32>} : memref<1x8x64xf32, #tpu.memory_space<vmem>>, vector<1x1x32xf32>,
    %c0_42 = arith.constant 0 : index
    %c4 = arith.constant 4 : index
    %c32_43 = arith.constant 32 : index
    %219 = vector.load %arg13[%c0_42, %c4, %c32_43] : memref<1x8x64xf32, #tpu.memory_space<vmem>>, vector<1x1x32xf32>
    %220 = vector.shape_cast %219 : vector<1x1x32xf32> to vector<1x32xf32>
    %221 = vector.shape_cast %213 : vector<1x32xf32> to vector<1x1x32xf32>
    tpu.vector_store %arg13[%c0_42, %c4, %c32_43], %221 {strides = array<i32>} : memref<1x8x64xf32, #tpu.memory_space<vmem>>, vector<1x1x32xf32>,
    %222 = arith.truncf %214 : vector<1x64xf32> to vector<1x64xbf16>
    %c0_44 = arith.constant 0 : index
    %c0_45 = arith.constant 0 : index
    %223 = vector.load %arg3[%c0_44, %c0_45] : memref<64x256xbf16, #tpu.memory_space<vmem>>, vector<64x256xbf16>
    %cst_46 = arith.constant dense<0.000000e+00> : vector<1x256xf32>
    %224 = tpu.matmul %222, %223, %cst_46 {dimension_numbers = #tpu.dot_dimension_numbers<[1], [0], [0], [1], [0, 0, 1, 1], [], []>} : vector<1x64xbf16>, vector<64x256xbf16>, vector<1x256xf32> -> vector<1x256xf32>
    %225 = vector.extract_strided_slice %7 {offsets = [0, 4, 0], sizes = [1, 1, 128], strides = [1, 1, 1]} : vector<1x8x256xf32> to vector<1x1x128xf32>
    %226 = vector.shape_cast %225 : vector<1x1x128xf32> to vector<1x128xf32>
    %227 = vector.extract_strided_slice %224 {offsets = [0, 0], sizes = [1, 128], strides = [1, 1]} : vector<1x256xf32> to vector<1x128xf32>
    %228 = arith.addf %226, %227 : vector<1x128xf32>
    %229 = vector.extract_strided_slice %7 {offsets = [0, 3, 128], sizes = [1, 1, 128], strides = [1, 1, 1]} : vector<1x8x256xf32> to vector<1x1x128xf32>
    %230 = vector.shape_cast %229 : vector<1x1x128xf32> to vector<1x128xf32>
    %231 = vector.extract_strided_slice %224 {offsets = [0, 128], sizes = [1, 128], strides = [1, 1]} : vector<1x256xf32> to vector<1x128xf32>
    %232 = arith.addf %230, %231 : vector<1x128xf32>
    %233 = vector.extract_strided_slice %228 {offsets = [0, 0], sizes = [1, 96], strides = [1, 1]} : vector<1x128xf32> to vector<1x96xf32>
    %234 = arith.negf %233 : vector<1x96xf32>
    %235 = math.exp %234 : vector<1x96xf32>
    %cst_47 = arith.constant 1.000000e+00 : f32
    %236 = vector.broadcast %cst_47 : f32 to vector<1x96xf32>
    %237 = arith.addf %236, %235 : vector<1x96xf32>
    %238 = arith.divf %236, %237 : vector<1x96xf32>
    %239 = vector.extract_strided_slice %232 {offsets = [0, 0], sizes = [1, 96], strides = [1, 1]} : vector<1x128xf32> to vector<1x96xf32>
    %240 = arith.negf %239 : vector<1x96xf32>
    %241 = math.exp %240 : vector<1x96xf32>
    %cst_48 = arith.constant 1.000000e+00 : f32
    %242 = vector.broadcast %cst_48 : f32 to vector<1x96xf32>
    %243 = arith.addf %242, %241 : vector<1x96xf32>
    %244 = arith.divf %242, %243 : vector<1x96xf32>
    %245 = vector.extract_strided_slice %228 {offsets = [0, 96], sizes = [1, 32], strides = [1, 1]} : vector<1x128xf32> to vector<1x32xf32>
    %246 = math.tanh %245 : vector<1x32xf32>
    %247 = vector.extract_strided_slice %232 {offsets = [0, 96], sizes = [1, 32], strides = [1, 1]} : vector<1x128xf32> to vector<1x32xf32>
    %248 = math.tanh %247 : vector<1x32xf32>
    %249 = vector.extract_strided_slice %238 {offsets = [0, 0], sizes = [1, 32], strides = [1, 1]} : vector<1x96xf32> to vector<1x32xf32>
    %250 = vector.extract_strided_slice %215 {offsets = [0, 0], sizes = [1, 32], strides = [1, 1]} : vector<1x64xf32> to vector<1x32xf32>
    %251 = arith.mulf %249, %250 : vector<1x32xf32>
    %252 = vector.extract_strided_slice %238 {offsets = [0, 32], sizes = [1, 32], strides = [1, 1]} : vector<1x96xf32> to vector<1x32xf32>
    %253 = arith.mulf %252, %246 : vector<1x32xf32>
    %254 = arith.addf %251, %253 : vector<1x32xf32>
    %255 = vector.extract_strided_slice %244 {offsets = [0, 0], sizes = [1, 32], strides = [1, 1]} : vector<1x96xf32> to vector<1x32xf32>
    %256 = vector.extract_strided_slice %215 {offsets = [0, 32], sizes = [1, 32], strides = [1, 1]} : vector<1x64xf32> to vector<1x32xf32>
    %257 = arith.mulf %255, %256 : vector<1x32xf32>
    %258 = vector.extract_strided_slice %244 {offsets = [0, 32], sizes = [1, 32], strides = [1, 1]} : vector<1x96xf32> to vector<1x32xf32>
    %259 = arith.mulf %258, %248 : vector<1x32xf32>
    %260 = arith.addf %257, %259 : vector<1x32xf32>
    %261 = vector.extract_strided_slice %238 {offsets = [0, 64], sizes = [1, 32], strides = [1, 1]} : vector<1x96xf32> to vector<1x32xf32>
    %262 = math.tanh %254 : vector<1x32xf32>
    %263 = arith.mulf %261, %262 : vector<1x32xf32>
    %264 = vector.extract_strided_slice %244 {offsets = [0, 64], sizes = [1, 32], strides = [1, 1]} : vector<1x96xf32> to vector<1x32xf32>
    %265 = math.tanh %260 : vector<1x32xf32>
    %266 = arith.mulf %264, %265 : vector<1x32xf32>
    %267 = tpu.concatenate %263, %266 in 1 : vector<1x32xf32>, vector<1x32xf32> -> vector<1x64xf32>
    %268 = tpu.concatenate %254, %260 in 1 : vector<1x32xf32>, vector<1x32xf32> -> vector<1x64xf32>
    %c0_49 = arith.constant 0 : index
    %c4_50 = arith.constant 4 : index
    %c0_51 = arith.constant 0 : index
    %269 = vector.load %arg13[%c0_49, %c4_50, %c0_51] : memref<1x8x64xf32, #tpu.memory_space<vmem>>, vector<1x1x32xf32>
    %270 = vector.shape_cast %269 : vector<1x1x32xf32> to vector<1x32xf32>
    %271 = vector.shape_cast %263 : vector<1x32xf32> to vector<1x1x32xf32>
    tpu.vector_store %arg13[%c0_49, %c4_50, %c0_51], %271 {strides = array<i32>} : memref<1x8x64xf32, #tpu.memory_space<vmem>>, vector<1x1x32xf32>,
    %c0_52 = arith.constant 0 : index
    %c3_53 = arith.constant 3 : index
    %c32_54 = arith.constant 32 : index
    %272 = vector.load %arg13[%c0_52, %c3_53, %c32_54] : memref<1x8x64xf32, #tpu.memory_space<vmem>>, vector<1x1x32xf32>
    %273 = vector.shape_cast %272 : vector<1x1x32xf32> to vector<1x32xf32>
    %274 = vector.shape_cast %266 : vector<1x32xf32> to vector<1x1x32xf32>
    tpu.vector_store %arg13[%c0_52, %c3_53, %c32_54], %274 {strides = array<i32>} : memref<1x8x64xf32, #tpu.memory_space<vmem>>, vector<1x1x32xf32>,
    %275 = arith.truncf %267 : vector<1x64xf32> to vector<1x64xbf16>
    %c0_55 = arith.constant 0 : index
    %c0_56 = arith.constant 0 : index
    %276 = vector.load %arg3[%c0_55, %c0_56] : memref<64x256xbf16, #tpu.memory_space<vmem>>, vector<64x256xbf16>
    %cst_57 = arith.constant dense<0.000000e+00> : vector<1x256xf32>
    %277 = tpu.matmul %275, %276, %cst_57 {dimension_numbers = #tpu.dot_dimension_numbers<[1], [0], [0], [1], [0, 0, 1, 1], [], []>} : vector<1x64xbf16>, vector<64x256xbf16>, vector<1x256xf32> -> vector<1x256xf32>
    %278 = vector.extract_strided_slice %7 {offsets = [0, 5, 0], sizes = [1, 1, 128], strides = [1, 1, 1]} : vector<1x8x256xf32> to vector<1x1x128xf32>
    %279 = vector.shape_cast %278 : vector<1x1x128xf32> to vector<1x128xf32>
    %280 = vector.extract_strided_slice %277 {offsets = [0, 0], sizes = [1, 128], strides = [1, 1]} : vector<1x256xf32> to vector<1x128xf32>
    %281 = arith.addf %279, %280 : vector<1x128xf32>
    %282 = vector.extract_strided_slice %7 {offsets = [0, 2, 128], sizes = [1, 1, 128], strides = [1, 1, 1]} : vector<1x8x256xf32> to vector<1x1x128xf32>
    %283 = vector.shape_cast %282 : vector<1x1x128xf32> to vector<1x128xf32>
    %284 = vector.extract_strided_slice %277 {offsets = [0, 128], sizes = [1, 128], strides = [1, 1]} : vector<1x256xf32> to vector<1x128xf32>
    %285 = arith.addf %283, %284 : vector<1x128xf32>
    %286 = vector.extract_strided_slice %281 {offsets = [0, 0], sizes = [1, 96], strides = [1, 1]} : vector<1x128xf32> to vector<1x96xf32>
    %287 = arith.negf %286 : vector<1x96xf32>
    %288 = math.exp %287 : vector<1x96xf32>
    %cst_58 = arith.constant 1.000000e+00 : f32
    %289 = vector.broadcast %cst_58 : f32 to vector<1x96xf32>
    %290 = arith.addf %289, %288 : vector<1x96xf32>
    %291 = arith.divf %289, %290 : vector<1x96xf32>
    %292 = vector.extract_strided_slice %285 {offsets = [0, 0], sizes = [1, 96], strides = [1, 1]} : vector<1x128xf32> to vector<1x96xf32>
    %293 = arith.negf %292 : vector<1x96xf32>
    %294 = math.exp %293 : vector<1x96xf32>
    %cst_59 = arith.constant 1.000000e+00 : f32
    %295 = vector.broadcast %cst_59 : f32 to vector<1x96xf32>
    %296 = arith.addf %295, %294 : vector<1x96xf32>
    %297 = arith.divf %295, %296 : vector<1x96xf32>
    %298 = vector.extract_strided_slice %281 {offsets = [0, 96], sizes = [1, 32], strides = [1, 1]} : vector<1x128xf32> to vector<1x32xf32>
    %299 = math.tanh %298 : vector<1x32xf32>
    %300 = vector.extract_strided_slice %285 {offsets = [0, 96], sizes = [1, 32], strides = [1, 1]} : vector<1x128xf32> to vector<1x32xf32>
    %301 = math.tanh %300 : vector<1x32xf32>
    %302 = vector.extract_strided_slice %291 {offsets = [0, 0], sizes = [1, 32], strides = [1, 1]} : vector<1x96xf32> to vector<1x32xf32>
    %303 = vector.extract_strided_slice %268 {offsets = [0, 0], sizes = [1, 32], strides = [1, 1]} : vector<1x64xf32> to vector<1x32xf32>
    %304 = arith.mulf %302, %303 : vector<1x32xf32>
    %305 = vector.extract_strided_slice %291 {offsets = [0, 32], sizes = [1, 32], strides = [1, 1]} : vector<1x96xf32> to vector<1x32xf32>
    %306 = arith.mulf %305, %299 : vector<1x32xf32>
    %307 = arith.addf %304, %306 : vector<1x32xf32>
    %308 = vector.extract_strided_slice %297 {offsets = [0, 0], sizes = [1, 32], strides = [1, 1]} : vector<1x96xf32> to vector<1x32xf32>
    %309 = vector.extract_strided_slice %268 {offsets = [0, 32], sizes = [1, 32], strides = [1, 1]} : vector<1x64xf32> to vector<1x32xf32>
    %310 = arith.mulf %308, %309 : vector<1x32xf32>
    %311 = vector.extract_strided_slice %297 {offsets = [0, 32], sizes = [1, 32], strides = [1, 1]} : vector<1x96xf32> to vector<1x32xf32>
    %312 = arith.mulf %311, %301 : vector<1x32xf32>
    %313 = arith.addf %310, %312 : vector<1x32xf32>
    %314 = vector.extract_strided_slice %291 {offsets = [0, 64], sizes = [1, 32], strides = [1, 1]} : vector<1x96xf32> to vector<1x32xf32>
    %315 = math.tanh %307 : vector<1x32xf32>
    %316 = arith.mulf %314, %315 : vector<1x32xf32>
    %317 = vector.extract_strided_slice %297 {offsets = [0, 64], sizes = [1, 32], strides = [1, 1]} : vector<1x96xf32> to vector<1x32xf32>
    %318 = math.tanh %313 : vector<1x32xf32>
    %319 = arith.mulf %317, %318 : vector<1x32xf32>
    %320 = tpu.concatenate %316, %319 in 1 : vector<1x32xf32>, vector<1x32xf32> -> vector<1x64xf32>
    %321 = tpu.concatenate %307, %313 in 1 : vector<1x32xf32>, vector<1x32xf32> -> vector<1x64xf32>
    %c0_60 = arith.constant 0 : index
    %c5_61 = arith.constant 5 : index
    %c0_62 = arith.constant 0 : index
    %322 = vector.load %arg13[%c0_60, %c5_61, %c0_62] : memref<1x8x64xf32, #tpu.memory_space<vmem>>, vector<1x1x32xf32>
    %323 = vector.shape_cast %322 : vector<1x1x32xf32> to vector<1x32xf32>
    %324 = vector.shape_cast %316 : vector<1x32xf32> to vector<1x1x32xf32>
    tpu.vector_store %arg13[%c0_60, %c5_61, %c0_62], %324 {strides = array<i32>} : memref<1x8x64xf32, #tpu.memory_space<vmem>>, vector<1x1x32xf32>,
    %c0_63 = arith.constant 0 : index
    %c2_64 = arith.constant 2 : index
    %c32_65 = arith.constant 32 : index
    %325 = vector.load %arg13[%c0_63, %c2_64, %c32_65] : memref<1x8x64xf32, #tpu.memory_space<vmem>>, vector<1x1x32xf32>
    %326 = vector.shape_cast %325 : vector<1x1x32xf32> to vector<1x32xf32>
    %327 = vector.shape_cast %319 : vector<1x32xf32> to vector<1x1x32xf32>
    tpu.vector_store %arg13[%c0_63, %c2_64, %c32_65], %327 {strides = array<i32>} : memref<1x8x64xf32, #tpu.memory_space<vmem>>, vector<1x1x32xf32>,
    %328 = arith.truncf %320 : vector<1x64xf32> to vector<1x64xbf16>
    %c0_66 = arith.constant 0 : index
    %c0_67 = arith.constant 0 : index
    %329 = vector.load %arg3[%c0_66, %c0_67] : memref<64x256xbf16, #tpu.memory_space<vmem>>, vector<64x256xbf16>
    %cst_68 = arith.constant dense<0.000000e+00> : vector<1x256xf32>
    %330 = tpu.matmul %328, %329, %cst_68 {dimension_numbers = #tpu.dot_dimension_numbers<[1], [0], [0], [1], [0, 0, 1, 1], [], []>} : vector<1x64xbf16>, vector<64x256xbf16>, vector<1x256xf32> -> vector<1x256xf32>
    %331 = vector.extract_strided_slice %7 {offsets = [0, 6, 0], sizes = [1, 1, 128], strides = [1, 1, 1]} : vector<1x8x256xf32> to vector<1x1x128xf32>
    %332 = vector.shape_cast %331 : vector<1x1x128xf32> to vector<1x128xf32>
    %333 = vector.extract_strided_slice %330 {offsets = [0, 0], sizes = [1, 128], strides = [1, 1]} : vector<1x256xf32> to vector<1x128xf32>
    %334 = arith.addf %332, %333 : vector<1x128xf32>
    %335 = vector.extract_strided_slice %7 {offsets = [0, 1, 128], sizes = [1, 1, 128], strides = [1, 1, 1]} : vector<1x8x256xf32> to vector<1x1x128xf32>
    %336 = vector.shape_cast %335 : vector<1x1x128xf32> to vector<1x128xf32>
    %337 = vector.extract_strided_slice %330 {offsets = [0, 128], sizes = [1, 128], strides = [1, 1]} : vector<1x256xf32> to vector<1x128xf32>
    %338 = arith.addf %336, %337 : vector<1x128xf32>
    %339 = vector.extract_strided_slice %334 {offsets = [0, 0], sizes = [1, 96], strides = [1, 1]} : vector<1x128xf32> to vector<1x96xf32>
    %340 = arith.negf %339 : vector<1x96xf32>
    %341 = math.exp %340 : vector<1x96xf32>
    %cst_69 = arith.constant 1.000000e+00 : f32
    %342 = vector.broadcast %cst_69 : f32 to vector<1x96xf32>
    %343 = arith.addf %342, %341 : vector<1x96xf32>
    %344 = arith.divf %342, %343 : vector<1x96xf32>
    %345 = vector.extract_strided_slice %338 {offsets = [0, 0], sizes = [1, 96], strides = [1, 1]} : vector<1x128xf32> to vector<1x96xf32>
    %346 = arith.negf %345 : vector<1x96xf32>
    %347 = math.exp %346 : vector<1x96xf32>
    %cst_70 = arith.constant 1.000000e+00 : f32
    %348 = vector.broadcast %cst_70 : f32 to vector<1x96xf32>
    %349 = arith.addf %348, %347 : vector<1x96xf32>
    %350 = arith.divf %348, %349 : vector<1x96xf32>
    %351 = vector.extract_strided_slice %334 {offsets = [0, 96], sizes = [1, 32], strides = [1, 1]} : vector<1x128xf32> to vector<1x32xf32>
    %352 = math.tanh %351 : vector<1x32xf32>
    %353 = vector.extract_strided_slice %338 {offsets = [0, 96], sizes = [1, 32], strides = [1, 1]} : vector<1x128xf32> to vector<1x32xf32>
    %354 = math.tanh %353 : vector<1x32xf32>
    %355 = vector.extract_strided_slice %344 {offsets = [0, 0], sizes = [1, 32], strides = [1, 1]} : vector<1x96xf32> to vector<1x32xf32>
    %356 = vector.extract_strided_slice %321 {offsets = [0, 0], sizes = [1, 32], strides = [1, 1]} : vector<1x64xf32> to vector<1x32xf32>
    %357 = arith.mulf %355, %356 : vector<1x32xf32>
    %358 = vector.extract_strided_slice %344 {offsets = [0, 32], sizes = [1, 32], strides = [1, 1]} : vector<1x96xf32> to vector<1x32xf32>
    %359 = arith.mulf %358, %352 : vector<1x32xf32>
    %360 = arith.addf %357, %359 : vector<1x32xf32>
    %361 = vector.extract_strided_slice %350 {offsets = [0, 0], sizes = [1, 32], strides = [1, 1]} : vector<1x96xf32> to vector<1x32xf32>
    %362 = vector.extract_strided_slice %321 {offsets = [0, 32], sizes = [1, 32], strides = [1, 1]} : vector<1x64xf32> to vector<1x32xf32>
    %363 = arith.mulf %361, %362 : vector<1x32xf32>
    %364 = vector.extract_strided_slice %350 {offsets = [0, 32], sizes = [1, 32], strides = [1, 1]} : vector<1x96xf32> to vector<1x32xf32>
    %365 = arith.mulf %364, %354 : vector<1x32xf32>
    %366 = arith.addf %363, %365 : vector<1x32xf32>
    %367 = vector.extract_strided_slice %344 {offsets = [0, 64], sizes = [1, 32], strides = [1, 1]} : vector<1x96xf32> to vector<1x32xf32>
    %368 = math.tanh %360 : vector<1x32xf32>
    %369 = arith.mulf %367, %368 : vector<1x32xf32>
    %370 = vector.extract_strided_slice %350 {offsets = [0, 64], sizes = [1, 32], strides = [1, 1]} : vector<1x96xf32> to vector<1x32xf32>
    %371 = math.tanh %366 : vector<1x32xf32>
    %372 = arith.mulf %370, %371 : vector<1x32xf32>
    %373 = tpu.concatenate %369, %372 in 1 : vector<1x32xf32>, vector<1x32xf32> -> vector<1x64xf32>
    %374 = tpu.concatenate %360, %366 in 1 : vector<1x32xf32>, vector<1x32xf32> -> vector<1x64xf32>
    %c0_71 = arith.constant 0 : index
    %c6_72 = arith.constant 6 : index
    %c0_73 = arith.constant 0 : index
    %375 = vector.load %arg13[%c0_71, %c6_72, %c0_73] : memref<1x8x64xf32, #tpu.memory_space<vmem>>, vector<1x1x32xf32>
    %376 = vector.shape_cast %375 : vector<1x1x32xf32> to vector<1x32xf32>
    %377 = vector.shape_cast %369 : vector<1x32xf32> to vector<1x1x32xf32>
    tpu.vector_store %arg13[%c0_71, %c6_72, %c0_73], %377 {strides = array<i32>} : memref<1x8x64xf32, #tpu.memory_space<vmem>>, vector<1x1x32xf32>,
    %c0_74 = arith.constant 0 : index
    %c1_75 = arith.constant 1 : index
    %c32_76 = arith.constant 32 : index
    %378 = vector.load %arg13[%c0_74, %c1_75, %c32_76] : memref<1x8x64xf32, #tpu.memory_space<vmem>>, vector<1x1x32xf32>
    %379 = vector.shape_cast %378 : vector<1x1x32xf32> to vector<1x32xf32>
    %380 = vector.shape_cast %372 : vector<1x32xf32> to vector<1x1x32xf32>
    tpu.vector_store %arg13[%c0_74, %c1_75, %c32_76], %380 {strides = array<i32>} : memref<1x8x64xf32, #tpu.memory_space<vmem>>, vector<1x1x32xf32>,
    %381 = arith.truncf %373 : vector<1x64xf32> to vector<1x64xbf16>
    %c0_77 = arith.constant 0 : index
    %c0_78 = arith.constant 0 : index
    %382 = vector.load %arg3[%c0_77, %c0_78] : memref<64x256xbf16, #tpu.memory_space<vmem>>, vector<64x256xbf16>
    %cst_79 = arith.constant dense<0.000000e+00> : vector<1x256xf32>
    %383 = tpu.matmul %381, %382, %cst_79 {dimension_numbers = #tpu.dot_dimension_numbers<[1], [0], [0], [1], [0, 0, 1, 1], [], []>} : vector<1x64xbf16>, vector<64x256xbf16>, vector<1x256xf32> -> vector<1x256xf32>
    %384 = vector.extract_strided_slice %7 {offsets = [0, 7, 0], sizes = [1, 1, 128], strides = [1, 1, 1]} : vector<1x8x256xf32> to vector<1x1x128xf32>
    %385 = vector.shape_cast %384 : vector<1x1x128xf32> to vector<1x128xf32>
    %386 = vector.extract_strided_slice %383 {offsets = [0, 0], sizes = [1, 128], strides = [1, 1]} : vector<1x256xf32> to vector<1x128xf32>
    %387 = arith.addf %385, %386 : vector<1x128xf32>
    %388 = vector.extract_strided_slice %7 {offsets = [0, 0, 128], sizes = [1, 1, 128], strides = [1, 1, 1]} : vector<1x8x256xf32> to vector<1x1x128xf32>
    %389 = vector.shape_cast %388 : vector<1x1x128xf32> to vector<1x128xf32>
    %390 = vector.extract_strided_slice %383 {offsets = [0, 128], sizes = [1, 128], strides = [1, 1]} : vector<1x256xf32> to vector<1x128xf32>
    %391 = arith.addf %389, %390 : vector<1x128xf32>
    %392 = vector.extract_strided_slice %387 {offsets = [0, 0], sizes = [1, 96], strides = [1, 1]} : vector<1x128xf32> to vector<1x96xf32>
    %393 = arith.negf %392 : vector<1x96xf32>
    %394 = math.exp %393 : vector<1x96xf32>
    %cst_80 = arith.constant 1.000000e+00 : f32
    %395 = vector.broadcast %cst_80 : f32 to vector<1x96xf32>
    %396 = arith.addf %395, %394 : vector<1x96xf32>
    %397 = arith.divf %395, %396 : vector<1x96xf32>
    %398 = vector.extract_strided_slice %391 {offsets = [0, 0], sizes = [1, 96], strides = [1, 1]} : vector<1x128xf32> to vector<1x96xf32>
    %399 = arith.negf %398 : vector<1x96xf32>
    %400 = math.exp %399 : vector<1x96xf32>
    %cst_81 = arith.constant 1.000000e+00 : f32
    %401 = vector.broadcast %cst_81 : f32 to vector<1x96xf32>
    %402 = arith.addf %401, %400 : vector<1x96xf32>
    %403 = arith.divf %401, %402 : vector<1x96xf32>
    %404 = vector.extract_strided_slice %387 {offsets = [0, 96], sizes = [1, 32], strides = [1, 1]} : vector<1x128xf32> to vector<1x32xf32>
    %405 = math.tanh %404 : vector<1x32xf32>
    %406 = vector.extract_strided_slice %391 {offsets = [0, 96], sizes = [1, 32], strides = [1, 1]} : vector<1x128xf32> to vector<1x32xf32>
    %407 = math.tanh %406 : vector<1x32xf32>
    %408 = vector.extract_strided_slice %397 {offsets = [0, 0], sizes = [1, 32], strides = [1, 1]} : vector<1x96xf32> to vector<1x32xf32>
    %409 = vector.extract_strided_slice %374 {offsets = [0, 0], sizes = [1, 32], strides = [1, 1]} : vector<1x64xf32> to vector<1x32xf32>
    %410 = arith.mulf %408, %409 : vector<1x32xf32>
    %411 = vector.extract_strided_slice %397 {offsets = [0, 32], sizes = [1, 32], strides = [1, 1]} : vector<1x96xf32> to vector<1x32xf32>
    %412 = arith.mulf %411, %405 : vector<1x32xf32>
    %413 = arith.addf %410, %412 : vector<1x32xf32>
    %414 = vector.extract_strided_slice %403 {offsets = [0, 0], sizes = [1, 32], strides = [1, 1]} : vector<1x96xf32> to vector<1x32xf32>
    %415 = vector.extract_strided_slice %374 {offsets = [0, 32], sizes = [1, 32], strides = [1, 1]} : vector<1x64xf32> to vector<1x32xf32>
    %416 = arith.mulf %414, %415 : vector<1x32xf32>
    %417 = vector.extract_strided_slice %403 {offsets = [0, 32], sizes = [1, 32], strides = [1, 1]} : vector<1x96xf32> to vector<1x32xf32>
    %418 = arith.mulf %417, %407 : vector<1x32xf32>
    %419 = arith.addf %416, %418 : vector<1x32xf32>
    %420 = vector.extract_strided_slice %397 {offsets = [0, 64], sizes = [1, 32], strides = [1, 1]} : vector<1x96xf32> to vector<1x32xf32>
    %421 = math.tanh %413 : vector<1x32xf32>
    %422 = arith.mulf %420, %421 : vector<1x32xf32>
    %423 = vector.extract_strided_slice %403 {offsets = [0, 64], sizes = [1, 32], strides = [1, 1]} : vector<1x96xf32> to vector<1x32xf32>
    %424 = math.tanh %419 : vector<1x32xf32>
    %425 = arith.mulf %423, %424 : vector<1x32xf32>
    %c0_82 = arith.constant 0 : index
    %c7_83 = arith.constant 7 : index
    %c0_84 = arith.constant 0 : index
    %426 = vector.load %arg13[%c0_82, %c7_83, %c0_84] : memref<1x8x64xf32, #tpu.memory_space<vmem>>, vector<1x1x32xf32>
    %427 = vector.shape_cast %426 : vector<1x1x32xf32> to vector<1x32xf32>
    %428 = vector.shape_cast %422 : vector<1x32xf32> to vector<1x1x32xf32>
    tpu.vector_store %arg13[%c0_82, %c7_83, %c0_84], %428 {strides = array<i32>} : memref<1x8x64xf32, #tpu.memory_space<vmem>>, vector<1x1x32xf32>,
    %c0_85 = arith.constant 0 : index
    %c0_86 = arith.constant 0 : index
    %c32_87 = arith.constant 32 : index
    %429 = vector.load %arg13[%c0_85, %c0_86, %c32_87] : memref<1x8x64xf32, #tpu.memory_space<vmem>>, vector<1x1x32xf32>
    %430 = vector.shape_cast %429 : vector<1x1x32xf32> to vector<1x32xf32>
    %431 = vector.shape_cast %425 : vector<1x32xf32> to vector<1x1x32xf32>
    tpu.vector_store %arg13[%c0_85, %c0_86, %c32_87], %431 {strides = array<i32>} : memref<1x8x64xf32, #tpu.memory_space<vmem>>, vector<1x1x32xf32>,
    %c0_88 = arith.constant 0 : index
    %c0_89 = arith.constant 0 : index
    %c0_90 = arith.constant 0 : index
    %432 = vector.load %arg13[%c0_88, %c0_89, %c0_90] : memref<1x8x64xf32, #tpu.memory_space<vmem>>, vector<1x8x64xf32>
    %433 = arith.truncf %432 : vector<1x8x64xf32> to vector<1x8x64xbf16>
    %434 = vector.shape_cast %433 : vector<1x8x64xbf16> to vector<8x64xbf16>
    %c0_91 = arith.constant 0 : index
    %c0_92 = arith.constant 0 : index
    %435 = vector.load %arg5[%c0_91, %c0_92] : memref<64x256xbf16, #tpu.memory_space<vmem>>, vector<64x256xbf16>
    %cst_93 = arith.constant dense<0.000000e+00> : vector<8x256xf32>
    %436 = tpu.matmul %434, %435, %cst_93 {dimension_numbers = #tpu.dot_dimension_numbers<[1], [0], [0], [1], [0, 0, 1, 1], [], []>} : vector<8x64xbf16>, vector<64x256xbf16>, vector<8x256xf32> -> vector<8x256xf32>
    %c0_94 = arith.constant 0 : index
    %c0_95 = arith.constant 0 : index
    %437 = vector.load %arg7[%c0_94, %c0_95] : memref<1x256xf32, #tpu.memory_space<vmem>>, vector<1x256xf32>
    %438 = vector.broadcast %437 : vector<1x256xf32> to vector<8x256xf32>
    %439 = arith.addf %436, %438 : vector<8x256xf32>
    %440 = vector.shape_cast %439 : vector<8x256xf32> to vector<1x8x256xf32>
    %cst_96 = arith.constant 0.000000e+00 : f32
    %441 = vector.broadcast %cst_96 : f32 to vector<1x64xf32>
    %cst_97 = arith.constant 0.000000e+00 : f32
    %442 = vector.broadcast %cst_97 : f32 to vector<1x64xf32>
    %443 = arith.truncf %441 : vector<1x64xf32> to vector<1x64xbf16>
    %c0_98 = arith.constant 0 : index
    %c0_99 = arith.constant 0 : index
    %444 = vector.load %arg6[%c0_98, %c0_99] : memref<64x256xbf16, #tpu.memory_space<vmem>>, vector<64x256xbf16>
    %cst_100 = arith.constant dense<0.000000e+00> : vector<1x256xf32>
    %445 = tpu.matmul %443, %444, %cst_100 {dimension_numbers = #tpu.dot_dimension_numbers<[1], [0], [0], [1], [0, 0, 1, 1], [], []>} : vector<1x64xbf16>, vector<64x256xbf16>, vector<1x256xf32> -> vector<1x256xf32>
    %446 = vector.extract_strided_slice %440 {offsets = [0, 0, 0], sizes = [1, 1, 128], strides = [1, 1, 1]} : vector<1x8x256xf32> to vector<1x1x128xf32>
    %447 = vector.shape_cast %446 : vector<1x1x128xf32> to vector<1x128xf32>
    %448 = vector.extract_strided_slice %445 {offsets = [0, 0], sizes = [1, 128], strides = [1, 1]} : vector<1x256xf32> to vector<1x128xf32>
    %449 = arith.addf %447, %448 : vector<1x128xf32>
    %450 = vector.extract_strided_slice %440 {offsets = [0, 7, 128], sizes = [1, 1, 128], strides = [1, 1, 1]} : vector<1x8x256xf32> to vector<1x1x128xf32>
    %451 = vector.shape_cast %450 : vector<1x1x128xf32> to vector<1x128xf32>
    %452 = vector.extract_strided_slice %445 {offsets = [0, 128], sizes = [1, 128], strides = [1, 1]} : vector<1x256xf32> to vector<1x128xf32>
    %453 = arith.addf %451, %452 : vector<1x128xf32>
    %454 = vector.extract_strided_slice %449 {offsets = [0, 0], sizes = [1, 96], strides = [1, 1]} : vector<1x128xf32> to vector<1x96xf32>
    %455 = arith.negf %454 : vector<1x96xf32>
    %456 = math.exp %455 : vector<1x96xf32>
    %cst_101 = arith.constant 1.000000e+00 : f32
    %457 = vector.broadcast %cst_101 : f32 to vector<1x96xf32>
    %458 = arith.addf %457, %456 : vector<1x96xf32>
    %459 = arith.divf %457, %458 : vector<1x96xf32>
    %460 = vector.extract_strided_slice %453 {offsets = [0, 0], sizes = [1, 96], strides = [1, 1]} : vector<1x128xf32> to vector<1x96xf32>
    %461 = arith.negf %460 : vector<1x96xf32>
    %462 = math.exp %461 : vector<1x96xf32>
    %cst_102 = arith.constant 1.000000e+00 : f32
    %463 = vector.broadcast %cst_102 : f32 to vector<1x96xf32>
    %464 = arith.addf %463, %462 : vector<1x96xf32>
    %465 = arith.divf %463, %464 : vector<1x96xf32>
    %466 = vector.extract_strided_slice %449 {offsets = [0, 96], sizes = [1, 32], strides = [1, 1]} : vector<1x128xf32> to vector<1x32xf32>
    %467 = math.tanh %466 : vector<1x32xf32>
    %468 = vector.extract_strided_slice %453 {offsets = [0, 96], sizes = [1, 32], strides = [1, 1]} : vector<1x128xf32> to vector<1x32xf32>
    %469 = math.tanh %468 : vector<1x32xf32>
    %470 = vector.extract_strided_slice %459 {offsets = [0, 0], sizes = [1, 32], strides = [1, 1]} : vector<1x96xf32> to vector<1x32xf32>
    %471 = vector.extract_strided_slice %442 {offsets = [0, 0], sizes = [1, 32], strides = [1, 1]} : vector<1x64xf32> to vector<1x32xf32>
    %472 = arith.mulf %470, %471 : vector<1x32xf32>
    %473 = vector.extract_strided_slice %459 {offsets = [0, 32], sizes = [1, 32], strides = [1, 1]} : vector<1x96xf32> to vector<1x32xf32>
    %474 = arith.mulf %473, %467 : vector<1x32xf32>
    %475 = arith.addf %472, %474 : vector<1x32xf32>
    %476 = vector.extract_strided_slice %465 {offsets = [0, 0], sizes = [1, 32], strides = [1, 1]} : vector<1x96xf32> to vector<1x32xf32>
    %477 = vector.extract_strided_slice %442 {offsets = [0, 32], sizes = [1, 32], strides = [1, 1]} : vector<1x64xf32> to vector<1x32xf32>
    %478 = arith.mulf %476, %477 : vector<1x32xf32>
    %479 = vector.extract_strided_slice %465 {offsets = [0, 32], sizes = [1, 32], strides = [1, 1]} : vector<1x96xf32> to vector<1x32xf32>
    %480 = arith.mulf %479, %469 : vector<1x32xf32>
    %481 = arith.addf %478, %480 : vector<1x32xf32>
    %482 = vector.extract_strided_slice %459 {offsets = [0, 64], sizes = [1, 32], strides = [1, 1]} : vector<1x96xf32> to vector<1x32xf32>
    %483 = math.tanh %475 : vector<1x32xf32>
    %484 = arith.mulf %482, %483 : vector<1x32xf32>
    %485 = vector.extract_strided_slice %465 {offsets = [0, 64], sizes = [1, 32], strides = [1, 1]} : vector<1x96xf32> to vector<1x32xf32>
    %486 = math.tanh %481 : vector<1x32xf32>
    %487 = arith.mulf %485, %486 : vector<1x32xf32>
    %488 = tpu.concatenate %484, %487 in 1 : vector<1x32xf32>, vector<1x32xf32> -> vector<1x64xf32>
    %489 = tpu.concatenate %475, %481 in 1 : vector<1x32xf32>, vector<1x32xf32> -> vector<1x64xf32>
    %c0_103 = arith.constant 0 : index
    %c0_104 = arith.constant 0 : index
    %c0_105 = arith.constant 0 : index
    %490 = vector.load %arg13[%c0_103, %c0_104, %c0_105] : memref<1x8x64xf32, #tpu.memory_space<vmem>>, vector<1x1x32xf32>
    %491 = vector.shape_cast %490 : vector<1x1x32xf32> to vector<1x32xf32>
    %492 = vector.shape_cast %484 : vector<1x32xf32> to vector<1x1x32xf32>
    tpu.vector_store %arg13[%c0_103, %c0_104, %c0_105], %492 {strides = array<i32>} : memref<1x8x64xf32, #tpu.memory_space<vmem>>, vector<1x1x32xf32>,
    %c0_106 = arith.constant 0 : index
    %c7_107 = arith.constant 7 : index
    %c32_108 = arith.constant 32 : index
    %493 = vector.load %arg13[%c0_106, %c7_107, %c32_108] : memref<1x8x64xf32, #tpu.memory_space<vmem>>, vector<1x1x32xf32>
    %494 = vector.shape_cast %493 : vector<1x1x32xf32> to vector<1x32xf32>
    %495 = vector.shape_cast %487 : vector<1x32xf32> to vector<1x1x32xf32>
    tpu.vector_store %arg13[%c0_106, %c7_107, %c32_108], %495 {strides = array<i32>} : memref<1x8x64xf32, #tpu.memory_space<vmem>>, vector<1x1x32xf32>,
    %496 = arith.truncf %488 : vector<1x64xf32> to vector<1x64xbf16>
    %c0_109 = arith.constant 0 : index
    %c0_110 = arith.constant 0 : index
    %497 = vector.load %arg6[%c0_109, %c0_110] : memref<64x256xbf16, #tpu.memory_space<vmem>>, vector<64x256xbf16>
    %cst_111 = arith.constant dense<0.000000e+00> : vector<1x256xf32>
    %498 = tpu.matmul %496, %497, %cst_111 {dimension_numbers = #tpu.dot_dimension_numbers<[1], [0], [0], [1], [0, 0, 1, 1], [], []>} : vector<1x64xbf16>, vector<64x256xbf16>, vector<1x256xf32> -> vector<1x256xf32>
    %499 = vector.extract_strided_slice %440 {offsets = [0, 1, 0], sizes = [1, 1, 128], strides = [1, 1, 1]} : vector<1x8x256xf32> to vector<1x1x128xf32>
    %500 = vector.shape_cast %499 : vector<1x1x128xf32> to vector<1x128xf32>
    %501 = vector.extract_strided_slice %498 {offsets = [0, 0], sizes = [1, 128], strides = [1, 1]} : vector<1x256xf32> to vector<1x128xf32>
    %502 = arith.addf %500, %501 : vector<1x128xf32>
    %503 = vector.extract_strided_slice %440 {offsets = [0, 6, 128], sizes = [1, 1, 128], strides = [1, 1, 1]} : vector<1x8x256xf32> to vector<1x1x128xf32>
    %504 = vector.shape_cast %503 : vector<1x1x128xf32> to vector<1x128xf32>
    %505 = vector.extract_strided_slice %498 {offsets = [0, 128], sizes = [1, 128], strides = [1, 1]} : vector<1x256xf32> to vector<1x128xf32>
    %506 = arith.addf %504, %505 : vector<1x128xf32>
    %507 = vector.extract_strided_slice %502 {offsets = [0, 0], sizes = [1, 96], strides = [1, 1]} : vector<1x128xf32> to vector<1x96xf32>
    %508 = arith.negf %507 : vector<1x96xf32>
    %509 = math.exp %508 : vector<1x96xf32>
    %cst_112 = arith.constant 1.000000e+00 : f32
    %510 = vector.broadcast %cst_112 : f32 to vector<1x96xf32>
    %511 = arith.addf %510, %509 : vector<1x96xf32>
    %512 = arith.divf %510, %511 : vector<1x96xf32>
    %513 = vector.extract_strided_slice %506 {offsets = [0, 0], sizes = [1, 96], strides = [1, 1]} : vector<1x128xf32> to vector<1x96xf32>
    %514 = arith.negf %513 : vector<1x96xf32>
    %515 = math.exp %514 : vector<1x96xf32>
    %cst_113 = arith.constant 1.000000e+00 : f32
    %516 = vector.broadcast %cst_113 : f32 to vector<1x96xf32>
    %517 = arith.addf %516, %515 : vector<1x96xf32>
    %518 = arith.divf %516, %517 : vector<1x96xf32>
    %519 = vector.extract_strided_slice %502 {offsets = [0, 96], sizes = [1, 32], strides = [1, 1]} : vector<1x128xf32> to vector<1x32xf32>
    %520 = math.tanh %519 : vector<1x32xf32>
    %521 = vector.extract_strided_slice %506 {offsets = [0, 96], sizes = [1, 32], strides = [1, 1]} : vector<1x128xf32> to vector<1x32xf32>
    %522 = math.tanh %521 : vector<1x32xf32>
    %523 = vector.extract_strided_slice %512 {offsets = [0, 0], sizes = [1, 32], strides = [1, 1]} : vector<1x96xf32> to vector<1x32xf32>
    %524 = vector.extract_strided_slice %489 {offsets = [0, 0], sizes = [1, 32], strides = [1, 1]} : vector<1x64xf32> to vector<1x32xf32>
    %525 = arith.mulf %523, %524 : vector<1x32xf32>
    %526 = vector.extract_strided_slice %512 {offsets = [0, 32], sizes = [1, 32], strides = [1, 1]} : vector<1x96xf32> to vector<1x32xf32>
    %527 = arith.mulf %526, %520 : vector<1x32xf32>
    %528 = arith.addf %525, %527 : vector<1x32xf32>
    %529 = vector.extract_strided_slice %518 {offsets = [0, 0], sizes = [1, 32], strides = [1, 1]} : vector<1x96xf32> to vector<1x32xf32>
    %530 = vector.extract_strided_slice %489 {offsets = [0, 32], sizes = [1, 32], strides = [1, 1]} : vector<1x64xf32> to vector<1x32xf32>
    %531 = arith.mulf %529, %530 : vector<1x32xf32>
    %532 = vector.extract_strided_slice %518 {offsets = [0, 32], sizes = [1, 32], strides = [1, 1]} : vector<1x96xf32> to vector<1x32xf32>
    %533 = arith.mulf %532, %522 : vector<1x32xf32>
    %534 = arith.addf %531, %533 : vector<1x32xf32>
    %535 = vector.extract_strided_slice %512 {offsets = [0, 64], sizes = [1, 32], strides = [1, 1]} : vector<1x96xf32> to vector<1x32xf32>
    %536 = math.tanh %528 : vector<1x32xf32>
    %537 = arith.mulf %535, %536 : vector<1x32xf32>
    %538 = vector.extract_strided_slice %518 {offsets = [0, 64], sizes = [1, 32], strides = [1, 1]} : vector<1x96xf32> to vector<1x32xf32>
    %539 = math.tanh %534 : vector<1x32xf32>
    %540 = arith.mulf %538, %539 : vector<1x32xf32>
    %541 = tpu.concatenate %537, %540 in 1 : vector<1x32xf32>, vector<1x32xf32> -> vector<1x64xf32>
    %542 = tpu.concatenate %528, %534 in 1 : vector<1x32xf32>, vector<1x32xf32> -> vector<1x64xf32>
    %c0_114 = arith.constant 0 : index
    %c1_115 = arith.constant 1 : index
    %c0_116 = arith.constant 0 : index
    %543 = vector.load %arg13[%c0_114, %c1_115, %c0_116] : memref<1x8x64xf32, #tpu.memory_space<vmem>>, vector<1x1x32xf32>
    %544 = vector.shape_cast %543 : vector<1x1x32xf32> to vector<1x32xf32>
    %545 = vector.shape_cast %537 : vector<1x32xf32> to vector<1x1x32xf32>
    tpu.vector_store %arg13[%c0_114, %c1_115, %c0_116], %545 {strides = array<i32>} : memref<1x8x64xf32, #tpu.memory_space<vmem>>, vector<1x1x32xf32>,
    %c0_117 = arith.constant 0 : index
    %c6_118 = arith.constant 6 : index
    %c32_119 = arith.constant 32 : index
    %546 = vector.load %arg13[%c0_117, %c6_118, %c32_119] : memref<1x8x64xf32, #tpu.memory_space<vmem>>, vector<1x1x32xf32>
    %547 = vector.shape_cast %546 : vector<1x1x32xf32> to vector<1x32xf32>
    %548 = vector.shape_cast %540 : vector<1x32xf32> to vector<1x1x32xf32>
    tpu.vector_store %arg13[%c0_117, %c6_118, %c32_119], %548 {strides = array<i32>} : memref<1x8x64xf32, #tpu.memory_space<vmem>>, vector<1x1x32xf32>,
    %549 = arith.truncf %541 : vector<1x64xf32> to vector<1x64xbf16>
    %c0_120 = arith.constant 0 : index
    %c0_121 = arith.constant 0 : index
    %550 = vector.load %arg6[%c0_120, %c0_121] : memref<64x256xbf16, #tpu.memory_space<vmem>>, vector<64x256xbf16>
    %cst_122 = arith.constant dense<0.000000e+00> : vector<1x256xf32>
    %551 = tpu.matmul %549, %550, %cst_122 {dimension_numbers = #tpu.dot_dimension_numbers<[1], [0], [0], [1], [0, 0, 1, 1], [], []>} : vector<1x64xbf16>, vector<64x256xbf16>, vector<1x256xf32> -> vector<1x256xf32>
    %552 = vector.extract_strided_slice %440 {offsets = [0, 2, 0], sizes = [1, 1, 128], strides = [1, 1, 1]} : vector<1x8x256xf32> to vector<1x1x128xf32>
    %553 = vector.shape_cast %552 : vector<1x1x128xf32> to vector<1x128xf32>
    %554 = vector.extract_strided_slice %551 {offsets = [0, 0], sizes = [1, 128], strides = [1, 1]} : vector<1x256xf32> to vector<1x128xf32>
    %555 = arith.addf %553, %554 : vector<1x128xf32>
    %556 = vector.extract_strided_slice %440 {offsets = [0, 5, 128], sizes = [1, 1, 128], strides = [1, 1, 1]} : vector<1x8x256xf32> to vector<1x1x128xf32>
    %557 = vector.shape_cast %556 : vector<1x1x128xf32> to vector<1x128xf32>
    %558 = vector.extract_strided_slice %551 {offsets = [0, 128], sizes = [1, 128], strides = [1, 1]} : vector<1x256xf32> to vector<1x128xf32>
    %559 = arith.addf %557, %558 : vector<1x128xf32>
    %560 = vector.extract_strided_slice %555 {offsets = [0, 0], sizes = [1, 96], strides = [1, 1]} : vector<1x128xf32> to vector<1x96xf32>
    %561 = arith.negf %560 : vector<1x96xf32>
    %562 = math.exp %561 : vector<1x96xf32>
    %cst_123 = arith.constant 1.000000e+00 : f32
    %563 = vector.broadcast %cst_123 : f32 to vector<1x96xf32>
    %564 = arith.addf %563, %562 : vector<1x96xf32>
    %565 = arith.divf %563, %564 : vector<1x96xf32>
    %566 = vector.extract_strided_slice %559 {offsets = [0, 0], sizes = [1, 96], strides = [1, 1]} : vector<1x128xf32> to vector<1x96xf32>
    %567 = arith.negf %566 : vector<1x96xf32>
    %568 = math.exp %567 : vector<1x96xf32>
    %cst_124 = arith.constant 1.000000e+00 : f32
    %569 = vector.broadcast %cst_124 : f32 to vector<1x96xf32>
    %570 = arith.addf %569, %568 : vector<1x96xf32>
    %571 = arith.divf %569, %570 : vector<1x96xf32>
    %572 = vector.extract_strided_slice %555 {offsets = [0, 96], sizes = [1, 32], strides = [1, 1]} : vector<1x128xf32> to vector<1x32xf32>
    %573 = math.tanh %572 : vector<1x32xf32>
    %574 = vector.extract_strided_slice %559 {offsets = [0, 96], sizes = [1, 32], strides = [1, 1]} : vector<1x128xf32> to vector<1x32xf32>
    %575 = math.tanh %574 : vector<1x32xf32>
    %576 = vector.extract_strided_slice %565 {offsets = [0, 0], sizes = [1, 32], strides = [1, 1]} : vector<1x96xf32> to vector<1x32xf32>
    %577 = vector.extract_strided_slice %542 {offsets = [0, 0], sizes = [1, 32], strides = [1, 1]} : vector<1x64xf32> to vector<1x32xf32>
    %578 = arith.mulf %576, %577 : vector<1x32xf32>
    %579 = vector.extract_strided_slice %565 {offsets = [0, 32], sizes = [1, 32], strides = [1, 1]} : vector<1x96xf32> to vector<1x32xf32>
    %580 = arith.mulf %579, %573 : vector<1x32xf32>
    %581 = arith.addf %578, %580 : vector<1x32xf32>
    %582 = vector.extract_strided_slice %571 {offsets = [0, 0], sizes = [1, 32], strides = [1, 1]} : vector<1x96xf32> to vector<1x32xf32>
    %583 = vector.extract_strided_slice %542 {offsets = [0, 32], sizes = [1, 32], strides = [1, 1]} : vector<1x64xf32> to vector<1x32xf32>
    %584 = arith.mulf %582, %583 : vector<1x32xf32>
    %585 = vector.extract_strided_slice %571 {offsets = [0, 32], sizes = [1, 32], strides = [1, 1]} : vector<1x96xf32> to vector<1x32xf32>
    %586 = arith.mulf %585, %575 : vector<1x32xf32>
    %587 = arith.addf %584, %586 : vector<1x32xf32>
    %588 = vector.extract_strided_slice %565 {offsets = [0, 64], sizes = [1, 32], strides = [1, 1]} : vector<1x96xf32> to vector<1x32xf32>
    %589 = math.tanh %581 : vector<1x32xf32>
    %590 = arith.mulf %588, %589 : vector<1x32xf32>
    %591 = vector.extract_strided_slice %571 {offsets = [0, 64], sizes = [1, 32], strides = [1, 1]} : vector<1x96xf32> to vector<1x32xf32>
    %592 = math.tanh %587 : vector<1x32xf32>
    %593 = arith.mulf %591, %592 : vector<1x32xf32>
    %594 = tpu.concatenate %590, %593 in 1 : vector<1x32xf32>, vector<1x32xf32> -> vector<1x64xf32>
    %595 = tpu.concatenate %581, %587 in 1 : vector<1x32xf32>, vector<1x32xf32> -> vector<1x64xf32>
    %c0_125 = arith.constant 0 : index
    %c2_126 = arith.constant 2 : index
    %c0_127 = arith.constant 0 : index
    %596 = vector.load %arg13[%c0_125, %c2_126, %c0_127] : memref<1x8x64xf32, #tpu.memory_space<vmem>>, vector<1x1x32xf32>
    %597 = vector.shape_cast %596 : vector<1x1x32xf32> to vector<1x32xf32>
    %598 = vector.shape_cast %590 : vector<1x32xf32> to vector<1x1x32xf32>
    tpu.vector_store %arg13[%c0_125, %c2_126, %c0_127], %598 {strides = array<i32>} : memref<1x8x64xf32, #tpu.memory_space<vmem>>, vector<1x1x32xf32>,
    %c0_128 = arith.constant 0 : index
    %c5_129 = arith.constant 5 : index
    %c32_130 = arith.constant 32 : index
    %599 = vector.load %arg13[%c0_128, %c5_129, %c32_130] : memref<1x8x64xf32, #tpu.memory_space<vmem>>, vector<1x1x32xf32>
    %600 = vector.shape_cast %599 : vector<1x1x32xf32> to vector<1x32xf32>
    %601 = vector.shape_cast %593 : vector<1x32xf32> to vector<1x1x32xf32>
    tpu.vector_store %arg13[%c0_128, %c5_129, %c32_130], %601 {strides = array<i32>} : memref<1x8x64xf32, #tpu.memory_space<vmem>>, vector<1x1x32xf32>,
    %602 = arith.truncf %594 : vector<1x64xf32> to vector<1x64xbf16>
    %c0_131 = arith.constant 0 : index
    %c0_132 = arith.constant 0 : index
    %603 = vector.load %arg6[%c0_131, %c0_132] : memref<64x256xbf16, #tpu.memory_space<vmem>>, vector<64x256xbf16>
    %cst_133 = arith.constant dense<0.000000e+00> : vector<1x256xf32>
    %604 = tpu.matmul %602, %603, %cst_133 {dimension_numbers = #tpu.dot_dimension_numbers<[1], [0], [0], [1], [0, 0, 1, 1], [], []>} : vector<1x64xbf16>, vector<64x256xbf16>, vector<1x256xf32> -> vector<1x256xf32>
    %605 = vector.extract_strided_slice %440 {offsets = [0, 3, 0], sizes = [1, 1, 128], strides = [1, 1, 1]} : vector<1x8x256xf32> to vector<1x1x128xf32>
    %606 = vector.shape_cast %605 : vector<1x1x128xf32> to vector<1x128xf32>
    %607 = vector.extract_strided_slice %604 {offsets = [0, 0], sizes = [1, 128], strides = [1, 1]} : vector<1x256xf32> to vector<1x128xf32>
    %608 = arith.addf %606, %607 : vector<1x128xf32>
    %609 = vector.extract_strided_slice %440 {offsets = [0, 4, 128], sizes = [1, 1, 128], strides = [1, 1, 1]} : vector<1x8x256xf32> to vector<1x1x128xf32>
    %610 = vector.shape_cast %609 : vector<1x1x128xf32> to vector<1x128xf32>
    %611 = vector.extract_strided_slice %604 {offsets = [0, 128], sizes = [1, 128], strides = [1, 1]} : vector<1x256xf32> to vector<1x128xf32>
    %612 = arith.addf %610, %611 : vector<1x128xf32>
    %613 = vector.extract_strided_slice %608 {offsets = [0, 0], sizes = [1, 96], strides = [1, 1]} : vector<1x128xf32> to vector<1x96xf32>
    %614 = arith.negf %613 : vector<1x96xf32>
    %615 = math.exp %614 : vector<1x96xf32>
    %cst_134 = arith.constant 1.000000e+00 : f32
    %616 = vector.broadcast %cst_134 : f32 to vector<1x96xf32>
    %617 = arith.addf %616, %615 : vector<1x96xf32>
    %618 = arith.divf %616, %617 : vector<1x96xf32>
    %619 = vector.extract_strided_slice %612 {offsets = [0, 0], sizes = [1, 96], strides = [1, 1]} : vector<1x128xf32> to vector<1x96xf32>
    %620 = arith.negf %619 : vector<1x96xf32>
    %621 = math.exp %620 : vector<1x96xf32>
    %cst_135 = arith.constant 1.000000e+00 : f32
    %622 = vector.broadcast %cst_135 : f32 to vector<1x96xf32>
    %623 = arith.addf %622, %621 : vector<1x96xf32>
    %624 = arith.divf %622, %623 : vector<1x96xf32>
    %625 = vector.extract_strided_slice %608 {offsets = [0, 96], sizes = [1, 32], strides = [1, 1]} : vector<1x128xf32> to vector<1x32xf32>
    %626 = math.tanh %625 : vector<1x32xf32>
    %627 = vector.extract_strided_slice %612 {offsets = [0, 96], sizes = [1, 32], strides = [1, 1]} : vector<1x128xf32> to vector<1x32xf32>
    %628 = math.tanh %627 : vector<1x32xf32>
    %629 = vector.extract_strided_slice %618 {offsets = [0, 0], sizes = [1, 32], strides = [1, 1]} : vector<1x96xf32> to vector<1x32xf32>
    %630 = vector.extract_strided_slice %595 {offsets = [0, 0], sizes = [1, 32], strides = [1, 1]} : vector<1x64xf32> to vector<1x32xf32>
    %631 = arith.mulf %629, %630 : vector<1x32xf32>
    %632 = vector.extract_strided_slice %618 {offsets = [0, 32], sizes = [1, 32], strides = [1, 1]} : vector<1x96xf32> to vector<1x32xf32>
    %633 = arith.mulf %632, %626 : vector<1x32xf32>
    %634 = arith.addf %631, %633 : vector<1x32xf32>
    %635 = vector.extract_strided_slice %624 {offsets = [0, 0], sizes = [1, 32], strides = [1, 1]} : vector<1x96xf32> to vector<1x32xf32>
    %636 = vector.extract_strided_slice %595 {offsets = [0, 32], sizes = [1, 32], strides = [1, 1]} : vector<1x64xf32> to vector<1x32xf32>
    %637 = arith.mulf %635, %636 : vector<1x32xf32>
    %638 = vector.extract_strided_slice %624 {offsets = [0, 32], sizes = [1, 32], strides = [1, 1]} : vector<1x96xf32> to vector<1x32xf32>
    %639 = arith.mulf %638, %628 : vector<1x32xf32>
    %640 = arith.addf %637, %639 : vector<1x32xf32>
    %641 = vector.extract_strided_slice %618 {offsets = [0, 64], sizes = [1, 32], strides = [1, 1]} : vector<1x96xf32> to vector<1x32xf32>
    %642 = math.tanh %634 : vector<1x32xf32>
    %643 = arith.mulf %641, %642 : vector<1x32xf32>
    %644 = vector.extract_strided_slice %624 {offsets = [0, 64], sizes = [1, 32], strides = [1, 1]} : vector<1x96xf32> to vector<1x32xf32>
    %645 = math.tanh %640 : vector<1x32xf32>
    %646 = arith.mulf %644, %645 : vector<1x32xf32>
    %647 = tpu.concatenate %643, %646 in 1 : vector<1x32xf32>, vector<1x32xf32> -> vector<1x64xf32>
    %648 = tpu.concatenate %634, %640 in 1 : vector<1x32xf32>, vector<1x32xf32> -> vector<1x64xf32>
    %c0_136 = arith.constant 0 : index
    %c3_137 = arith.constant 3 : index
    %c0_138 = arith.constant 0 : index
    %649 = vector.load %arg13[%c0_136, %c3_137, %c0_138] : memref<1x8x64xf32, #tpu.memory_space<vmem>>, vector<1x1x32xf32>
    %650 = vector.shape_cast %649 : vector<1x1x32xf32> to vector<1x32xf32>
    %651 = vector.shape_cast %643 : vector<1x32xf32> to vector<1x1x32xf32>
    tpu.vector_store %arg13[%c0_136, %c3_137, %c0_138], %651 {strides = array<i32>} : memref<1x8x64xf32, #tpu.memory_space<vmem>>, vector<1x1x32xf32>,
    %c0_139 = arith.constant 0 : index
    %c4_140 = arith.constant 4 : index
    %c32_141 = arith.constant 32 : index
    %652 = vector.load %arg13[%c0_139, %c4_140, %c32_141] : memref<1x8x64xf32, #tpu.memory_space<vmem>>, vector<1x1x32xf32>
    %653 = vector.shape_cast %652 : vector<1x1x32xf32> to vector<1x32xf32>
    %654 = vector.shape_cast %646 : vector<1x32xf32> to vector<1x1x32xf32>
    tpu.vector_store %arg13[%c0_139, %c4_140, %c32_141], %654 {strides = array<i32>} : memref<1x8x64xf32, #tpu.memory_space<vmem>>, vector<1x1x32xf32>,
    %655 = arith.truncf %647 : vector<1x64xf32> to vector<1x64xbf16>
    %c0_142 = arith.constant 0 : index
    %c0_143 = arith.constant 0 : index
    %656 = vector.load %arg6[%c0_142, %c0_143] : memref<64x256xbf16, #tpu.memory_space<vmem>>, vector<64x256xbf16>
    %cst_144 = arith.constant dense<0.000000e+00> : vector<1x256xf32>
    %657 = tpu.matmul %655, %656, %cst_144 {dimension_numbers = #tpu.dot_dimension_numbers<[1], [0], [0], [1], [0, 0, 1, 1], [], []>} : vector<1x64xbf16>, vector<64x256xbf16>, vector<1x256xf32> -> vector<1x256xf32>
    %658 = vector.extract_strided_slice %440 {offsets = [0, 4, 0], sizes = [1, 1, 128], strides = [1, 1, 1]} : vector<1x8x256xf32> to vector<1x1x128xf32>
    %659 = vector.shape_cast %658 : vector<1x1x128xf32> to vector<1x128xf32>
    %660 = vector.extract_strided_slice %657 {offsets = [0, 0], sizes = [1, 128], strides = [1, 1]} : vector<1x256xf32> to vector<1x128xf32>
    %661 = arith.addf %659, %660 : vector<1x128xf32>
    %662 = vector.extract_strided_slice %440 {offsets = [0, 3, 128], sizes = [1, 1, 128], strides = [1, 1, 1]} : vector<1x8x256xf32> to vector<1x1x128xf32>
    %663 = vector.shape_cast %662 : vector<1x1x128xf32> to vector<1x128xf32>
    %664 = vector.extract_strided_slice %657 {offsets = [0, 128], sizes = [1, 128], strides = [1, 1]} : vector<1x256xf32> to vector<1x128xf32>
    %665 = arith.addf %663, %664 : vector<1x128xf32>
    %666 = vector.extract_strided_slice %661 {offsets = [0, 0], sizes = [1, 96], strides = [1, 1]} : vector<1x128xf32> to vector<1x96xf32>
    %667 = arith.negf %666 : vector<1x96xf32>
    %668 = math.exp %667 : vector<1x96xf32>
    %cst_145 = arith.constant 1.000000e+00 : f32
    %669 = vector.broadcast %cst_145 : f32 to vector<1x96xf32>
    %670 = arith.addf %669, %668 : vector<1x96xf32>
    %671 = arith.divf %669, %670 : vector<1x96xf32>
    %672 = vector.extract_strided_slice %665 {offsets = [0, 0], sizes = [1, 96], strides = [1, 1]} : vector<1x128xf32> to vector<1x96xf32>
    %673 = arith.negf %672 : vector<1x96xf32>
    %674 = math.exp %673 : vector<1x96xf32>
    %cst_146 = arith.constant 1.000000e+00 : f32
    %675 = vector.broadcast %cst_146 : f32 to vector<1x96xf32>
    %676 = arith.addf %675, %674 : vector<1x96xf32>
    %677 = arith.divf %675, %676 : vector<1x96xf32>
    %678 = vector.extract_strided_slice %661 {offsets = [0, 96], sizes = [1, 32], strides = [1, 1]} : vector<1x128xf32> to vector<1x32xf32>
    %679 = math.tanh %678 : vector<1x32xf32>
    %680 = vector.extract_strided_slice %665 {offsets = [0, 96], sizes = [1, 32], strides = [1, 1]} : vector<1x128xf32> to vector<1x32xf32>
    %681 = math.tanh %680 : vector<1x32xf32>
    %682 = vector.extract_strided_slice %671 {offsets = [0, 0], sizes = [1, 32], strides = [1, 1]} : vector<1x96xf32> to vector<1x32xf32>
    %683 = vector.extract_strided_slice %648 {offsets = [0, 0], sizes = [1, 32], strides = [1, 1]} : vector<1x64xf32> to vector<1x32xf32>
    %684 = arith.mulf %682, %683 : vector<1x32xf32>
    %685 = vector.extract_strided_slice %671 {offsets = [0, 32], sizes = [1, 32], strides = [1, 1]} : vector<1x96xf32> to vector<1x32xf32>
    %686 = arith.mulf %685, %679 : vector<1x32xf32>
    %687 = arith.addf %684, %686 : vector<1x32xf32>
    %688 = vector.extract_strided_slice %677 {offsets = [0, 0], sizes = [1, 32], strides = [1, 1]} : vector<1x96xf32> to vector<1x32xf32>
    %689 = vector.extract_strided_slice %648 {offsets = [0, 32], sizes = [1, 32], strides = [1, 1]} : vector<1x64xf32> to vector<1x32xf32>
    %690 = arith.mulf %688, %689 : vector<1x32xf32>
    %691 = vector.extract_strided_slice %677 {offsets = [0, 32], sizes = [1, 32], strides = [1, 1]} : vector<1x96xf32> to vector<1x32xf32>
    %692 = arith.mulf %691, %681 : vector<1x32xf32>
    %693 = arith.addf %690, %692 : vector<1x32xf32>
    %694 = vector.extract_strided_slice %671 {offsets = [0, 64], sizes = [1, 32], strides = [1, 1]} : vector<1x96xf32> to vector<1x32xf32>
    %695 = math.tanh %687 : vector<1x32xf32>
    %696 = arith.mulf %694, %695 : vector<1x32xf32>
    %697 = vector.extract_strided_slice %677 {offsets = [0, 64], sizes = [1, 32], strides = [1, 1]} : vector<1x96xf32> to vector<1x32xf32>
    %698 = math.tanh %693 : vector<1x32xf32>
    %699 = arith.mulf %697, %698 : vector<1x32xf32>
    %700 = tpu.concatenate %696, %699 in 1 : vector<1x32xf32>, vector<1x32xf32> -> vector<1x64xf32>
    %701 = tpu.concatenate %687, %693 in 1 : vector<1x32xf32>, vector<1x32xf32> -> vector<1x64xf32>
    %c0_147 = arith.constant 0 : index
    %c4_148 = arith.constant 4 : index
    %c0_149 = arith.constant 0 : index
    %702 = vector.load %arg13[%c0_147, %c4_148, %c0_149] : memref<1x8x64xf32, #tpu.memory_space<vmem>>, vector<1x1x32xf32>
    %703 = vector.shape_cast %702 : vector<1x1x32xf32> to vector<1x32xf32>
    %704 = vector.shape_cast %696 : vector<1x32xf32> to vector<1x1x32xf32>
    tpu.vector_store %arg13[%c0_147, %c4_148, %c0_149], %704 {strides = array<i32>} : memref<1x8x64xf32, #tpu.memory_space<vmem>>, vector<1x1x32xf32>,
    %c0_150 = arith.constant 0 : index
    %c3_151 = arith.constant 3 : index
    %c32_152 = arith.constant 32 : index
    %705 = vector.load %arg13[%c0_150, %c3_151, %c32_152] : memref<1x8x64xf32, #tpu.memory_space<vmem>>, vector<1x1x32xf32>
    %706 = vector.shape_cast %705 : vector<1x1x32xf32> to vector<1x32xf32>
    %707 = vector.shape_cast %699 : vector<1x32xf32> to vector<1x1x32xf32>
    tpu.vector_store %arg13[%c0_150, %c3_151, %c32_152], %707 {strides = array<i32>} : memref<1x8x64xf32, #tpu.memory_space<vmem>>, vector<1x1x32xf32>,
    %708 = arith.truncf %700 : vector<1x64xf32> to vector<1x64xbf16>
    %c0_153 = arith.constant 0 : index
    %c0_154 = arith.constant 0 : index
    %709 = vector.load %arg6[%c0_153, %c0_154] : memref<64x256xbf16, #tpu.memory_space<vmem>>, vector<64x256xbf16>
    %cst_155 = arith.constant dense<0.000000e+00> : vector<1x256xf32>
    %710 = tpu.matmul %708, %709, %cst_155 {dimension_numbers = #tpu.dot_dimension_numbers<[1], [0], [0], [1], [0, 0, 1, 1], [], []>} : vector<1x64xbf16>, vector<64x256xbf16>, vector<1x256xf32> -> vector<1x256xf32>
    %711 = vector.extract_strided_slice %440 {offsets = [0, 5, 0], sizes = [1, 1, 128], strides = [1, 1, 1]} : vector<1x8x256xf32> to vector<1x1x128xf32>
    %712 = vector.shape_cast %711 : vector<1x1x128xf32> to vector<1x128xf32>
    %713 = vector.extract_strided_slice %710 {offsets = [0, 0], sizes = [1, 128], strides = [1, 1]} : vector<1x256xf32> to vector<1x128xf32>
    %714 = arith.addf %712, %713 : vector<1x128xf32>
    %715 = vector.extract_strided_slice %440 {offsets = [0, 2, 128], sizes = [1, 1, 128], strides = [1, 1, 1]} : vector<1x8x256xf32> to vector<1x1x128xf32>
    %716 = vector.shape_cast %715 : vector<1x1x128xf32> to vector<1x128xf32>
    %717 = vector.extract_strided_slice %710 {offsets = [0, 128], sizes = [1, 128], strides = [1, 1]} : vector<1x256xf32> to vector<1x128xf32>
    %718 = arith.addf %716, %717 : vector<1x128xf32>
    %719 = vector.extract_strided_slice %714 {offsets = [0, 0], sizes = [1, 96], strides = [1, 1]} : vector<1x128xf32> to vector<1x96xf32>
    %720 = arith.negf %719 : vector<1x96xf32>
    %721 = math.exp %720 : vector<1x96xf32>
    %cst_156 = arith.constant 1.000000e+00 : f32
    %722 = vector.broadcast %cst_156 : f32 to vector<1x96xf32>
    %723 = arith.addf %722, %721 : vector<1x96xf32>
    %724 = arith.divf %722, %723 : vector<1x96xf32>
    %725 = vector.extract_strided_slice %718 {offsets = [0, 0], sizes = [1, 96], strides = [1, 1]} : vector<1x128xf32> to vector<1x96xf32>
    %726 = arith.negf %725 : vector<1x96xf32>
    %727 = math.exp %726 : vector<1x96xf32>
    %cst_157 = arith.constant 1.000000e+00 : f32
    %728 = vector.broadcast %cst_157 : f32 to vector<1x96xf32>
    %729 = arith.addf %728, %727 : vector<1x96xf32>
    %730 = arith.divf %728, %729 : vector<1x96xf32>
    %731 = vector.extract_strided_slice %714 {offsets = [0, 96], sizes = [1, 32], strides = [1, 1]} : vector<1x128xf32> to vector<1x32xf32>
    %732 = math.tanh %731 : vector<1x32xf32>
    %733 = vector.extract_strided_slice %718 {offsets = [0, 96], sizes = [1, 32], strides = [1, 1]} : vector<1x128xf32> to vector<1x32xf32>
    %734 = math.tanh %733 : vector<1x32xf32>
    %735 = vector.extract_strided_slice %724 {offsets = [0, 0], sizes = [1, 32], strides = [1, 1]} : vector<1x96xf32> to vector<1x32xf32>
    %736 = vector.extract_strided_slice %701 {offsets = [0, 0], sizes = [1, 32], strides = [1, 1]} : vector<1x64xf32> to vector<1x32xf32>
    %737 = arith.mulf %735, %736 : vector<1x32xf32>
    %738 = vector.extract_strided_slice %724 {offsets = [0, 32], sizes = [1, 32], strides = [1, 1]} : vector<1x96xf32> to vector<1x32xf32>
    %739 = arith.mulf %738, %732 : vector<1x32xf32>
    %740 = arith.addf %737, %739 : vector<1x32xf32>
    %741 = vector.extract_strided_slice %730 {offsets = [0, 0], sizes = [1, 32], strides = [1, 1]} : vector<1x96xf32> to vector<1x32xf32>
    %742 = vector.extract_strided_slice %701 {offsets = [0, 32], sizes = [1, 32], strides = [1, 1]} : vector<1x64xf32> to vector<1x32xf32>
    %743 = arith.mulf %741, %742 : vector<1x32xf32>
    %744 = vector.extract_strided_slice %730 {offsets = [0, 32], sizes = [1, 32], strides = [1, 1]} : vector<1x96xf32> to vector<1x32xf32>
    %745 = arith.mulf %744, %734 : vector<1x32xf32>
    %746 = arith.addf %743, %745 : vector<1x32xf32>
    %747 = vector.extract_strided_slice %724 {offsets = [0, 64], sizes = [1, 32], strides = [1, 1]} : vector<1x96xf32> to vector<1x32xf32>
    %748 = math.tanh %740 : vector<1x32xf32>
    %749 = arith.mulf %747, %748 : vector<1x32xf32>
    %750 = vector.extract_strided_slice %730 {offsets = [0, 64], sizes = [1, 32], strides = [1, 1]} : vector<1x96xf32> to vector<1x32xf32>
    %751 = math.tanh %746 : vector<1x32xf32>
    %752 = arith.mulf %750, %751 : vector<1x32xf32>
    %753 = tpu.concatenate %749, %752 in 1 : vector<1x32xf32>, vector<1x32xf32> -> vector<1x64xf32>
    %754 = tpu.concatenate %740, %746 in 1 : vector<1x32xf32>, vector<1x32xf32> -> vector<1x64xf32>
    %c0_158 = arith.constant 0 : index
    %c5_159 = arith.constant 5 : index
    %c0_160 = arith.constant 0 : index
    %755 = vector.load %arg13[%c0_158, %c5_159, %c0_160] : memref<1x8x64xf32, #tpu.memory_space<vmem>>, vector<1x1x32xf32>
    %756 = vector.shape_cast %755 : vector<1x1x32xf32> to vector<1x32xf32>
    %757 = vector.shape_cast %749 : vector<1x32xf32> to vector<1x1x32xf32>
    tpu.vector_store %arg13[%c0_158, %c5_159, %c0_160], %757 {strides = array<i32>} : memref<1x8x64xf32, #tpu.memory_space<vmem>>, vector<1x1x32xf32>,
    %c0_161 = arith.constant 0 : index
    %c2_162 = arith.constant 2 : index
    %c32_163 = arith.constant 32 : index
    %758 = vector.load %arg13[%c0_161, %c2_162, %c32_163] : memref<1x8x64xf32, #tpu.memory_space<vmem>>, vector<1x1x32xf32>
    %759 = vector.shape_cast %758 : vector<1x1x32xf32> to vector<1x32xf32>
    %760 = vector.shape_cast %752 : vector<1x32xf32> to vector<1x1x32xf32>
    tpu.vector_store %arg13[%c0_161, %c2_162, %c32_163], %760 {strides = array<i32>} : memref<1x8x64xf32, #tpu.memory_space<vmem>>, vector<1x1x32xf32>,
    %761 = arith.truncf %753 : vector<1x64xf32> to vector<1x64xbf16>
    %c0_164 = arith.constant 0 : index
    %c0_165 = arith.constant 0 : index
    %762 = vector.load %arg6[%c0_164, %c0_165] : memref<64x256xbf16, #tpu.memory_space<vmem>>, vector<64x256xbf16>
    %cst_166 = arith.constant dense<0.000000e+00> : vector<1x256xf32>
    %763 = tpu.matmul %761, %762, %cst_166 {dimension_numbers = #tpu.dot_dimension_numbers<[1], [0], [0], [1], [0, 0, 1, 1], [], []>} : vector<1x64xbf16>, vector<64x256xbf16>, vector<1x256xf32> -> vector<1x256xf32>
    %764 = vector.extract_strided_slice %440 {offsets = [0, 6, 0], sizes = [1, 1, 128], strides = [1, 1, 1]} : vector<1x8x256xf32> to vector<1x1x128xf32>
    %765 = vector.shape_cast %764 : vector<1x1x128xf32> to vector<1x128xf32>
    %766 = vector.extract_strided_slice %763 {offsets = [0, 0], sizes = [1, 128], strides = [1, 1]} : vector<1x256xf32> to vector<1x128xf32>
    %767 = arith.addf %765, %766 : vector<1x128xf32>
    %768 = vector.extract_strided_slice %440 {offsets = [0, 1, 128], sizes = [1, 1, 128], strides = [1, 1, 1]} : vector<1x8x256xf32> to vector<1x1x128xf32>
    %769 = vector.shape_cast %768 : vector<1x1x128xf32> to vector<1x128xf32>
    %770 = vector.extract_strided_slice %763 {offsets = [0, 128], sizes = [1, 128], strides = [1, 1]} : vector<1x256xf32> to vector<1x128xf32>
    %771 = arith.addf %769, %770 : vector<1x128xf32>
    %772 = vector.extract_strided_slice %767 {offsets = [0, 0], sizes = [1, 96], strides = [1, 1]} : vector<1x128xf32> to vector<1x96xf32>
    %773 = arith.negf %772 : vector<1x96xf32>
    %774 = math.exp %773 : vector<1x96xf32>
    %cst_167 = arith.constant 1.000000e+00 : f32
    %775 = vector.broadcast %cst_167 : f32 to vector<1x96xf32>
    %776 = arith.addf %775, %774 : vector<1x96xf32>
    %777 = arith.divf %775, %776 : vector<1x96xf32>
    %778 = vector.extract_strided_slice %771 {offsets = [0, 0], sizes = [1, 96], strides = [1, 1]} : vector<1x128xf32> to vector<1x96xf32>
    %779 = arith.negf %778 : vector<1x96xf32>
    %780 = math.exp %779 : vector<1x96xf32>
    %cst_168 = arith.constant 1.000000e+00 : f32
    %781 = vector.broadcast %cst_168 : f32 to vector<1x96xf32>
    %782 = arith.addf %781, %780 : vector<1x96xf32>
    %783 = arith.divf %781, %782 : vector<1x96xf32>
    %784 = vector.extract_strided_slice %767 {offsets = [0, 96], sizes = [1, 32], strides = [1, 1]} : vector<1x128xf32> to vector<1x32xf32>
    %785 = math.tanh %784 : vector<1x32xf32>
    %786 = vector.extract_strided_slice %771 {offsets = [0, 96], sizes = [1, 32], strides = [1, 1]} : vector<1x128xf32> to vector<1x32xf32>
    %787 = math.tanh %786 : vector<1x32xf32>
    %788 = vector.extract_strided_slice %777 {offsets = [0, 0], sizes = [1, 32], strides = [1, 1]} : vector<1x96xf32> to vector<1x32xf32>
    %789 = vector.extract_strided_slice %754 {offsets = [0, 0], sizes = [1, 32], strides = [1, 1]} : vector<1x64xf32> to vector<1x32xf32>
    %790 = arith.mulf %788, %789 : vector<1x32xf32>
    %791 = vector.extract_strided_slice %777 {offsets = [0, 32], sizes = [1, 32], strides = [1, 1]} : vector<1x96xf32> to vector<1x32xf32>
    %792 = arith.mulf %791, %785 : vector<1x32xf32>
    %793 = arith.addf %790, %792 : vector<1x32xf32>
    %794 = vector.extract_strided_slice %783 {offsets = [0, 0], sizes = [1, 32], strides = [1, 1]} : vector<1x96xf32> to vector<1x32xf32>
    %795 = vector.extract_strided_slice %754 {offsets = [0, 32], sizes = [1, 32], strides = [1, 1]} : vector<1x64xf32> to vector<1x32xf32>
    %796 = arith.mulf %794, %795 : vector<1x32xf32>
    %797 = vector.extract_strided_slice %783 {offsets = [0, 32], sizes = [1, 32], strides = [1, 1]} : vector<1x96xf32> to vector<1x32xf32>
    %798 = arith.mulf %797, %787 : vector<1x32xf32>
    %799 = arith.addf %796, %798 : vector<1x32xf32>
    %800 = vector.extract_strided_slice %777 {offsets = [0, 64], sizes = [1, 32], strides = [1, 1]} : vector<1x96xf32> to vector<1x32xf32>
    %801 = math.tanh %793 : vector<1x32xf32>
    %802 = arith.mulf %800, %801 : vector<1x32xf32>
    %803 = vector.extract_strided_slice %783 {offsets = [0, 64], sizes = [1, 32], strides = [1, 1]} : vector<1x96xf32> to vector<1x32xf32>
    %804 = math.tanh %799 : vector<1x32xf32>
    %805 = arith.mulf %803, %804 : vector<1x32xf32>
    %806 = tpu.concatenate %802, %805 in 1 : vector<1x32xf32>, vector<1x32xf32> -> vector<1x64xf32>
    %807 = tpu.concatenate %793, %799 in 1 : vector<1x32xf32>, vector<1x32xf32> -> vector<1x64xf32>
    %c0_169 = arith.constant 0 : index
    %c6_170 = arith.constant 6 : index
    %c0_171 = arith.constant 0 : index
    %808 = vector.load %arg13[%c0_169, %c6_170, %c0_171] : memref<1x8x64xf32, #tpu.memory_space<vmem>>, vector<1x1x32xf32>
    %809 = vector.shape_cast %808 : vector<1x1x32xf32> to vector<1x32xf32>
    %810 = vector.shape_cast %802 : vector<1x32xf32> to vector<1x1x32xf32>
    tpu.vector_store %arg13[%c0_169, %c6_170, %c0_171], %810 {strides = array<i32>} : memref<1x8x64xf32, #tpu.memory_space<vmem>>, vector<1x1x32xf32>,
    %c0_172 = arith.constant 0 : index
    %c1_173 = arith.constant 1 : index
    %c32_174 = arith.constant 32 : index
    %811 = vector.load %arg13[%c0_172, %c1_173, %c32_174] : memref<1x8x64xf32, #tpu.memory_space<vmem>>, vector<1x1x32xf32>
    %812 = vector.shape_cast %811 : vector<1x1x32xf32> to vector<1x32xf32>
    %813 = vector.shape_cast %805 : vector<1x32xf32> to vector<1x1x32xf32>
    tpu.vector_store %arg13[%c0_172, %c1_173, %c32_174], %813 {strides = array<i32>} : memref<1x8x64xf32, #tpu.memory_space<vmem>>, vector<1x1x32xf32>,
    %814 = arith.truncf %806 : vector<1x64xf32> to vector<1x64xbf16>
    %c0_175 = arith.constant 0 : index
    %c0_176 = arith.constant 0 : index
    %815 = vector.load %arg6[%c0_175, %c0_176] : memref<64x256xbf16, #tpu.memory_space<vmem>>, vector<64x256xbf16>
    %cst_177 = arith.constant dense<0.000000e+00> : vector<1x256xf32>
    %816 = tpu.matmul %814, %815, %cst_177 {dimension_numbers = #tpu.dot_dimension_numbers<[1], [0], [0], [1], [0, 0, 1, 1], [], []>} : vector<1x64xbf16>, vector<64x256xbf16>, vector<1x256xf32> -> vector<1x256xf32>
    %817 = vector.extract_strided_slice %440 {offsets = [0, 7, 0], sizes = [1, 1, 128], strides = [1, 1, 1]} : vector<1x8x256xf32> to vector<1x1x128xf32>
    %818 = vector.shape_cast %817 : vector<1x1x128xf32> to vector<1x128xf32>
    %819 = vector.extract_strided_slice %816 {offsets = [0, 0], sizes = [1, 128], strides = [1, 1]} : vector<1x256xf32> to vector<1x128xf32>
    %820 = arith.addf %818, %819 : vector<1x128xf32>
    %821 = vector.extract_strided_slice %440 {offsets = [0, 0, 128], sizes = [1, 1, 128], strides = [1, 1, 1]} : vector<1x8x256xf32> to vector<1x1x128xf32>
    %822 = vector.shape_cast %821 : vector<1x1x128xf32> to vector<1x128xf32>
    %823 = vector.extract_strided_slice %816 {offsets = [0, 128], sizes = [1, 128], strides = [1, 1]} : vector<1x256xf32> to vector<1x128xf32>
    %824 = arith.addf %822, %823 : vector<1x128xf32>
    %825 = vector.extract_strided_slice %820 {offsets = [0, 0], sizes = [1, 96], strides = [1, 1]} : vector<1x128xf32> to vector<1x96xf32>
    %826 = arith.negf %825 : vector<1x96xf32>
    %827 = math.exp %826 : vector<1x96xf32>
    %cst_178 = arith.constant 1.000000e+00 : f32
    %828 = vector.broadcast %cst_178 : f32 to vector<1x96xf32>
    %829 = arith.addf %828, %827 : vector<1x96xf32>
    %830 = arith.divf %828, %829 : vector<1x96xf32>
    %831 = vector.extract_strided_slice %824 {offsets = [0, 0], sizes = [1, 96], strides = [1, 1]} : vector<1x128xf32> to vector<1x96xf32>
    %832 = arith.negf %831 : vector<1x96xf32>
    %833 = math.exp %832 : vector<1x96xf32>
    %cst_179 = arith.constant 1.000000e+00 : f32
    %834 = vector.broadcast %cst_179 : f32 to vector<1x96xf32>
    %835 = arith.addf %834, %833 : vector<1x96xf32>
    %836 = arith.divf %834, %835 : vector<1x96xf32>
    %837 = vector.extract_strided_slice %820 {offsets = [0, 96], sizes = [1, 32], strides = [1, 1]} : vector<1x128xf32> to vector<1x32xf32>
    %838 = math.tanh %837 : vector<1x32xf32>
    %839 = vector.extract_strided_slice %824 {offsets = [0, 96], sizes = [1, 32], strides = [1, 1]} : vector<1x128xf32> to vector<1x32xf32>
    %840 = math.tanh %839 : vector<1x32xf32>
    %841 = vector.extract_strided_slice %830 {offsets = [0, 0], sizes = [1, 32], strides = [1, 1]} : vector<1x96xf32> to vector<1x32xf32>
    %842 = vector.extract_strided_slice %807 {offsets = [0, 0], sizes = [1, 32], strides = [1, 1]} : vector<1x64xf32> to vector<1x32xf32>
    %843 = arith.mulf %841, %842 : vector<1x32xf32>
    %844 = vector.extract_strided_slice %830 {offsets = [0, 32], sizes = [1, 32], strides = [1, 1]} : vector<1x96xf32> to vector<1x32xf32>
    %845 = arith.mulf %844, %838 : vector<1x32xf32>
    %846 = arith.addf %843, %845 : vector<1x32xf32>
    %847 = vector.extract_strided_slice %836 {offsets = [0, 0], sizes = [1, 32], strides = [1, 1]} : vector<1x96xf32> to vector<1x32xf32>
    %848 = vector.extract_strided_slice %807 {offsets = [0, 32], sizes = [1, 32], strides = [1, 1]} : vector<1x64xf32> to vector<1x32xf32>
    %849 = arith.mulf %847, %848 : vector<1x32xf32>
    %850 = vector.extract_strided_slice %836 {offsets = [0, 32], sizes = [1, 32], strides = [1, 1]} : vector<1x96xf32> to vector<1x32xf32>
    %851 = arith.mulf %850, %840 : vector<1x32xf32>
    %852 = arith.addf %849, %851 : vector<1x32xf32>
    %853 = vector.extract_strided_slice %830 {offsets = [0, 64], sizes = [1, 32], strides = [1, 1]} : vector<1x96xf32> to vector<1x32xf32>
    %854 = math.tanh %846 : vector<1x32xf32>
    %855 = arith.mulf %853, %854 : vector<1x32xf32>
    %856 = vector.extract_strided_slice %836 {offsets = [0, 64], sizes = [1, 32], strides = [1, 1]} : vector<1x96xf32> to vector<1x32xf32>
    %857 = math.tanh %852 : vector<1x32xf32>
    %858 = arith.mulf %856, %857 : vector<1x32xf32>
    %c0_180 = arith.constant 0 : index
    %c7_181 = arith.constant 7 : index
    %c0_182 = arith.constant 0 : index
    %859 = vector.load %arg13[%c0_180, %c7_181, %c0_182] : memref<1x8x64xf32, #tpu.memory_space<vmem>>, vector<1x1x32xf32>
    %860 = vector.shape_cast %859 : vector<1x1x32xf32> to vector<1x32xf32>
    %861 = vector.shape_cast %855 : vector<1x32xf32> to vector<1x1x32xf32>
    tpu.vector_store %arg13[%c0_180, %c7_181, %c0_182], %861 {strides = array<i32>} : memref<1x8x64xf32, #tpu.memory_space<vmem>>, vector<1x1x32xf32>,
    %c0_183 = arith.constant 0 : index
    %c0_184 = arith.constant 0 : index
    %c32_185 = arith.constant 32 : index
    %862 = vector.load %arg13[%c0_183, %c0_184, %c32_185] : memref<1x8x64xf32, #tpu.memory_space<vmem>>, vector<1x1x32xf32>
    %863 = vector.shape_cast %862 : vector<1x1x32xf32> to vector<1x32xf32>
    %864 = vector.shape_cast %858 : vector<1x32xf32> to vector<1x1x32xf32>
    tpu.vector_store %arg13[%c0_183, %c0_184, %c32_185], %864 {strides = array<i32>} : memref<1x8x64xf32, #tpu.memory_space<vmem>>, vector<1x1x32xf32>,
    %c0_186 = arith.constant 0 : index
    %c0_187 = arith.constant 0 : index
    %c0_188 = arith.constant 0 : index
    %865 = vector.load %arg13[%c0_186, %c0_187, %c0_188] : memref<1x8x64xf32, #tpu.memory_space<vmem>>, vector<1x8x64xf32>
    %866 = arith.truncf %865 : vector<1x8x64xf32> to vector<1x8x64xbf16>
    %867 = vector.shape_cast %866 : vector<1x8x64xbf16> to vector<8x64xbf16>
    %c0_189 = arith.constant 0 : index
    %c0_190 = arith.constant 0 : index
    %868 = vector.load %arg8[%c0_189, %c0_190] : memref<64x192xbf16, #tpu.memory_space<vmem>>, vector<64x192xbf16>
    %cst_191 = arith.constant dense<0.000000e+00> : vector<8x192xf32>
    %869 = tpu.matmul %867, %868, %cst_191 {dimension_numbers = #tpu.dot_dimension_numbers<[1], [0], [0], [1], [0, 0, 1, 1], [], []>} : vector<8x64xbf16>, vector<64x192xbf16>, vector<8x192xf32> -> vector<8x192xf32>
    %c0_192 = arith.constant 0 : index
    %c0_193 = arith.constant 0 : index
    %870 = vector.load %arg9[%c0_192, %c0_193] : memref<1x192xf32, #tpu.memory_space<vmem>>, vector<1x192xf32>
    %871 = vector.broadcast %870 : vector<1x192xf32> to vector<8x192xf32>
    %872 = arith.addf %869, %871 : vector<8x192xf32>
    %873 = vector.shape_cast %872 : vector<8x192xf32> to vector<1x8x192xf32>
    %874 = vector.extract_strided_slice %873 {offsets = [0, 0, 0], sizes = [1, 8, 64], strides = [1, 1, 1]} : vector<1x8x192xf32> to vector<1x8x64xf32>
    %875 = vector.extract_strided_slice %873 {offsets = [0, 0, 64], sizes = [1, 8, 64], strides = [1, 1, 1]} : vector<1x8x192xf32> to vector<1x8x64xf32>
    %876 = vector.extract_strided_slice %873 {offsets = [0, 0, 128], sizes = [1, 8, 64], strides = [1, 1, 1]} : vector<1x8x192xf32> to vector<1x8x64xf32>
    "tpu.trace_start"() <{level = 10 : i32, message = "bqf,bkf->bqk"}> : () -> ()
    %cst_194 = arith.constant dense<0.000000e+00> : vector<1x8x8xf32>
    %877 = tpu.matmul %875, %874, %cst_194 {dimension_numbers = #tpu.dot_dimension_numbers<[2], [2], [1], [1], [0, 0, 0, 1, 1, 1], [0], [0]>} : vector<1x8x64xf32>, vector<1x8x64xf32>, vector<1x8x8xf32> -> vector<1x8x8xf32>
    "tpu.trace_stop"() : () -> ()
    %cst_195 = arith.constant 1.250000e-01 : f32
    %878 = vector.broadcast %cst_195 : f32 to vector<1x8x8xf32>
    %879 = arith.mulf %877, %878 : vector<1x8x8xf32>
    %cst_196 = arith.constant dense<0xFF800000> : vector<1x8xf32>
    %880 = vector.multi_reduction <maximumf>, %879, %cst_196 [2] : vector<1x8x8xf32> to vector<1x8xf32>
    %881 = vector.shape_cast %880 : vector<1x8xf32> to vector<1x8x1xf32>
    %882 = vector.broadcast %881 : vector<1x8x1xf32> to vector<1x8x8xf32>
    %883 = arith.subf %879, %882 : vector<1x8x8xf32>
    %884 = math.exp %883 : vector<1x8x8xf32>
    %cst_197 = arith.constant dense<0.000000e+00> : vector<1x8xf32>
    %885 = vector.multi_reduction <add>, %884, %cst_197 [2] : vector<1x8x8xf32> to vector<1x8xf32>
    %886 = vector.shape_cast %885 : vector<1x8xf32> to vector<1x8x1xf32>
    %887 = vector.broadcast %886 : vector<1x8x1xf32> to vector<1x8x8xf32>
    %888 = arith.divf %884, %887 : vector<1x8x8xf32>
    "tpu.trace_start"() <{level = 10 : i32, message = "bqk,bkf->bqf"}> : () -> ()
    %cst_198 = arith.constant dense<0.000000e+00> : vector<1x8x64xf32>
    %889 = tpu.matmul %888, %876, %cst_198 {dimension_numbers = #tpu.dot_dimension_numbers<[2], [1], [1], [2], [0, 0, 0, 1, 1, 2], [0], [0]>} : vector<1x8x8xf32>, vector<1x8x64xf32>, vector<1x8x64xf32> -> vector<1x8x64xf32>
    "tpu.trace_stop"() : () -> ()
    %890 = arith.truncf %889 : vector<1x8x64xf32> to vector<1x8x64xbf16>
    %891 = vector.shape_cast %890 : vector<1x8x64xbf16> to vector<8x64xbf16>
    %c0_199 = arith.constant 0 : index
    %c0_200 = arith.constant 0 : index
    %892 = vector.load %arg10[%c0_199, %c0_200] : memref<64x128xbf16, #tpu.memory_space<vmem>>, vector<64x128xbf16>
    %cst_201 = arith.constant dense<0.000000e+00> : vector<8x128xf32>
    %893 = tpu.matmul %891, %892, %cst_201 {dimension_numbers = #tpu.dot_dimension_numbers<[1], [0], [0], [1], [0, 0, 1, 1], [], []>} : vector<8x64xbf16>, vector<64x128xbf16>, vector<8x128xf32> -> vector<8x128xf32>
    %c0_202 = arith.constant 0 : index
    %c0_203 = arith.constant 0 : index
    %894 = vector.load %arg11[%c0_202, %c0_203] : memref<1x128xf32, #tpu.memory_space<vmem>>, vector<1x128xf32>
    %895 = vector.broadcast %894 : vector<1x128xf32> to vector<8x128xf32>
    %896 = arith.addf %893, %895 : vector<8x128xf32>
    %897 = vector.shape_cast %896 : vector<8x128xf32> to vector<1x8x128xf32>
    %898 = vector.extract_strided_slice %897 {offsets = [0, 0, 0], sizes = [1, 8, 7], strides = [1, 1, 1]} : vector<1x8x128xf32> to vector<1x8x7xf32>
    %c0_204 = arith.constant 0 : index
    %c0_205 = arith.constant 0 : index
    %c0_206 = arith.constant 0 : index
    %899 = vector.load %arg12[%c0_204, %c0_205, %c0_206] : memref<1x8x7xf32, #tpu.memory_space<vmem>>, vector<1x8x7xf32>
    tpu.vector_store %arg12[%c0_204, %c0_205, %c0_206], %898 {strides = array<i32>} : memref<1x8x7xf32, #tpu.memory_space<vmem>>, vector<1x8x7xf32>,
    return
  }
  func.func @transform_0(%arg0: i32) -> (i32, i32, i32) {
    %c0_i32 = arith.constant 0 : i32
    %c0_i32_0 = arith.constant 0 : i32
    %c0_i32_1 = arith.constant 0 : i32
    return %arg0, %c0_i32, %c0_i32_0 : i32, i32, i32
  }
  func.func @transform_1(%arg0: i32) -> (i32, i32) {
    %c0_i32 = arith.constant 0 : i32
    %c0_i32_0 = arith.constant 0 : i32
    %c0_i32_1 = arith.constant 0 : i32
    return %c0_i32, %c0_i32_0 : i32, i32
  }
  func.func @transform_2(%arg0: i32) -> (i32, i32) {
    %c0_i32 = arith.constant 0 : i32
    %c0_i32_0 = arith.constant 0 : i32
    %c0_i32_1 = arith.constant 0 : i32
    return %c0_i32, %c0_i32_0 : i32, i32
  }
  func.func @transform_3(%arg0: i32) -> (i32, i32) {
    %c0_i32 = arith.constant 0 : i32
    %c0_i32_0 = arith.constant 0 : i32
    %c0_i32_1 = arith.constant 0 : i32
    return %c0_i32, %c0_i32_0 : i32, i32
  }
  func.func @transform_4(%arg0: i32) -> (i32, i32) {
    %c0_i32 = arith.constant 0 : i32
    %c0_i32_0 = arith.constant 0 : i32
    %c0_i32_1 = arith.constant 0 : i32
    return %c0_i32, %c0_i32_0 : i32, i32
  }
  func.func @transform_5(%arg0: i32) -> (i32, i32) {
    %c0_i32 = arith.constant 0 : i32
    %c0_i32_0 = arith.constant 0 : i32
    %c0_i32_1 = arith.constant 0 : i32
    return %c0_i32, %c0_i32_0 : i32, i32
  }
  func.func @transform_6(%arg0: i32) -> (i32, i32) {
    %c0_i32 = arith.constant 0 : i32
    %c0_i32_0 = arith.constant 0 : i32
    %c0_i32_1 = arith.constant 0 : i32
    return %c0_i32, %c0_i32_0 : i32, i32
  }
  func.func @transform_7(%arg0: i32) -> (i32, i32) {
    %c0_i32 = arith.constant 0 : i32
    %c0_i32_0 = arith.constant 0 : i32
    %c0_i32_1 = arith.constant 0 : i32
    return %c0_i32, %c0_i32_0 : i32, i32
  }
  func.func @transform_8(%arg0: i32) -> (i32, i32) {
    %c0_i32 = arith.constant 0 : i32
    %c0_i32_0 = arith.constant 0 : i32
    %c0_i32_1 = arith.constant 0 : i32
    return %c0_i32, %c0_i32_0 : i32, i32
  }
  func.func @transform_9(%arg0: i32) -> (i32, i32) {
    %c0_i32 = arith.constant 0 : i32
    %c0_i32_0 = arith.constant 0 : i32
    %c0_i32_1 = arith.constant 0 : i32
    return %c0_i32, %c0_i32_0 : i32, i32
  }
  func.func @transform_10(%arg0: i32) -> (i32, i32) {
    %c0_i32 = arith.constant 0 : i32
    %c0_i32_0 = arith.constant 0 : i32
    %c0_i32_1 = arith.constant 0 : i32
    return %c0_i32, %c0_i32_0 : i32, i32
  }
  func.func @transform_11(%arg0: i32) -> (i32, i32, i32) {
    %c0_i32 = arith.constant 0 : i32
    %c0_i32_0 = arith.constant 0 : i32
    %c0_i32_1 = arith.constant 0 : i32
    return %arg0, %c0_i32, %c0_i32_0 : i32, i32, i32
  }
}

</mosaic_0001>

<bundles_post_ra>
// kernel: lstm_ner_forward.1
= control target key start
LH: loop header
LB: loop body
LE: loop exit
PB: predicated region body
PF: predicated region fallthrough
CT: control target
= control target key end

     0   :  { %s4516_s17 = smov 0   ;;  %s5289_s0 = inlined_call_operand.vmem [shape: bf16[2,8,64], index: 0, kind: input, shape index: {}]   ;;  %s5290_s1 = inlined_call_operand.vmem [shape: bf16[64,256], index: 1, kind: input, shape index: {}]   ;;  %s5291_s2 = inlined_call_operand.vmem [shape: bf16[64,256], index: 2, kind: input, shape index: {}]   ;;  %s5292_s3 = inlined_call_operand.vmem [shape: f32[1,256], index: 3, kind: input, shape index: {}]   ;;  %s5293_s4 = inlined_call_operand.vmem [shape: bf16[64,256], index: 4, kind: input, shape index: {}]   ;;  %s5294_s5 = inlined_call_operand.vmem [shape: bf16[64,256], index: 5, kind: input, shape index: {}]   ;;  %s5295_s6 = inlined_call_operand.vmem [shape: f32[1,256], index: 6, kind: input, shape index: {}]   ;;  %s5296_s7 = inlined_call_operand.vmem [shape: bf16[64,192], index: 7, kind: input, shape index: {}]   ;;  %s5297_s8 = inlined_call_operand.vmem [shape: f32[1,192], index: 8, kind: input, shape index: {}]   ;;  %s5298_s9 = inlined_call_operand.vmem [shape: bf16[64,128], index: 9, kind: input, shape index: {}]   ;;  %s5299_s10 = inlined_call_operand.vmem [shape: f32[1,128], index: 10, kind: input, shape index: {}]   ;;  %s5300_s11 = inlined_call_operand.vmem [shape: f32[2,8,7], index: 11, kind: output, shape index: {}]  }
   0x1 LB: > { %s3830_s18 = sadd.s32 4294967295, %s4448_s17   ;;  %p3834_p0 = scmp.ge.s32.totalorder %s4448_s17, 1  ;;  %s4448_s17 = sphi %s4516_s17, %s21_s17  }
   0x2   : > { %p336_p1 = scmp.lt.s32.totalorder %s4448_s17, 3 }
   0x4   : > { %p337_p2 = pnand %p3834_p0, %p336_p1 }
   0x5   : > { %v4094_v0 = vld [vmem:[%s5290_s1 + $0x4] ss:$8 sps:$4 sm:$0xff] (!%p337_p2)   ;;  %p4527_p3 = scmp.lt.s32.totalorder (!%p337_p2), %s3830_s18, 1  ;;  %v4450_v2 = vmov (!%p337_p2), 0   ;;  %v4098_v3 = vld [vmem:[%s5290_s1] ss:$8 sps:$4 sm:$0xff] (!%p337_p2)   ;;  %v394_v18 = vlaneseq (!%p337_p2) }
   0x6   : > { %340 = sbr.rel (%p337_p2) target bundleno = 12711 (0x31a7), region = 64  ;;  %v4534_v1 = vld [vmem:[%s5291_s2 + $0x4] ss:$8 sps:$4 sm:$0xff] (!%p337_p2)   ;;  %480 = vmatprep.mubr.bf16.mxu0 (!%p337_p2), %v4450_v2  ;;  %572 = vmatprep.mubr.bf16.mxu1 (!%p337_p2), %v4450_v2  ;;  %v4544_v4 = vld [vmem:[%s5291_s2] ss:$8 sps:$4 sm:$0xff] (!%p337_p2)   ;;  %vm444_vm0 = vcmask (!%p337_p2), 523264  }
   0x7   : > { %448 = vmatprep.subr.bf16.mxu0 (!%p337_p2), %v4094_v0  ;;  %540 = vmatprep.subr.bf16.mxu1 (!%p337_p2), %v4534_v1  ;;  %v4100_v5 = vld [vmem:[%s5290_s1 + $0x14] ss:$8 sps:$4 sm:$0xff] (!%p337_p2)   ;;  %v4104_v7 = vld [vmem:[%s5290_s1 + $0x10] ss:$8 sps:$4 sm:$0xff] (!%p337_p2)   ;;  %v4106_v9 = vld [vmem:[%s5290_s1 + $0x24] ss:$8 sps:$4 sm:$0xff] (!%p337_p2)  }
   0x8   : > { %449 = vmatpush1.bf16.msra.mxu0 (!%p337_p2), %v4098_v3  ;;  %541 = vmatpush1.bf16.msra.mxu1 (!%p337_p2), %v4544_v4  ;;  %v4554_v6 = vld [vmem:[%s5291_s2 + $0x14] ss:$8 sps:$4 sm:$0xff] (!%p337_p2)   ;;  %v4566_v8 = vld [vmem:[%s5291_s2 + $0x10] ss:$8 sps:$4 sm:$0xff] (!%p337_p2)   ;;  %v4575_v10 = vld [vmem:[%s5291_s2 + $0x24] ss:$8 sps:$4 sm:$0xff] (!%p337_p2)  }
   0x9   : > { %450 = vmatprep.subr.bf16.mxu0 (!%p337_p2), %v4100_v5  ;;  %542 = vmatprep.subr.bf16.mxu1 (!%p337_p2), %v4554_v6  ;;  %v4110_v11 = vld [vmem:[%s5290_s1 + $0x20] ss:$8 sps:$4 sm:$0xff] (!%p337_p2)   ;;  %v4112_v13 = vld [vmem:[%s5290_s1 + $0x34] ss:$8 sps:$4 sm:$0xff] (!%p337_p2)   ;;  %v4116_v15 = vld [vmem:[%s5290_s1 + $0x30] ss:$8 sps:$4 sm:$0xff] (!%p337_p2)  }
   0xa   : > { %v4583_v12 = vld [vmem:[%s5291_s2 + $0x20] ss:$8 sps:$4 sm:$0xff] (!%p337_p2)   ;;  %v4594_v14 = vld [vmem:[%s5291_s2 + $0x34] ss:$8 sps:$4 sm:$0xff] (!%p337_p2)   ;;  %v4602_v16 = vld [vmem:[%s5291_s2 + $0x30] ss:$8 sps:$4 sm:$0xff] (!%p337_p2)  }
   0xb   : > { %v395_v19 = vshrl.u32 (!%p337_p2), %v394_v18, 7  ;;  %v392_v22 = vld [vmem:[%s5292_s3] sm:$0x3] (!%p337_p2)  ;;  %s4451_s24 = smov (!%p337_p2), 64   ;;  %s4452_s25 = smov (!%p337_p2), 96   ;;  %vm643_vm1 = vcmask (!%p337_p2), 261120  }
   0xc   : > { %451 = vmatpush1.bf16.msra.mxu0 (!%p337_p2), %v4104_v7  ;;  %543 = vmatpush1.bf16.msra.mxu1 (!%p337_p2), %v4566_v8  ;;  %s4453_s26 = smov (!%p337_p2), 32   ;;  %vm651_vm2 = vcmask (!%p337_p2), 253952   ;;  %vm830_vm3 = vcmask (!%p337_p2), 254977   ;;  %vm1012_vm4 = vcmask (!%p337_p2), 256002   ;;  %vm1193_vm5 = vcmask (!%p337_p2), 257027  }
   0xd   : > { %s5307_s18 = smov (!%p4527_p3, %s3830_s18), 1  ;;  %452 = vmatprep.subr.bf16.mxu0 %v4106_v9  ;;  %544 = vmatprep.subr.bf16.mxu1 %v4575_v10  ;;  %v4632_v20 = vsub.s32 0, %v395_v19  ;;  %v4634_v21 = vsub.s32 1, %v395_v19  ;;  %vm835_vm6 = vcmask 522502   ;;  %vm1739_vm7 = vcmask 260102  }
   0xe   : > { %s3835_s29 = sshll.u32 %s5307_s18, 2  ;;  %vm656_vm8 = vcmask 523527   ;;  %vm1198_vm9 = vcmask 520452   ;;  %vm5302_vm10 = vcmask 258052   ;;  %vm5301_vm11 = vcmask 521477   ;;  %s3836_s12 = sshll.u32 %s5307_s18, 3 }
   0xf   : > { %s377_s22 = scalar_lea.vmem %s5289_s0, %s3835_s29  ;;  %v397_v23 = vrot.slane %v392_v22, %v4632_v20  ;;  %v401_v24 = vrot.slane %v392_v22, %v4634_v21  ;;  %vm1556_vm12 = vcmask 259077   ;;  %vm1561_vm13 = vcmask 518402   ;;  %s381_s19 = scalar_lea.vmem %s5300_s11, %s3836_s12 }
  0x10   : > { %453 = vmatpush1.bf16.msra.mxu0 %v4110_v11  ;;  %545 = vmatpush1.bf16.msra.mxu1 %v4583_v12  ;;  %v383_v17 = vld [vmem:[%s377_s22] sm:$0xf]  ;;  %vm1380_vm14 = vcmask 519427   ;;  %vm1744_vm15 = vcmask 517377  }
  0x11   : > { %454 = vmatprep.subr.bf16.mxu0 %v4112_v13  ;;  %546 = vmatprep.subr.bf16.mxu1 %v4594_v14 }
  0x14   : > { %455 = vmatpush1.bf16.msra.mxu0 %v4116_v15  ;;  %547 = vmatpush1.bf16.msra.mxu1 %v4602_v16 }
  0x15   : > { %710 = vmatprep.subr.bf16.mxu0 %v4534_v1  ;;  %892 = vmatprep.subr.bf16.mxu1 %v4534_v1 }
  0x17   : > { %3845 = vmatmul.mubr.msk.bf16.vlgmr.msra.gmra.mrb[0].mxu0 %vm444_vm0, %v383_v17  ;;  %573 = vmatmul.mubr.bf16.vlgmr.msra.gmra.mrb[0].mxu1 %v4450_v2 }
  0x18   : > { %711 = vmatpush1.bf16.msra.mxu0 %v4544_v4  ;;  %742 = vmatprep.mubr.bf16.mxu0 %v4450_v2 }
  0x19   : > { %712 = vmatprep.subr.bf16.mxu0 %v4554_v6  ;;  %893 = vmatpush1.bf16.msra.mxu1 %v4544_v4 }
  0x1a   : > { %894 = vmatprep.subr.bf16.mxu1 %v4554_v6  ;;  %924 = vmatprep.mubr.bf16.mxu1 %v4450_v2 }
  0x1c   : > { %713 = vmatpush1.bf16.msra.mxu0 %v4566_v8 }
  0x1d   : > { %714 = vmatprep.subr.bf16.mxu0 %v4575_v10  ;;  %895 = vmatpush1.bf16.msra.mxu1 %v4566_v8 }
  0x1e   : > { %896 = vmatprep.subr.bf16.mxu1 %v4575_v10 }
  0x20   : > { %715 = vmatpush1.bf16.msra.mxu0 %v4583_v12 }
  0x21   : > { %716 = vmatprep.subr.bf16.mxu0 %v4594_v14  ;;  %897 = vmatpush1.bf16.msra.mxu1 %v4583_v12 }
  0x22   : > { %898 = vmatprep.subr.bf16.mxu1 %v4594_v14 }
  0x24   : > { %717 = vmatpush1.bf16.msra.mxu0 %v4602_v16 }
  0x25   : > { %899 = vmatpush1.bf16.msra.mxu1 %v4602_v16  ;;  %1073 = vmatprep.subr.bf16.mxu0 %v4534_v1 }
  0x26   : > { %1256 = vmatprep.subr.bf16.mxu1 %v4534_v1 }
  0xea   : > { %v482_v25 = vpop.f32.mrb[0].mxu0  ;;  %v574_v26 = vpop.f32.mrb[0].mxu1 }
  0xeb   : > { %v484_v27 = vpop.f32.mrb[1].mxu0  ;;  %v576_v28 = vpop.f32.mrb[1].mxu1  ;;  %v4641_v29 = vadd.f32 %v482_v25, %v397_v23 }
  0xec   : > { %v4643_v30 = vadd.f32 %v484_v27, %v401_v24  ;;  %v583_v31 = vrot.slane %v576_v28, 1  ;;  %v486_v32 = vpop.f32.mrb[2].mxu0  ;;  %v578_v33 = vpop.f32.mrb[2].mxu1 }
  0xed   : > { %v487_v34 = vpop.f32.mrb[3].mxu0  ;;  %v579_v35 = vpop.f32.mrb[3].mxu1  ;;  %v581_v37 = vadd.f32 %v574_v26, %v4641_v29 }
  0xee   : > { %v585_v36 = vadd.f32 %v583_v31, %v4643_v30 }
  0xef   : > { %v3854_v41 = vmul.f32 -1.442695, %v581_v37 }
  0xf0   : > { %4182 = vtanh.f32 %v585_v36  ;;  %v3855_v40 = vmul.f32 -1.442695, %v585_v36 }
  0xf1   : > { %4184 = vtanh.f32 %v581_v37 }
  0xf2   : > { %4186 = vpow2.f32 %v3855_v40 }
  0xf3   : > { %4188 = vpow2.f32 %v3854_v41 }
  0xfa   : > { %v4183_v38 = vpop.eup %4182 }
  0xfb   : > { %613 = vrot.lane.b32.xlu0 %v4183_v38, %s4451_s24  ;;  %v4185_v39 = vpop.eup %4184 }
  0xfc   : > { %v4187_v42 = vpop.eup %4186 }
  0xfd   : > { %v595_v43 = vadd.f32 1.0, %v4187_v42  ;;  %v4189_v44 = vpop.eup %4188 }
  0xfe   : > { %v589_v45 = vadd.f32 1.0, %v4189_v44 }
  0xff   : > { %602 = vrot.lane.b32.xlu0 %v4185_v39, %s4451_s24  ;;  %4190 = vrcp.f32 %v595_v43 }
 0x100   : > { %4192 = vrcp.f32 %v589_v45 }
 0x109   : > { %v4191_v46 = vpop.eup %4190 }
 0x10a   : > { %v4193_v49 = vpop.eup %4192  ;;  %v611_v52 = vmul.f32 0.0, %v4191_v46 }
 0x10b   : > { %v600_v55 = vmul.f32 0.0, %v4193_v49 }
 0x16d   : > { %v614_v47 = vpop.permute.xlu0 %613 }
 0x16e   : > { %v616_v48 = vmul.f32 %v4191_v46, %v614_v47 }
 0x170   : > { %618 = vrot.lane.b32.xlu1 %v616_v48, %s4452_s25 }
 0x171   : > { %v603_v50 = vpop.permute.xlu0 %602 }
 0x172   : > { %v605_v51 = vmul.f32 %v4193_v49, %v603_v50 }
 0x174   : > { %607 = vrot.lane.b32.xlu1 %v605_v51, %s4452_s25 }
 0x1e2   : > { %v619_v53 = vpop.permute.xlu1 %618 }
 0x1e3   : > { %v621_v54 = vadd.f32 %v619_v53, %v611_v52 }
 0x1e5   : > { %4194 = vtanh.f32 %v621_v54  ;;  %v646_v3 = vrot.slane %v621_v54, 7 }
 0x1e6   : > { %v608_v56 = vpop.permute.xlu1 %607 }
 0x1e7   : > { %v610_v57 = vadd.f32 %v608_v56, %v600_v55 }
 0x1e9   : > { %4196 = vtanh.f32 %v610_v57 }
 0x1ef   : > { %v4195_v58 = vpop.eup %4194 }
 0x1f0   : > { %630 = vrot.lane.b32.xlu0 %v4195_v58, %s4451_s24 }
 0x1f3   : > { %v4197_v59 = vpop.eup %4196 }
 0x1f4   : > { %624 = vrot.lane.b32.xlu1 %v4197_v59, %s4451_s24 }
 0x262   : > { %v631_v60 = vpop.permute.xlu0 %630 }
 0x263   : > { %v4653_v61 = vmul.f32 %v4191_v46, %v631_v60 }
 0x265   : > { %v639_v62 = vrot.slane %v4653_v61, 7 }
 0x266   : > { %v625_v63 = vpop.permute.xlu1 %624 }
 0x267   : > { %v627_v0 = vmul.f32 %v4193_v49, %v625_v63  ;;  %640 = vrot.lane.b32.xlu1 %v639_v62, %s4452_s25 }
 0x269   : > { %635 = vrot.lane.b32.xlu0 %v627_v0, %s4451_s24 }
 0x26d   : > { %647 = vrot.lane.b32.xlu0 %v646_v3, %s4453_s26 }
 0x2d9   : > { %v641_v5 = vpop.permute.xlu1 %640 }
 0x2db   : > { %v636_v7 = vpop.permute.xlu0 %635 }
 0x2dc   : > { %v644_v9 = vsel %vm643_vm1, %v636_v7, %v641_v5  ;;  %652 = vst.msk [vmem:[#allocation2] sm:$0x1] %vm651_vm2, %v636_v7 }
 0x2dd   : > { %v658_v11 = vpack.c.bf16 %v644_v9, %v644_v9 }
 0x2df   : > { %3864 = vmatmul.mubr.msk.bf16.vlgmr.msra.gmra.mrb[4].mxu0 %vm444_vm0, %v658_v11  ;;  %v648_v25 = vpop.permute.xlu0 %647 }
 0x2e0   : > { %1074 = vmatpush1.bf16.msra.mxu0 %v4544_v4  ;;  %1105 = vmatprep.mubr.bf16.mxu0 %v4450_v2  ;;  %v650_v28 = vsel %vm643_vm1, %v610_v57, %v648_v25 }
 0x2e1   : > { %1075 = vmatprep.subr.bf16.mxu0 %v4554_v6  ;;  %v774_v44 = vrot.slane %v650_v28, 7 }
 0x2e4   : > { %1076 = vmatpush1.bf16.msra.mxu0 %v4566_v8 }
 0x2e5   : > { %1077 = vmatprep.subr.bf16.mxu0 %v4575_v10 }
 0x2e8   : > { %1078 = vmatpush1.bf16.msra.mxu0 %v4583_v12 }
 0x2e9   : > { %1079 = vmatprep.subr.bf16.mxu0 %v4594_v14 }
 0x2ec   : > { %1080 = vmatpush1.bf16.msra.mxu0 %v4602_v16 }
 0x2ed   : > { %1436 = vmatprep.subr.bf16.mxu0 %v4534_v1  ;;  %v787_v1 = vrot.slane %v650_v28, 2 }
 0x3b2   : > { %v744_v13 = vpop.f32.mrb[4].mxu0 }
 0x3b3   : > { %v752_v15 = vrot.slane %v744_v13, 7  ;;  %v746_v17 = vpop.f32.mrb[5].mxu0 }
 0x3b4   : > { %v756_v18 = vrot.slane %v746_v17, 2  ;;  %v748_v19 = vpop.f32.mrb[6].mxu0 }
 0x3b5   : > { %v754_v22 = vadd.f32 %v752_v15, %v4641_v29  ;;  %v749_v23 = vpop.f32.mrb[7].mxu0 }
 0x3b6   : > { %v758_v24 = vadd.f32 %v756_v18, %v4643_v30 }
 0x3b7   : > { %4198 = vtanh.f32 %v754_v22  ;;  %v3865_v31 = vmul.f32 -1.442695, %v754_v22 }
 0x3b8   : > { %4200 = vtanh.f32 %v758_v24  ;;  %v3866_v32 = vmul.f32 -1.442695, %v758_v24 }
 0x3b9   : > { %4202 = vpow2.f32 %v3865_v31 }
 0x3ba   : > { %4204 = vpow2.f32 %v3866_v32 }
 0x3c1   : > { %v4199_v26 = vpop.eup %4198 }
 0x3c2   : > { %v4201_v27 = vpop.eup %4200  ;;  %778 = vrot.lane.b32.xlu0 %v4199_v26, %s4451_s24 }
 0x3c3   : > { %793 = vrot.lane.b32.xlu1 %v4201_v27, %s4451_s24  ;;  %v4203_v33 = vpop.eup %4202 }
 0x3c4   : > { %v4205_v34 = vpop.eup %4204  ;;  %v762_v35 = vadd.f32 1.0, %v4203_v33 }
 0x3c5   : > { %v768_v36 = vadd.f32 1.0, %v4205_v34 }
 0x3c6   : > { %4206 = vrcp.f32 %v762_v35 }
 0x3c7   : > { %788 = vrot.lane.b32.xlu1 %v787_v1, %s4452_s25  ;;  %4208 = vrcp.f32 %v768_v36 }
 0x3d0   : > { %v4207_v37 = vpop.eup %4206 }
 0x3d1   : > { %v4209_v39 = vpop.eup %4208  ;;  %v776_v45 = vmul.f32 %v4207_v37, %v774_v44 }
 0x434   : > { %v779_v38 = vpop.permute.xlu0 %778 }
 0x435   : > { %v781_v40 = vmul.f32 %v4207_v37, %v779_v38  ;;  %v794_v41 = vpop.permute.xlu1 %793 }
 0x436   : > { %v796_v42 = vmul.f32 %v4209_v39, %v794_v41 }
 0x437   : > { %783 = vrot.lane.b32.xlu1 %v781_v40, %s4452_s25 }
 0x438   : > { %798 = vrot.lane.b32.xlu0 %v796_v42, %s4452_s25 }
 0x439   : > { %v789_v43 = vpop.permute.xlu1 %788 }
 0x43a   : > { %v791_v46 = vmul.f32 %v4209_v39, %v789_v43 }
 0x4a9   : > { %v784_v47 = vpop.permute.xlu1 %783 }
 0x4aa   : > { %v786_v48 = vadd.f32 %v784_v47, %v776_v45  ;;  %v799_v49 = vpop.permute.xlu0 %798 }
 0x4ab   : > { %v801_v50 = vadd.f32 %v799_v49, %v791_v46 }
 0x4ac   : > { %4210 = vtanh.f32 %v786_v48 }
 0x4ad   : > { %4212 = vtanh.f32 %v801_v50  ;;  %v825_v58 = vrot.slane %v801_v50, 5 }
 0x4b6   : > { %v4211_v51 = vpop.eup %4210 }
 0x4b7   : > { %v4213_v52 = vpop.eup %4212  ;;  %804 = vrot.lane.b32.xlu1 %v4211_v51, %s4451_s24 }
 0x4b8   : > { %810 = vrot.lane.b32.xlu0 %v4213_v52, %s4451_s24 }
 0x529   : > { %v805_v53 = vpop.permute.xlu1 %804 }
 0x52a   : > { %v807_v54 = vmul.f32 %v4207_v37, %v805_v53  ;;  %v811_v55 = vpop.permute.xlu0 %810 }
 0x52b   : > { %v4681_v56 = vmul.f32 %v4209_v39, %v811_v55 }
 0x52c   : > { %815 = vrot.lane.b32.xlu0 %v807_v54, %s4451_s24 }
 0x52d   : > { %v819_v57 = vrot.slane %v4681_v56, 5 }
 0x52f   : > { %820 = vrot.lane.b32.xlu1 %v819_v57, %s4452_s25 }
 0x530   : > { %826 = vrot.lane.b32.xlu0 %v825_v58, %s4453_s26 }
 0x59e   : > { %v816_v59 = vpop.permute.xlu0 %815 }
 0x59f   : > { %831 = vst.msk [vmem:[#allocation2] sm:$0x2] %vm830_vm3, %v816_v59 }
 0x5a1   : > { %v821_v60 = vpop.permute.xlu1 %820 }
 0x5a2   : > { %v823_v62 = vsel %vm643_vm1, %v816_v59, %v821_v60  ;;  %v827_v18 = vpop.permute.xlu0 %826 }
 0x5a3   : > { %v837_v63 = vpack.c.bf16 %v823_v62, %v823_v62  ;;  %v829_v23 = vsel %vm643_vm1, %v786_v48, %v827_v18 }
 0x5a4   : > { %v969_v24 = vrot.slane %v829_v23, 4  ;;  %v956_v39 = vrot.slane %v829_v23, 7 }
 0x5a5   : > { %v847_v0 = vshrl.u32 %v837_v63, 16 }
 0x5a7   : > { %3875 = vmatmul.mubr.msk.bf16.vlgmr.msra.gmra.mrb[4].mxu1 %vm444_vm0, %v847_v0 }
 0x5a8   : > { %1257 = vmatpush1.bf16.msra.mxu1 %v4544_v4  ;;  %1288 = vmatprep.mubr.bf16.mxu1 %v4450_v2 }
 0x5a9   : > { %1258 = vmatprep.subr.bf16.mxu1 %v4554_v6 }
 0x5ac   : > { %1259 = vmatpush1.bf16.msra.mxu1 %v4566_v8 }
 0x5ad   : > { %1260 = vmatprep.subr.bf16.mxu1 %v4575_v10 }
 0x5b0   : > { %1261 = vmatpush1.bf16.msra.mxu1 %v4583_v12 }
 0x5b1   : > { %1262 = vmatprep.subr.bf16.mxu1 %v4594_v14 }
 0x5b4   : > { %1263 = vmatpush1.bf16.msra.mxu1 %v4602_v16 }
 0x67a   : > { %v926_v3 = vpop.f32.mrb[4].mxu1 }
 0x67b   : > { %v934_v5 = vrot.slane %v926_v3, 6  ;;  %v928_v7 = vpop.f32.mrb[5].mxu1 }
 0x67c   : > { %v938_v9 = vrot.slane %v928_v7, 3  ;;  %v930_v11 = vpop.f32.mrb[6].mxu1 }
 0x67d   : > { %v936_v13 = vadd.f32 %v934_v5, %v4641_v29  ;;  %v931_v15 = vpop.f32.mrb[7].mxu1 }
 0x67e   : > { %v940_v17 = vadd.f32 %v938_v9, %v4643_v30 }
 0x67f   : > { %4214 = vtanh.f32 %v936_v13  ;;  %v3876_v25 = vmul.f32 -1.442695, %v936_v13 }
 0x680   : > { %4216 = vtanh.f32 %v940_v17  ;;  %v3877_v26 = vmul.f32 -1.442695, %v940_v17 }
 0x681   : > { %4218 = vpow2.f32 %v3876_v25 }
 0x682   : > { %4220 = vpow2.f32 %v3877_v26 }
 0x689   : > { %v4215_v19 = vpop.eup %4214 }
 0x68a   : > { %v4217_v22 = vpop.eup %4216  ;;  %960 = vrot.lane.b32.xlu0 %v4215_v19, %s4451_s24 }
 0x68b   : > { %975 = vrot.lane.b32.xlu1 %v4217_v22, %s4451_s24  ;;  %v4219_v27 = vpop.eup %4218 }
 0x68c   : > { %v4221_v28 = vpop.eup %4220  ;;  %v944_v1 = vadd.f32 1.0, %v4219_v27 }
 0x68d   : > { %v950_v31 = vadd.f32 1.0, %v4221_v28 }
 0x68e   : > { %4222 = vrcp.f32 %v944_v1 }
 0x68f   : > { %970 = vrot.lane.b32.xlu1 %v969_v24, %s4452_s25  ;;  %4224 = vrcp.f32 %v950_v31 }
 0x698   : > { %v4223_v32 = vpop.eup %4222 }
 0x699   : > { %v4225_v34 = vpop.eup %4224  ;;  %v958_v40 = vmul.f32 %v4223_v32, %v956_v39 }
 0x6fc   : > { %v961_v33 = vpop.permute.xlu0 %960 }
 0x6fd   : > { %v963_v35 = vmul.f32 %v4223_v32, %v961_v33  ;;  %v976_v36 = vpop.permute.xlu1 %975 }
 0x6fe   : > { %v978_v37 = vmul.f32 %v4225_v34, %v976_v36 }
 0x6ff   : > { %965 = vrot.lane.b32.xlu1 %v963_v35, %s4452_s25 }
 0x700   : > { %980 = vrot.lane.b32.xlu0 %v978_v37, %s4452_s25 }
 0x701   : > { %v971_v38 = vpop.permute.xlu1 %970 }
 0x702   : > { %v973_v41 = vmul.f32 %v4225_v34, %v971_v38 }
 0x771   : > { %v966_v42 = vpop.permute.xlu1 %965 }
 0x772   : > { %v968_v43 = vadd.f32 %v966_v42, %v958_v40  ;;  %v981_v44 = vpop.permute.xlu0 %980 }
 0x773   : > { %v983_v45 = vadd.f32 %v981_v44, %v973_v41 }
 0x774   : > { %4226 = vtanh.f32 %v968_v43 }
 0x775   : > { %4228 = vtanh.f32 %v983_v45  ;;  %v1007_v53 = vrot.slane %v983_v45, 3 }
 0x77e   : > { %v4227_v46 = vpop.eup %4226 }
 0x77f   : > { %v4229_v47 = vpop.eup %4228  ;;  %986 = vrot.lane.b32.xlu1 %v4227_v46, %s4451_s24 }
 0x780   : > { %992 = vrot.lane.b32.xlu0 %v4229_v47, %s4451_s24 }
 0x7f1   : > { %v987_v48 = vpop.permute.xlu1 %986 }
 0x7f2   : > { %v989_v49 = vmul.f32 %v4223_v32, %v987_v48  ;;  %v993_v50 = vpop.permute.xlu0 %992 }
 0x7f3   : > { %v4708_v51 = vmul.f32 %v4225_v34, %v993_v50 }
 0x7f4   : > { %997 = vrot.lane.b32.xlu0 %v989_v49, %s4451_s24 }
 0x7f5   : > { %v1001_v52 = vrot.slane %v4708_v51, 3 }
 0x7f7   : > { %1002 = vrot.lane.b32.xlu1 %v1001_v52, %s4452_s25 }
 0x7f8   : > { %1008 = vrot.lane.b32.xlu0 %v1007_v53, %s4453_s26 }
 0x866   : > { %v998_v54 = vpop.permute.xlu0 %997 }
 0x867   : > { %1013 = vst.msk [vmem:[#allocation2] sm:$0x4] %vm1012_vm4, %v998_v54 }
 0x869   : > { %v1003_v55 = vpop.permute.xlu1 %1002 }
 0x86a   : > { %v1005_v57 = vsel %vm643_vm1, %v998_v54, %v1003_v55 }
 0x86b   : > { %v1019_v58 = vpack.c.bf16 %v1005_v57, %v1005_v57 }
 0x86d   : > { %v1029_v59 = vrot.slane %v1019_v58, 1 }
 0x86f   : > { %3886 = vmatmul.mubr.msk.bf16.vlgmr.msra.gmra.mrb[8].mxu0 %vm444_vm0, %v1029_v59 }
 0x870   : > { %1437 = vmatpush1.bf16.msra.mxu0 %v4544_v4  ;;  %1468 = vmatprep.mubr.bf16.mxu0 %v4450_v2 }
 0x871   : > { %1438 = vmatprep.subr.bf16.mxu0 %v4554_v6 }
 0x874   : > { %1439 = vmatpush1.bf16.msra.mxu0 %v4566_v8  ;;  %v1009_v8 = vpop.permute.xlu0 %1008 }
 0x875   : > { %1440 = vmatprep.subr.bf16.mxu0 %v4575_v10 }
 0x878   : > { %1441 = vmatpush1.bf16.msra.mxu0 %v4583_v12  ;;  %v1011_v12 = vsel %vm643_vm1, %v968_v43, %v1009_v8 }
 0x879   : > { %1442 = vmatprep.subr.bf16.mxu0 %v4594_v14  ;;  %v1150_v14 = vrot.slane %v1011_v12, 6  ;;  %v1137_v27 = vrot.slane %v1011_v12, 7 }
 0x87c   : > { %1443 = vmatpush1.bf16.msra.mxu0 %v4602_v16 }
 0x942   : > { %v1107_v60 = vpop.f32.mrb[8].mxu0 }
 0x943   : > { %v1115_v62 = vrot.slane %v1107_v60, 5  ;;  %v1109_v63 = vpop.f32.mrb[9].mxu0 }
 0x944   : > { %v1119_v0 = vrot.slane %v1109_v63, 4  ;;  %v1111_v3 = vpop.f32.mrb[10].mxu0 }
 0x945   : > { %v1117_v4 = vadd.f32 %v1115_v62, %v4641_v29  ;;  %v1112_v5 = vpop.f32.mrb[11].mxu0 }
 0x946   : > { %v1121_v6 = vadd.f32 %v1119_v0, %v4643_v30 }
 0x947   : > { %4230 = vtanh.f32 %v1117_v4  ;;  %v3887_v16 = vmul.f32 -1.442695, %v1117_v4 }
 0x948   : > { %4232 = vtanh.f32 %v1121_v6  ;;  %v3888_v9 = vmul.f32 -1.442695, %v1121_v6 }
 0x949   : > { %4234 = vpow2.f32 %v3887_v16 }
 0x94a   : > { %4236 = vpow2.f32 %v3888_v9 }
 0x951   : > { %v4231_v10 = vpop.eup %4230 }
 0x952   : > { %v4233_v7 = vpop.eup %4232  ;;  %1141 = vrot.lane.b32.xlu0 %v4231_v10, %s4451_s24 }
 0x953   : > { %1156 = vrot.lane.b32.xlu1 %v4233_v7, %s4451_s24  ;;  %v4235_v11 = vpop.eup %4234 }
 0x954   : > { %v4237_v13 = vpop.eup %4236  ;;  %v1125_v15 = vadd.f32 1.0, %v4235_v11 }
 0x955   : > { %v1131_v17 = vadd.f32 1.0, %v4237_v13 }
 0x956   : > { %4238 = vrcp.f32 %v1125_v15 }
 0x957   : > { %1151 = vrot.lane.b32.xlu1 %v1150_v14, %s4452_s25  ;;  %4240 = vrcp.f32 %v1131_v17 }
 0x960   : > { %v4239_v18 = vpop.eup %4238 }
 0x961   : > { %v4241_v22 = vpop.eup %4240  ;;  %v1139_v28 = vmul.f32 %v4239_v18, %v1137_v27 }
 0x9c4   : > { %v1142_v19 = vpop.permute.xlu0 %1141 }
 0x9c5   : > { %v1144_v23 = vmul.f32 %v4239_v18, %v1142_v19  ;;  %v1157_v24 = vpop.permute.xlu1 %1156 }
 0x9c6   : > { %v1159_v25 = vmul.f32 %v4241_v22, %v1157_v24 }
 0x9c7   : > { %1146 = vrot.lane.b32.xlu1 %v1144_v23, %s4452_s25 }
 0x9c8   : > { %1161 = vrot.lane.b32.xlu0 %v1159_v25, %s4452_s25 }
 0x9c9   : > { %v1152_v26 = vpop.permute.xlu1 %1151 }
 0x9ca   : > { %v1154_v1 = vmul.f32 %v4241_v22, %v1152_v26 }
 0xa39   : > { %v1147_v31 = vpop.permute.xlu1 %1146 }
 0xa3a   : > { %v1149_v32 = vadd.f32 %v1147_v31, %v1139_v28  ;;  %v1162_v33 = vpop.permute.xlu0 %1161 }
 0xa3b   : > { %v1164_v34 = vadd.f32 %v1162_v33, %v1154_v1 }
 0xa3c   : > { %4242 = vtanh.f32 %v1149_v32 }
 0xa3d   : > { %4244 = vtanh.f32 %v1164_v34  ;;  %v1188_v42 = vrot.slane %v1164_v34, 1 }
 0xa46   : > { %v4243_v35 = vpop.eup %4242 }
 0xa47   : > { %v4245_v36 = vpop.eup %4244  ;;  %1167 = vrot.lane.b32.xlu1 %v4243_v35, %s4451_s24 }
 0xa48   : > { %1173 = vrot.lane.b32.xlu0 %v4245_v36, %s4451_s24 }
 0xab9   : > { %v1168_v37 = vpop.permute.xlu1 %1167 }
 0xaba   : > { %v1170_v38 = vmul.f32 %v4239_v18, %v1168_v37  ;;  %v1174_v39 = vpop.permute.xlu0 %1173 }
 0xabb   : > { %v4735_v40 = vmul.f32 %v4241_v22, %v1174_v39 }
 0xabc   : > { %1178 = vrot.lane.b32.xlu0 %v1170_v38, %s4451_s24 }
 0xabd   : > { %v1182_v41 = vrot.slane %v4735_v40, 1 }
 0xabf   : > { %1183 = vrot.lane.b32.xlu1 %v1182_v41, %s4452_s25 }
 0xac0   : > { %1189 = vrot.lane.b32.xlu0 %v1188_v42, %s4453_s26 }
 0xb2e   : > { %v1179_v43 = vpop.permute.xlu0 %1178 }
 0xb2f   : > { %1194 = vst.msk [vmem:[#allocation2] sm:$0x8] %vm1193_vm5, %v1179_v43 }
 0xb31   : > { %v1184_v44 = vpop.permute.xlu1 %1183 }
 0xb32   : > { %v1186_v45 = vsel %vm643_vm1, %v1179_v43, %v1184_v44  ;;  %v1190_v62 = vpop.permute.xlu0 %1189 }
 0xb33   : > { %v1200_v46 = vpack.c.bf16 %v1186_v45, %v1186_v45  ;;  %v1192_v63 = vsel %vm643_vm1, %v1149_v32, %v1190_v62 }
 0xb34   : > { %v1320_v13 = vrot.slane %v1192_v63, 7 }
 0xb35   : > { %v1210_v47 = vshrl.u32 %v1200_v46, 16 }
 0xb37   : > { %v1212_v48 = vrot.slane %v1210_v47, 1 }
 0xb39   : > { %3897 = vmatmul.mubr.msk.bf16.vlgmr.msra.gmra.mrb[8].mxu1 %vm444_vm0, %v1212_v48 }
 0xb3a   : > { %1651 = vmatprep.mubr.bf16.mxu1 %v4450_v2 }
 0xc0c   : > { %v1290_v49 = vpop.f32.mrb[8].mxu1 }
 0xc0d   : > { %v1298_v50 = vrot.slane %v1290_v49, 4  ;;  %v1292_v52 = vpop.f32.mrb[9].mxu1 }
 0xc0e   : > { %v1302_v53 = vrot.slane %v1292_v52, 5  ;;  %v1294_v54 = vpop.f32.mrb[10].mxu1 }
 0xc0f   : > { %v1300_v55 = vadd.f32 %v1298_v50, %v4641_v29  ;;  %v1295_v57 = vpop.f32.mrb[11].mxu1 }
 0xc10   : > { %v1304_v58 = vadd.f32 %v1302_v53, %v4643_v30 }
 0xc11   : > { %4246 = vtanh.f32 %v1300_v55  ;;  %v3898_v0 = vmul.f32 -1.442695, %v1300_v55 }
 0xc12   : > { %4248 = vtanh.f32 %v1304_v58  ;;  %v3899_v3 = vmul.f32 -1.442695, %v1304_v58 }
 0xc13   : > { %4250 = vpow2.f32 %v3898_v0 }
 0xc14   : > { %4252 = vpow2.f32 %v3899_v3 }
 0xc1b   : > { %v4247_v59 = vpop.eup %4246 }
 0xc1c   : > { %v4249_v60 = vpop.eup %4248  ;;  %1324 = vrot.lane.b32.xlu0 %v4247_v59, %s4451_s24 }
 0xc1d   : > { %1338 = vrot.lane.b32.xlu1 %v4249_v60, %s4451_s24  ;;  %v4251_v4 = vpop.eup %4250 }
 0xc1e   : > { %v4253_v5 = vpop.eup %4252  ;;  %v1308_v6 = vadd.f32 1.0, %v4251_v4 }
 0xc1f   : > { %v1314_v8 = vadd.f32 1.0, %v4253_v5 }
 0xc20   : > { %4254 = vrcp.f32 %v1308_v6 }
 0xc21   : > { %1333 = vrot.lane.b32.xlu1 %v1192_v63, %s4452_s25  ;;  %4256 = vrcp.f32 %v1314_v8 }
 0xc2a   : > { %v4255_v10 = vpop.eup %4254 }
 0xc2b   : > { %v4257_v12 = vpop.eup %4256  ;;  %v1322_v15 = vmul.f32 %v4255_v10, %v1320_v13  ;;  %v4123_v13 = vld [vmem:[%s5291_s2 + $0x14] ss:$8 sps:$4 sm:$0xff]  }
 0xc8e   : > { %v1325_v7 = vpop.permute.xlu0 %1324 }
 0xc8f   : > { %v1327_v14 = vmul.f32 %v4255_v10, %v1325_v7  ;;  %v1339_v16 = vpop.permute.xlu1 %1338 }
 0xc90   : > { %v1341_v9 = vmul.f32 %v4257_v12, %v1339_v16 }
 0xc91   : > { %1329 = vrot.lane.b32.xlu1 %v1327_v14, %s4452_s25 }
 0xc92   : > { %1343 = vrot.lane.b32.xlu0 %v1341_v9, %s4452_s25  ;;  %v4118_v9 = vld [vmem:[%s5291_s2] ss:$8 sps:$4 sm:$0xff]  }
 0xc93   : > { %v1334_v11 = vpop.permute.xlu1 %1333 }
 0xc94   : > { %v1336_v17 = vmul.f32 %v4257_v12, %v1334_v11  ;;  %v4120_v11 = vld [vmem:[%s5291_s2 + $0x4] ss:$8 sps:$4 sm:$0xff]  }
 0xc95   : > { %1619 = vmatprep.subr.bf16.mxu1 %v4120_v11  ;;  %1800 = vmatprep.subr.bf16.mxu0 %v4120_v11 }
 0xc96   : > { %1620 = vmatpush1.bf16.msra.mxu1 %v4118_v9 }
 0xc97   : > { %1621 = vmatprep.subr.bf16.mxu1 %v4123_v13 }
 0xd03   : > { %v1330_v18 = vpop.permute.xlu1 %1329 }
 0xd04   : > { %v1332_v19 = vadd.f32 %v1330_v18, %v1322_v15  ;;  %v1344_v22 = vpop.permute.xlu0 %1343  ;;  %v4121_v15 = vld [vmem:[%s5291_s2 + $0x10] ss:$8 sps:$4 sm:$0xff]  }
 0xd05   : > { %v1346_v23 = vadd.f32 %v1344_v22, %v1336_v17  ;;  %1622 = vmatpush1.bf16.msra.mxu1 %v4121_v15  ;;  %v4126_v22 = vld [vmem:[%s5291_s2 + $0x24] ss:$8 sps:$4 sm:$0xff]  }
 0xd06   : > { %4258 = vtanh.f32 %v1332_v19  ;;  %1623 = vmatprep.subr.bf16.mxu1 %v4126_v22 }
 0xd07   : > { %4260 = vtanh.f32 %v1346_v23  ;;  %v1370_v32 = vrot.slane %v1346_v23, 7  ;;  %v4129_v23 = vld [vmem:[%s5291_s2 + $0x34] ss:$8 sps:$4 sm:$0xff]  }
 0xd10   : > { %v4259_v24 = vpop.eup %4258 }
 0xd11   : > { %v4261_v25 = vpop.eup %4260  ;;  %1349 = vrot.lane.b32.xlu1 %v4259_v24, %s4451_s24  ;;  %v4127_v24 = vld [vmem:[%s5291_s2 + $0x30] ss:$8 sps:$4 sm:$0xff]  }
 0xd12   : > { %1355 = vrot.lane.b32.xlu0 %v4261_v25, %s4451_s24 }
 0xd83   : > { %v1350_v26 = vpop.permute.xlu1 %1349 }
 0xd84   : > { %v1352_v27 = vmul.f32 %v4255_v10, %v1350_v26  ;;  %v1356_v28 = vpop.permute.xlu0 %1355 }
 0xd85   : > { %v4755_v1 = vmul.f32 %v4257_v12, %v1356_v28 }
 0xd86   : > { %1360 = vrot.lane.b32.xlu0 %v1352_v27, %s4451_s24 }
 0xd87   : > { %v1364_v31 = vrot.slane %v4755_v1, 7 }
 0xd89   : > { %1365 = vrot.lane.b32.xlu1 %v1364_v31, %s4452_s25 }
 0xd8a   : > { %1371 = vrot.lane.b32.xlu0 %v1370_v32, %s4453_s26 }
 0xdf8   : > { %v4761_v33 = vpop.permute.xlu0 %1360 }
 0xdfb   : > { %v1366_v34 = vpop.permute.xlu1 %1365 }
 0xdfc   : > { %v1368_v35 = vsel %vm643_vm1, %v4761_v33, %v1366_v34  ;;  %v1372_v47 = vpop.permute.xlu0 %1371 }
 0xdfd   : > { %v1382_v36 = vpack.c.bf16 %v1368_v35, %v1368_v35  ;;  %v1374_v50 = vsel %vm643_vm1, %v1332_v19, %v1372_v47  ;;  %v4124_v19 = vld [vmem:[%s5291_s2 + $0x20] ss:$8 sps:$4 sm:$0xff]  }
 0xdfe   : > { %v1513_v52 = vrot.slane %v1374_v50, 2  ;;  %v1500_v6 = vrot.slane %v1374_v50, 7  ;;  %1624 = vmatpush1.bf16.msra.mxu1 %v4124_v19 }
 0xdff   : > { %v1392_v37 = vrot.slane %v1382_v36, 2  ;;  %1625 = vmatprep.subr.bf16.mxu1 %v4129_v23 }
 0xe01   : > { %3908 = vmatmul.mubr.msk.bf16.vlgmr.msra.gmra.mrb[12].mxu0 %vm444_vm0, %v1392_v37 }
 0xe02   : > { %1832 = vmatprep.mubr.bf16.mxu0 %v4450_v2  ;;  %1801 = vmatpush1.bf16.msra.mxu0 %v4118_v9 }
 0xe03   : > { %1802 = vmatprep.subr.bf16.mxu0 %v4123_v13  ;;  %1626 = vmatpush1.bf16.msra.mxu1 %v4127_v24 }
 0xe06   : > { %1803 = vmatpush1.bf16.msra.mxu0 %v4121_v15 }
 0xe07   : > { %1804 = vmatprep.subr.bf16.mxu0 %v4126_v22 }
 0xe0a   : > { %1805 = vmatpush1.bf16.msra.mxu0 %v4124_v19 }
 0xe0b   : > { %1806 = vmatprep.subr.bf16.mxu0 %v4129_v23 }
 0xe0e   : > { %1807 = vmatpush1.bf16.msra.mxu0 %v4127_v24 }
 0xed4   : > { %v1470_v38 = vpop.f32.mrb[12].mxu0 }
 0xed5   : > { %v1478_v39 = vrot.slane %v1470_v38, 3  ;;  %v1472_v41 = vpop.f32.mrb[13].mxu0 }
 0xed6   : > { %v1482_v42 = vrot.slane %v1472_v41, 6  ;;  %v1474_v43 = vpop.f32.mrb[14].mxu0 }
 0xed7   : > { %v1480_v44 = vadd.f32 %v1478_v39, %v4641_v29  ;;  %v1475_v45 = vpop.f32.mrb[15].mxu0 }
 0xed8   : > { %v1484_v46 = vadd.f32 %v1482_v42, %v4643_v30 }
 0xed9   : > { %4262 = vtanh.f32 %v1480_v44  ;;  %v3909_v53 = vmul.f32 -1.442695, %v1480_v44 }
 0xeda   : > { %4264 = vtanh.f32 %v1484_v46  ;;  %v3910_v54 = vmul.f32 -1.442695, %v1484_v46 }
 0xedb   : > { %4266 = vpow2.f32 %v3909_v53 }
 0xedc   : > { %4268 = vpow2.f32 %v3910_v54 }
 0xee3   : > { %v4263_v48 = vpop.eup %4262 }
 0xee4   : > { %v4265_v49 = vpop.eup %4264  ;;  %1504 = vrot.lane.b32.xlu0 %v4263_v48, %s4451_s24 }
 0xee5   : > { %1519 = vrot.lane.b32.xlu1 %v4265_v49, %s4451_s24  ;;  %v4267_v55 = vpop.eup %4266 }
 0xee6   : > { %v4269_v57 = vpop.eup %4268  ;;  %v1488_v58 = vadd.f32 1.0, %v4267_v55 }
 0xee7   : > { %v1494_v59 = vadd.f32 1.0, %v4269_v57 }
 0xee8   : > { %4270 = vrcp.f32 %v1488_v58 }
 0xee9   : > { %1514 = vrot.lane.b32.xlu1 %v1513_v52, %s4452_s25  ;;  %4272 = vrcp.f32 %v1494_v59 }
 0xef2   : > { %v4271_v60 = vpop.eup %4270 }
 0xef3   : > { %v4273_v63 = vpop.eup %4272  ;;  %v1502_v8 = vmul.f32 %v4271_v60, %v1500_v6 }
 0xf56   : > { %v1505_v62 = vpop.permute.xlu0 %1504 }
 0xf57   : > { %v1507_v0 = vmul.f32 %v4271_v60, %v1505_v62  ;;  %v1520_v3 = vpop.permute.xlu1 %1519 }
 0xf58   : > { %v1522_v4 = vmul.f32 %v4273_v63, %v1520_v3 }
 0xf59   : > { %1509 = vrot.lane.b32.xlu1 %v1507_v0, %s4452_s25 }
 0xf5a   : > { %1524 = vrot.lane.b32.xlu0 %v1522_v4, %s4452_s25 }
 0xf5b   : > { %v1515_v5 = vpop.permute.xlu1 %1514 }
 0xf5c   : > { %v1517_v10 = vmul.f32 %v4273_v63, %v1515_v5 }
 0xfcb   : > { %v1510_v7 = vpop.permute.xlu1 %1509 }
 0xfcc   : > { %v4775_v12 = vadd.f32 %v1510_v7, %v1502_v8  ;;  %v1525_v14 = vpop.permute.xlu0 %1524 }
 0xfcd   : > { %v1527_v16 = vadd.f32 %v1525_v14, %v1517_v10 }
 0xfce   : > { %4274 = vtanh.f32 %v4775_v12 }
 0xfcf   : > { %4276 = vtanh.f32 %v1527_v16  ;;  %v1551_v32 = vrot.slane %v1527_v16, 5 }
 0xfd8   : > { %v4275_v17 = vpop.eup %4274 }
 0xfd9   : > { %v4277_v18 = vpop.eup %4276  ;;  %1530 = vrot.lane.b32.xlu1 %v4275_v17, %s4451_s24 }
 0xfda   : > { %1536 = vrot.lane.b32.xlu0 %v4277_v18, %s4451_s24 }
0x104b   : > { %v1531_v25 = vpop.permute.xlu1 %1530 }
0x104c   : > { %v1533_v26 = vmul.f32 %v4271_v60, %v1531_v25  ;;  %v1537_v27 = vpop.permute.xlu0 %1536 }
0x104d   : > { %v4804_v28 = vmul.f32 %v4273_v63, %v1537_v27 }
0x104e   : > { %1541 = vrot.lane.b32.xlu0 %v1533_v26, %s4451_s24 }
0x104f   : > { %v1545_v31 = vrot.slane %v4804_v28, 5 }
0x1051   : > { %1546 = vrot.lane.b32.xlu1 %v1545_v31, %s4452_s25 }
0x1052   : > { %1552 = vrot.lane.b32.xlu0 %v1551_v32, %s4453_s26 }
0x10c0   : > { %v4810_v34 = vpop.permute.xlu0 %1541 }
0x10c3   : > { %v1547_v35 = vpop.permute.xlu1 %1546 }
0x10c4   : > { %v1549_v36 = vsel %vm643_vm1, %v4810_v34, %v1547_v35  ;;  %v1553_v49 = vpop.permute.xlu0 %1552 }
0x10c5   : > { %v1563_v37 = vpack.c.bf16 %v1549_v36, %v1549_v36  ;;  %v1555_v53 = vsel %vm643_vm1, %v4775_v12, %v1553_v49 }
0x10c6   : > { %v1696_v54 = vrot.slane %v1555_v53, 4  ;;  %v1683_v10 = vrot.slane %v1555_v53, 7 }
0x10c7   : > { %v1573_v38 = vshrl.u32 %v1563_v37, 16 }
0x10c9   : > { %v1575_v39 = vrot.slane %v1573_v38, 2 }
0x10cb   : > { %3919 = vmatmul.mubr.msk.bf16.vlgmr.msra.gmra.mrb[12].mxu1 %vm444_vm0, %v1575_v39 }
0x10cc   : > { %2010 = vmatprep.mubr.bf16.mxu1 %v4450_v2 }
0x119e   : > { %v1653_v41 = vpop.f32.mrb[12].mxu1 }
0x119f   : > { %v1661_v42 = vrot.slane %v1653_v41, 2  ;;  %v1655_v43 = vpop.f32.mrb[13].mxu1 }
0x11a0   : > { %v1665_v44 = vrot.slane %v1655_v43, 7  ;;  %v1657_v45 = vpop.f32.mrb[14].mxu1 }
0x11a1   : > { %v1663_v46 = vadd.f32 %v1661_v42, %v4641_v29  ;;  %v1658_v47 = vpop.f32.mrb[15].mxu1 }
0x11a2   : > { %v1667_v48 = vadd.f32 %v1665_v44, %v4643_v30 }
0x11a3   : > { %4278 = vtanh.f32 %v1663_v46  ;;  %v3920_v55 = vmul.f32 -1.442695, %v1663_v46 }
0x11a4   : > { %4280 = vtanh.f32 %v1667_v48  ;;  %v3921_v57 = vmul.f32 -1.442695, %v1667_v48 }
0x11a5   : > { %4282 = vpow2.f32 %v3920_v55 }
0x11a6   : > { %4284 = vpow2.f32 %v3921_v57 }
0x11ad   : > { %v4279_v50 = vpop.eup %4278 }
0x11ae   : > { %v4281_v52 = vpop.eup %4280  ;;  %1687 = vrot.lane.b32.xlu0 %v4279_v50, %s4451_s24 }
0x11af   : > { %1702 = vrot.lane.b32.xlu1 %v4281_v52, %s4451_s24  ;;  %v4283_v58 = vpop.eup %4282 }
0x11b0   : > { %v4285_v59 = vpop.eup %4284  ;;  %v1671_v60 = vadd.f32 1.0, %v4283_v58 }
0x11b1   : > { %v1677_v62 = vadd.f32 1.0, %v4285_v59 }
0x11b2   : > { %4286 = vrcp.f32 %v1671_v60 }
0x11b3   : > { %1697 = vrot.lane.b32.xlu1 %v1696_v54, %s4452_s25  ;;  %4288 = vrcp.f32 %v1677_v62 }
0x11bc   : > { %v4287_v63 = vpop.eup %4286 }
0x11bd   : > { %v4289_v3 = vpop.eup %4288  ;;  %v1685_v7 = vmul.f32 %v4287_v63, %v1683_v10 }
0x1220   : > { %v1688_v0 = vpop.permute.xlu0 %1687 }
0x1221   : > { %v1690_v4 = vmul.f32 %v4287_v63, %v1688_v0  ;;  %v1703_v5 = vpop.permute.xlu1 %1702 }
0x1222   : > { %v1705_v6 = vmul.f32 %v4289_v3, %v1703_v5 }
0x1223   : > { %1692 = vrot.lane.b32.xlu1 %v1690_v4, %s4452_s25 }
0x1224   : > { %1707 = vrot.lane.b32.xlu0 %v1705_v6, %s4452_s25 }
0x1225   : > { %v1698_v8 = vpop.permute.xlu1 %1697 }
0x1226   : > { %v1700_v12 = vmul.f32 %v4289_v3, %v1698_v8 }
0x1295   : > { %v1693_v14 = vpop.permute.xlu1 %1692 }
0x1296   : > { %v1695_v16 = vadd.f32 %v1693_v14, %v1685_v7  ;;  %v1708_v9 = vpop.permute.xlu0 %1707  ;;  %v4862_v7 = vld [vmem:[%s5294_s5] ss:$8 sps:$4 sm:$0xff]  }
0x1297   : > { %v1710_v11 = vadd.f32 %v1708_v9, %v1700_v12  ;;  %v4867_v12 = vld [vmem:[%s5294_s5 + $0x4] ss:$8 sps:$4 sm:$0xff]   ;;  %v4133_v14 = vld [vmem:[%s5293_s4] ss:$8 sps:$4 sm:$0xff]   ;;  %v4141_v9 = vld [vmem:[%s5293_s4 + $0x14] ss:$8 sps:$4 sm:$0xff]  }
0x1298   : > { %4290 = vtanh.f32 %v1695_v16  ;;  %2067 = vmatprep.subr.bf16.mxu0 %v4867_v12 }
0x1299   : > { %4292 = vtanh.f32 %v1710_v11  ;;  %v1734_v24 = vrot.slane %v1710_v11, 3  ;;  %v4139_v11 = vld [vmem:[%s5293_s4 + $0x10] ss:$8 sps:$4 sm:$0xff]  }
0x12a2   : > { %v4291_v13 = vpop.eup %4290 }
0x12a3   : > { %v4293_v15 = vpop.eup %4292  ;;  %1713 = vrot.lane.b32.xlu1 %v4291_v13, %s4451_s24  ;;  %v4928_v13 = vld [vmem:[%s5294_s5 + $0x34] ss:$8 sps:$4 sm:$0xff]  }
0x12a4   : > { %1719 = vrot.lane.b32.xlu0 %v4293_v15, %s4451_s24  ;;  %v4933_v15 = vld [vmem:[%s5294_s5 + $0x30] ss:$8 sps:$4 sm:$0xff]  }
0x1315   : > { %v1714_v17 = vpop.permute.xlu1 %1713 }
0x1316   : > { %v1716_v18 = vmul.f32 %v4287_v63, %v1714_v17  ;;  %v1720_v19 = vpop.permute.xlu0 %1719  ;;  %v4153_v17 = vld [vmem:[%s5293_s4 + $0x34] ss:$8 sps:$4 sm:$0xff]  }
0x1317   : > { %v4827_v22 = vmul.f32 %v4289_v3, %v1720_v19 }
0x1318   : > { %1724 = vrot.lane.b32.xlu0 %v1716_v18, %s4451_s24  ;;  %v4151_v18 = vld [vmem:[%s5293_s4 + $0x30] ss:$8 sps:$4 sm:$0xff]  }
0x1319   : > { %v1728_v23 = vrot.slane %v4827_v22, 3 }
0x131b   : > { %1729 = vrot.lane.b32.xlu1 %v1728_v23, %s4452_s25 }
0x131c   : > { %1735 = vrot.lane.b32.xlu0 %v1734_v24, %s4453_s26 }
0x138a   : > { %v4833_v25 = vpop.permute.xlu0 %1724 }
0x138d   : > { %v1730_v26 = vpop.permute.xlu1 %1729 }
0x138e   : > { %v1732_v27 = vsel %vm643_vm1, %v4833_v25, %v1730_v26  ;;  %v1736_v43 = vpop.permute.xlu0 %1735 }
0x138f   : > { %v1746_v31 = vpack.c.bf16 %v1732_v27, %v1732_v27  ;;  %v1738_v46 = vsel %vm643_vm1, %v1695_v16, %v1736_v43  ;;  %v4880_v16 = vld [vmem:[%s5294_s5 + $0x14] ss:$8 sps:$4 sm:$0xff]  }
0x1390   : > { %v1874_v47 = vrot.slane %v1738_v46, 6  ;;  %v1861_v62 = vrot.slane %v1738_v46, 7 }
0x1391   : > { %v1756_v32 = vrot.slane %v1746_v31, 3 }
0x1393   : > { %3930 = vmatmul.mubr.msk.bf16.vlgmr.msra.gmra.mrb[16].mxu0 %vm444_vm0, %v1756_v32 }
0x1394   : > { %2099 = vmatprep.mubr.bf16.mxu0 %v4450_v2  ;;  %2068 = vmatpush1.bf16.msra.mxu0 %v4862_v7 }
0x1395   : > { %2069 = vmatprep.subr.bf16.mxu0 %v4880_v16 }
0x1466   : > { %v1834_v35 = vpop.f32.mrb[16].mxu0 }
0x1467   : > { %v1842_v36 = vrot.slane %v1834_v35, 1  ;;  %v1836_v37 = vpop.f32.mrb[17].mxu0 }
0x1468   : > { %v1845_v38 = vadd.f32 %v1836_v37, %v4643_v30  ;;  %v1838_v39 = vpop.f32.mrb[18].mxu0 }
0x1469   : > { %v1844_v41 = vadd.f32 %v1842_v36, %v4641_v29  ;;  %v1839_v42 = vpop.f32.mrb[19].mxu0 }
0x146a   : > { %4294 = vtanh.f32 %v1845_v38  ;;  %v3932_v48 = vmul.f32 -1.442695, %v1845_v38 }
0x146b   : > { %4296 = vtanh.f32 %v1844_v41  ;;  %v3931_v30 = vmul.f32 -1.442695, %v1844_v41 }
0x146c   : > { %4298 = vpow2.f32 %v3932_v48 }
0x146d   : > { %4300 = vpow2.f32 %v3931_v30 }
0x1474   : > { %v4295_v44 = vpop.eup %4294 }
0x1475   : > { %v4297_v45 = vpop.eup %4296  ;;  %1880 = vrot.lane.b32.xlu0 %v4295_v44, %s4451_s24  ;;  %v1923_v44 = vld [vmem:[%s5295_s6] sm:$0x3] }
0x1476   : > { %1865 = vrot.lane.b32.xlu1 %v4297_v45, %s4451_s24  ;;  %v4299_v29 = vpop.eup %4298  ;;  %v1928_v45 = vrot.slane %v1923_v44, %v4632_v20  ;;  %v1932_v46 = vrot.slane %v1923_v44, %v4634_v21 }
0x1477   : > { %v4301_v49 = vpop.eup %4300  ;;  %v1855_v50 = vadd.f32 1.0, %v4299_v29 }
0x1478   : > { %v1849_v52 = vadd.f32 1.0, %v4301_v49 }
0x1479   : > { %4302 = vrcp.f32 %v1855_v50 }
0x147a   : > { %1875 = vrot.lane.b32.xlu1 %v1874_v47, %s4452_s25  ;;  %4304 = vrcp.f32 %v1849_v52 }
0x1483   : > { %v4845_v53 = vpop.eup %4302 }
0x1484   : > { %v4847_v55 = vpop.eup %4304 }
0x1485   : > { %v1863_v3 = vmul.f32 %v4847_v55, %v1861_v62 }
0x14e7   : > { %v1881_v54 = vpop.permute.xlu0 %1880 }
0x14e8   : > { %v1883_v57 = vmul.f32 %v4845_v53, %v1881_v54  ;;  %v1866_v58 = vpop.permute.xlu1 %1865 }
0x14e9   : > { %v1868_v59 = vmul.f32 %v4847_v55, %v1866_v58 }
0x14ea   : > { %1885 = vrot.lane.b32.xlu1 %v1883_v57, %s4452_s25 }
0x14eb   : > { %1870 = vrot.lane.b32.xlu0 %v1868_v59, %s4452_s25 }
0x14ec   : > { %v1876_v60 = vpop.permute.xlu1 %1875 }
0x14ed   : > { %v1878_v63 = vmul.f32 %v4845_v53, %v1876_v60 }
0x155c   : > { %v1886_v0 = vpop.permute.xlu1 %1885 }
0x155d   : > { %v1888_v4 = vadd.f32 %v1886_v0, %v1878_v63  ;;  %v1871_v5 = vpop.permute.xlu0 %1870 }
0x155e   : > { %v1873_v6 = vadd.f32 %v1871_v5, %v1863_v3 }
0x155f   : > { %4306 = vtanh.f32 %v1888_v4 }
0x1560   : > { %4308 = vtanh.f32 %v1873_v6 }
0x1569   : > { %v4307_v8 = vpop.eup %4306 }
0x156a   : > { %v4309_v10 = vpop.eup %4308  ;;  %1897 = vrot.lane.b32.xlu1 %v4307_v8, %s4451_s24 }
0x156b   : > { %1891 = vrot.lane.b32.xlu0 %v4309_v10, %s4451_s24 }
0x156e   : > { %832 = vrot.lane.b32.xlu1 %v4681_v56, %s4452_s25  ;;  %v4135_v56 = vld [vmem:[%s5293_s4 + $0x4] ss:$8 sps:$4 sm:$0xff]  }
0x156f   : > { %653 = vrot.lane.b32.xlu0 %v4653_v61, %s4452_s25  ;;  %1978 = vmatprep.subr.bf16.mxu1 %v4135_v56  ;;  %v4890_v61 = vld [vmem:[%s5294_s5 + $0x10] ss:$8 sps:$4 sm:$0xff]  }
0x1570   : > { %1979 = vmatpush1.bf16.msra.mxu1 %v4133_v14  ;;  %2070 = vmatpush1.bf16.msra.mxu0 %v4890_v61 }
0x1571   : > { %1980 = vmatprep.subr.bf16.mxu1 %v4141_v9 }
0x1572   : > { %1195 = vrot.lane.b32.xlu1 %v4735_v40, %s4452_s25  ;;  %v4910_v40 = vld [vmem:[%s5294_s5 + $0x24] ss:$8 sps:$4 sm:$0xff]  }
0x1573   : > { %1014 = vrot.lane.b32.xlu0 %v4708_v51, %s4452_s25  ;;  %v4915_v51 = vld [vmem:[%s5294_s5 + $0x20] ss:$8 sps:$4 sm:$0xff]   ;;  %2071 = vmatprep.subr.bf16.mxu0 %v4910_v40 }
0x1574   : > { %1981 = vmatpush1.bf16.msra.mxu1 %v4139_v11  ;;  %2072 = vmatpush1.bf16.msra.mxu0 %v4915_v51 }
0x1575   : > { %2073 = vmatprep.subr.bf16.mxu0 %v4928_v13 }
0x1576   : > { %1558 = vrot.lane.b32.xlu1 %v4804_v28, %s4452_s25  ;;  %v4145_v28 = vld [vmem:[%s5293_s4 + $0x20] ss:$8 sps:$4 sm:$0xff]  }
0x1577   : > { %1377 = vrot.lane.b32.xlu0 %v4755_v1, %s4452_s25  ;;  %v4147_v1 = vld [vmem:[%s5293_s4 + $0x24] ss:$8 sps:$4 sm:$0xff]  }
0x1578   : > { %1982 = vmatprep.subr.bf16.mxu1 %v4147_v1  ;;  %2074 = vmatpush1.bf16.msra.mxu0 %v4933_v15 }
0x1579   : > { %1983 = vmatpush1.bf16.msra.mxu1 %v4145_v28  ;;  %2414 = vmatprep.subr.bf16.mxu0 %v4867_v12 }
0x157a   : > { %1984 = vmatprep.subr.bf16.mxu1 %v4153_v17 }
0x157b   : > { %1741 = vrot.lane.b32.xlu0 %v4827_v22, %s4452_s25  ;;  %2100 = vmatmul.mubr.bf16.vlgmr.msra.gmra.mrb[20].mxu0 %v4450_v2 }
0x157c   : > { %2415 = vmatpush1.bf16.msra.mxu0 %v4862_v7  ;;  %2446 = vmatprep.mubr.bf16.mxu0 %v4450_v2 }
0x157d   : > { %1985 = vmatpush1.bf16.msra.mxu1 %v4151_v18  ;;  %2416 = vmatprep.subr.bf16.mxu0 %v4880_v16 }
0x157e   : > { %2234 = vmatprep.subr.bf16.mxu1 %v4867_v12 }
0x1580   : > { %2417 = vmatpush1.bf16.msra.mxu0 %v4890_v61 }
0x1581   : > { %2418 = vmatprep.subr.bf16.mxu0 %v4910_v40 }
0x1584   : > { %2419 = vmatpush1.bf16.msra.mxu0 %v4915_v51 }
0x1585   : > { %2420 = vmatprep.subr.bf16.mxu0 %v4928_v13 }
0x1588   : > { %2421 = vmatpush1.bf16.msra.mxu0 %v4933_v15 }
0x1589   : > { %2774 = vmatprep.subr.bf16.mxu0 %v4867_v12 }
0x15dc   : > { %v1898_v19 = vpop.permute.xlu1 %1897 }
0x15dd   : > { %v1900_v22 = vmul.f32 %v4845_v53, %v1898_v19  ;;  %v1892_v23 = vpop.permute.xlu0 %1891 }
0x15de   : > { %v1894_v24 = vmul.f32 %v4847_v55, %v1892_v23 }
0x15df   : > { %1908 = vrot.lane.b32.xlu0 %v1900_v22, %s4452_s25 }
0x15e0   : > { %1902 = vrot.lane.b32.xlu1 %v1894_v24, %s4451_s24  ;;  %v833_v26 = vpop.permute.xlu1 %832 }
0x15e1   : > { %836 = vst.msk [vmem:[#allocation2] sm:$0x40] %vm835_vm6, %v833_v26  ;;  %v654_v27 = vpop.permute.xlu0 %653 }
0x15e2   : > { %1740 = vst.msk [vmem:[#allocation2] sm:$0x40] %vm1739_vm7, %v4833_v25 }
0x15e3   : > { %657 = vst.msk [vmem:[#allocation2] sm:$0x80] %vm656_vm8, %v654_v27 }
0x15e4   : > { %v1196_v31 = vpop.permute.xlu1 %1195 }
0x15e5   : > { %1199 = vst.msk [vmem:[#allocation2] sm:$0x10] %vm1198_vm9, %v1196_v31  ;;  %v1015_v32 = vpop.permute.xlu0 %1014 }
0x15e6   : > { %1376 = vst.msk [vmem:[#allocation2] sm:$0x10] %vm5302_vm10, %v4761_v33  ;;  %vm1905_vm10 = vcmask 261127  }
0x15e7   : > { %1018 = vst.msk [vmem:[#allocation2] sm:$0x20] %vm5301_vm11, %v1015_v32  ;;  %vm1911_vm11 = vcmask 516352  }
0x15e8   : > { %1557 = vst.msk [vmem:[#allocation2] sm:$0x20] %vm1556_vm12, %v4810_v34  ;;  %v1559_v25 = vpop.permute.xlu1 %1558 }
0x15e9   : > { %1562 = vst.msk [vmem:[#allocation2] sm:$0x4] %vm1561_vm13, %v1559_v25  ;;  %v1378_v35 = vpop.permute.xlu0 %1377 }
0x15ea   : > { %1381 = vst.msk [vmem:[#allocation2] sm:$0x8] %vm1380_vm14, %v1378_v35 }
0x15ed   : > { %v1742_v36 = vpop.permute.xlu0 %1741 }
0x15ee   : > { %1745 = vst.msk [vmem:[#allocation2] sm:$0x2] %vm1744_vm15, %v1742_v36 }
0x164e   : > { %v2101_v39 = vpop.f32.mrb[20].mxu0 }
0x164f   : > { %v2103_v41 = vpop.f32.mrb[21].mxu0 }
0x1650   : > { %v2105_v42 = vpop.f32.mrb[22].mxu0  ;;  %v2110_v47 = vrot.slane %v2103_v41, 1 }
0x1651   : > { %v1909_v33 = vpop.permute.xlu0 %1908  ;;  %v2106_v43 = vpop.f32.mrb[23].mxu0 }
0x1652   : > { %1912 = vst.msk [vmem:[#allocation2] sm:$0x1] %vm1911_vm11, %v1909_v33  ;;  %v1903_v34 = vpop.permute.xlu1 %1902 }
0x1653   : > { %1906 = vst.msk [vmem:[#allocation2] sm:$0x80] %vm1905_vm10, %v1903_v34 }
0x165a   : > { %v1913_v37 = vld [vmem:[#allocation2] sm:$0xff] }
0x165b   : > { %v1914_v38 = vpack.c.bf16 %v1913_v37, %v1913_v37 }
0x165d   : > { %3941 = vmatmul.mubr.msk.bf16.vlgmr.msra.gmra.mrb[16].mxu1 %vm444_vm0, %v1914_v38 }
0x165e   : > { %2235 = vmatpush1.bf16.msra.mxu1 %v4862_v7  ;;  %2266 = vmatprep.mubr.bf16.mxu1 %v4450_v2 }
0x165f   : > { %2236 = vmatprep.subr.bf16.mxu1 %v4880_v16 }
0x1662   : > { %2237 = vmatpush1.bf16.msra.mxu1 %v4890_v61 }
0x1663   : > { %2238 = vmatprep.subr.bf16.mxu1 %v4910_v40 }
0x1666   : > { %2239 = vmatpush1.bf16.msra.mxu1 %v4915_v51 }
0x1667   : > { %2240 = vmatprep.subr.bf16.mxu1 %v4928_v13 }
0x166a   : > { %2241 = vmatpush1.bf16.msra.mxu1 %v4933_v15 }
0x166b   : > { %2593 = vmatprep.subr.bf16.mxu1 %v4867_v12 }
0x1730   : > { %v2012_v48 = vpop.f32.mrb[16].mxu1 }
0x1731   : > { %v4989_v30 = vadd.f32 %v2012_v48, %v1928_v45  ;;  %v2014_v29 = vpop.f32.mrb[17].mxu1 }
0x1732   : > { %v4991_v49 = vadd.f32 %v2014_v29, %v1932_v46  ;;  %v2016_v50 = vpop.f32.mrb[18].mxu1 }
0x1733   : > { %v2017_v52 = vpop.f32.mrb[19].mxu1  ;;  %v2108_v53 = vadd.f32 %v2101_v39, %v4989_v30 }
0x1734   : > { %v2112_v54 = vadd.f32 %v2110_v47, %v4991_v49 }
0x1735   : > { %4310 = vtanh.f32 %v2108_v53  ;;  %v3950_v58 = vmul.f32 -1.442695, %v2108_v53 }
0x1736   : > { %4312 = vtanh.f32 %v2112_v54  ;;  %v3951_v59 = vmul.f32 -1.442695, %v2112_v54 }
0x1737   : > { %4314 = vpow2.f32 %v3950_v58 }
0x1738   : > { %4316 = vpow2.f32 %v3951_v59 }
0x173f   : > { %v4311_v55 = vpop.eup %4310 }
0x1740   : > { %v4313_v57 = vpop.eup %4312  ;;  %2129 = vrot.lane.b32.xlu0 %v4311_v55, %s4451_s24 }
0x1741   : > { %2140 = vrot.lane.b32.xlu1 %v4313_v57, %s4451_s24  ;;  %v4315_v60 = vpop.eup %4314 }
0x1742   : > { %v4317_v62 = vpop.eup %4316  ;;  %v2116_v63 = vadd.f32 1.0, %v4315_v60 }
0x1743   : > { %v2122_v0 = vadd.f32 1.0, %v4317_v62 }
0x1744   : > { %4318 = vrcp.f32 %v2116_v63 }
0x1745   : > { %4320 = vrcp.f32 %v2122_v0 }
0x174e   : > { %v4319_v3 = vpop.eup %4318 }
0x174f   : > { %v4321_v5 = vpop.eup %4320  ;;  %v2127_v14 = vmul.f32 0.0, %v4319_v3 }
0x1750   : > { %v2138_v9 = vmul.f32 0.0, %v4321_v5 }
0x17b2   : > { %v2130_v4 = vpop.permute.xlu0 %2129 }
0x17b3   : > { %v2132_v6 = vmul.f32 %v4319_v3, %v2130_v4  ;;  %v2141_v8 = vpop.permute.xlu1 %2140 }
0x17b4   : > { %v2143_v10 = vmul.f32 %v4321_v5, %v2141_v8 }
0x17b5   : > { %2134 = vrot.lane.b32.xlu0 %v2132_v6, %s4452_s25 }
0x17b6   : > { %2145 = vrot.lane.b32.xlu1 %v2143_v10, %s4452_s25 }
0x1827   : > { %v2135_v56 = vpop.permute.xlu0 %2134 }
0x1828   : > { %v2137_v11 = vadd.f32 %v2135_v56, %v2127_v14  ;;  %v2146_v1 = vpop.permute.xlu1 %2145 }
0x1829   : > { %v2148_v28 = vadd.f32 %v2146_v1, %v2138_v9 }
0x182a   : > { %4322 = vtanh.f32 %v2137_v11 }
0x182b   : > { %4324 = vtanh.f32 %v2148_v28  ;;  %v2172_v27 = vrot.slane %v2148_v28, 7 }
0x1834   : > { %v4323_v17 = vpop.eup %4322 }
0x1835   : > { %v4325_v18 = vpop.eup %4324  ;;  %2151 = vrot.lane.b32.xlu0 %v4323_v17, %s4451_s24 }
0x1836   : > { %2157 = vrot.lane.b32.xlu1 %v4325_v18, %s4451_s24 }
0x18a7   : > { %v2152_v19 = vpop.permute.xlu0 %2151 }
0x18a8   : > { %v2154_v22 = vmul.f32 %v4319_v3, %v2152_v19  ;;  %v2158_v23 = vpop.permute.xlu1 %2157 }
0x18a9   : > { %v5001_v24 = vmul.f32 %v4321_v5, %v2158_v23 }
0x18aa   : > { %2162 = vrot.lane.b32.xlu1 %v2154_v22, %s4451_s24 }
0x18ab   : > { %v2166_v26 = vrot.slane %v5001_v24, 7 }
0x18ad   : > { %2167 = vrot.lane.b32.xlu0 %v2166_v26, %s4452_s25 }
0x18ae   : > { %2173 = vrot.lane.b32.xlu1 %v2172_v27, %s4453_s26 }
0x191c   : > { %v2163_v31 = vpop.permute.xlu1 %2162 }
0x191d   : > { %2177 = vst.msk [vmem:[#allocation2] sm:$0x1] %vm651_vm2, %v2163_v31  ;;  %vm5305_vm2 = vcmask 521477  }
0x191f   : > { %v2168_v32 = vpop.permute.xlu0 %2167 }
0x1920   : > { %v2170_v25 = vsel %vm643_vm1, %v2163_v31, %v2168_v32  ;;  %v2174_v43 = vpop.permute.xlu1 %2173 }
0x1921   : > { %v2182_v35 = vpack.c.bf16 %v2170_v25, %v2170_v25  ;;  %v2176_v46 = vsel %vm643_vm1, %v2137_v11, %v2174_v43 }
0x1922   : > { %v2298_v63 = vrot.slane %v2176_v46, 7 }
0x1923   : > { %3960 = vmatmul.mubr.msk.bf16.vlgmr.msra.gmra.mrb[20].mxu1 %vm444_vm0, %v2182_v35 }
0x1924   : > { %2594 = vmatpush1.bf16.msra.mxu1 %v4862_v7  ;;  %2625 = vmatprep.mubr.bf16.mxu1 %v4450_v2 }
0x1925   : > { %2595 = vmatprep.subr.bf16.mxu1 %v4880_v16 }
0x1928   : > { %2596 = vmatpush1.bf16.msra.mxu1 %v4890_v61 }
0x1929   : > { %2597 = vmatprep.subr.bf16.mxu1 %v4910_v40 }
0x192c   : > { %2598 = vmatpush1.bf16.msra.mxu1 %v4915_v51 }
0x192d   : > { %2599 = vmatprep.subr.bf16.mxu1 %v4928_v13 }
0x1930   : > { %2600 = vmatpush1.bf16.msra.mxu1 %v4933_v15 }
0x1931   : > { %2952 = vmatprep.subr.bf16.mxu1 %v4867_v12  ;;  %v2311_v12 = vrot.slane %v2176_v46, 2 }
0x19f6   : > { %v2268_v36 = vpop.f32.mrb[20].mxu1 }
0x19f7   : > { %v2276_v33 = vrot.slane %v2268_v36, 7  ;;  %v2270_v34 = vpop.f32.mrb[21].mxu1 }
0x19f8   : > { %v2280_v37 = vrot.slane %v2270_v34, 2  ;;  %v2272_v38 = vpop.f32.mrb[22].mxu1 }
0x19f9   : > { %v2278_v39 = vadd.f32 %v2276_v33, %v4989_v30  ;;  %v2273_v41 = vpop.f32.mrb[23].mxu1 }
0x19fa   : > { %v2282_v42 = vadd.f32 %v2280_v37, %v4991_v49 }
0x19fb   : > { %4326 = vtanh.f32 %v2278_v39  ;;  %v3961_v47 = vmul.f32 -1.442695, %v2278_v39 }
0x19fc   : > { %4328 = vtanh.f32 %v2282_v42  ;;  %v3962_v48 = vmul.f32 -1.442695, %v2282_v42 }
0x19fd   : > { %4330 = vpow2.f32 %v3961_v47 }
0x19fe   : > { %4332 = vpow2.f32 %v3962_v48 }
0x1a05   : > { %v4327_v44 = vpop.eup %4326 }
0x1a06   : > { %v4329_v45 = vpop.eup %4328  ;;  %2302 = vrot.lane.b32.xlu1 %v4327_v44, %s4451_s24 }
0x1a07   : > { %2317 = vrot.lane.b32.xlu0 %v4329_v45, %s4451_s24  ;;  %v4331_v29 = vpop.eup %4330 }
0x1a08   : > { %v4333_v50 = vpop.eup %4332  ;;  %v2286_v52 = vadd.f32 1.0, %v4331_v29 }
0x1a09   : > { %v2292_v53 = vadd.f32 1.0, %v4333_v50 }
0x1a0a   : > { %4334 = vrcp.f32 %v2286_v52 }
0x1a0b   : > { %2312 = vrot.lane.b32.xlu0 %v2311_v12, %s4452_s25  ;;  %4336 = vrcp.f32 %v2292_v53 }
0x1a14   : > { %v4335_v54 = vpop.eup %4334 }
0x1a15   : > { %v4337_v57 = vpop.eup %4336  ;;  %v2300_v0 = vmul.f32 %v4335_v54, %v2298_v63 }
0x1a78   : > { %v2303_v55 = vpop.permute.xlu1 %2302 }
0x1a79   : > { %v2305_v58 = vmul.f32 %v4335_v54, %v2303_v55  ;;  %v2318_v59 = vpop.permute.xlu0 %2317 }
0x1a7a   : > { %v2320_v60 = vmul.f32 %v4337_v57, %v2318_v59 }
0x1a7b   : > { %2307 = vrot.lane.b32.xlu0 %v2305_v58, %s4452_s25 }
0x1a7c   : > { %2322 = vrot.lane.b32.xlu1 %v2320_v60, %s4452_s25 }
0x1a7d   : > { %v2313_v62 = vpop.permute.xlu0 %2312 }
0x1a7e   : > { %v2315_v3 = vmul.f32 %v4337_v57, %v2313_v62 }
0x1aed   : > { %v2308_v4 = vpop.permute.xlu0 %2307 }
0x1aee   : > { %v2310_v5 = vadd.f32 %v2308_v4, %v2300_v0  ;;  %v2323_v6 = vpop.permute.xlu1 %2322 }
0x1aef   : > { %v2325_v8 = vadd.f32 %v2323_v6, %v2315_v3 }
0x1af0   : > { %4338 = vtanh.f32 %v2310_v5 }
0x1af1   : > { %4340 = vtanh.f32 %v2325_v8  ;;  %v2349_v17 = vrot.slane %v2325_v8, 5 }
0x1afa   : > { %v4339_v10 = vpop.eup %4338 }
0x1afb   : > { %v4341_v14 = vpop.eup %4340  ;;  %2328 = vrot.lane.b32.xlu0 %v4339_v10, %s4451_s24 }
0x1afc   : > { %2334 = vrot.lane.b32.xlu1 %v4341_v14, %s4451_s24 }
0x1b6d   : > { %v2329_v56 = vpop.permute.xlu0 %2328 }
0x1b6e   : > { %v2331_v9 = vmul.f32 %v4335_v54, %v2329_v56  ;;  %v2335_v11 = vpop.permute.xlu1 %2334 }
0x1b6f   : > { %v5029_v1 = vmul.f32 %v4337_v57, %v2335_v11 }
0x1b70   : > { %2339 = vrot.lane.b32.xlu1 %v2331_v9, %s4451_s24 }
0x1b71   : > { %v2343_v28 = vrot.slane %v5029_v1, 5 }
0x1b73   : > { %2344 = vrot.lane.b32.xlu0 %v2343_v28, %s4452_s25 }
0x1b74   : > { %2350 = vrot.lane.b32.xlu1 %v2349_v17, %s4453_s26 }
0x1be2   : > { %v2340_v18 = vpop.permute.xlu1 %2339 }
0x1be3   : > { %2354 = vst.msk [vmem:[#allocation2] sm:$0x2] %vm830_vm3, %v2340_v18  ;;  %vm4455_vm3 = vmmov 0  }
0x1be5   : > { %v2345_v19 = vpop.permute.xlu0 %2344 }
0x1be6   : > { %v2347_v22 = vsel %vm643_vm1, %v2340_v18, %v2345_v19  ;;  %v2351_v37 = vpop.permute.xlu1 %2350 }
0x1be7   : > { %v2359_v23 = vpack.c.bf16 %v2347_v22, %v2347_v22  ;;  %v2353_v41 = vsel %vm643_vm1, %v2310_v5, %v2351_v37 }
0x1be8   : > { %v2491_v42 = vrot.slane %v2353_v41, 4  ;;  %v2478_v57 = vrot.slane %v2353_v41, 7 }
0x1be9   : > { %v2369_v26 = vshrl.u32 %v2359_v23, 16 }
0x1beb   : > { %3971 = vmatmul.mubr.msk.bf16.vlgmr.msra.gmra.mrb[24].mxu0 %vm444_vm0, %v2369_v26 }
0x1bec   : > { %2775 = vmatpush1.bf16.msra.mxu0 %v4862_v7  ;;  %2806 = vmatprep.mubr.bf16.mxu0 %v4450_v2 }
0x1bed   : > { %2776 = vmatprep.subr.bf16.mxu0 %v4880_v16 }
0x1bf0   : > { %2777 = vmatpush1.bf16.msra.mxu0 %v4890_v61 }
0x1bf1   : > { %2778 = vmatprep.subr.bf16.mxu0 %v4910_v40 }
0x1bf4   : > { %2779 = vmatpush1.bf16.msra.mxu0 %v4915_v51 }
0x1bf5   : > { %2780 = vmatprep.subr.bf16.mxu0 %v4928_v13 }
0x1bf8   : > { %2781 = vmatpush1.bf16.msra.mxu0 %v4933_v15 }
0x1cbe   : > { %v2448_v27 = vpop.f32.mrb[24].mxu0 }
0x1cbf   : > { %v2456_v31 = vrot.slane %v2448_v27, 6  ;;  %v2450_v32 = vpop.f32.mrb[25].mxu0 }
0x1cc0   : > { %v2460_v25 = vrot.slane %v2450_v32, 3  ;;  %v2452_v35 = vpop.f32.mrb[26].mxu0 }
0x1cc1   : > { %v2458_v36 = vadd.f32 %v2456_v31, %v4989_v30  ;;  %v2453_v33 = vpop.f32.mrb[27].mxu0 }
0x1cc2   : > { %v2462_v34 = vadd.f32 %v2460_v25, %v4991_v49 }
0x1cc3   : > { %4342 = vtanh.f32 %v2458_v36  ;;  %v3972_v43 = vmul.f32 -1.442695, %v2458_v36 }
0x1cc4   : > { %4344 = vtanh.f32 %v2462_v34  ;;  %v3973_v44 = vmul.f32 -1.442695, %v2462_v34 }
0x1cc5   : > { %4346 = vpow2.f32 %v3972_v43 }
0x1cc6   : > { %4348 = vpow2.f32 %v3973_v44 }
0x1ccd   : > { %v4343_v38 = vpop.eup %4342 }
0x1cce   : > { %v4345_v39 = vpop.eup %4344  ;;  %2482 = vrot.lane.b32.xlu1 %v4343_v38, %s4451_s24 }
0x1ccf   : > { %2497 = vrot.lane.b32.xlu0 %v4345_v39, %s4451_s24  ;;  %v4347_v45 = vpop.eup %4346 }
0x1cd0   : > { %v4349_v46 = vpop.eup %4348  ;;  %v2466_v12 = vadd.f32 1.0, %v4347_v45 }
0x1cd1   : > { %v2472_v47 = vadd.f32 1.0, %v4349_v46 }
0x1cd2   : > { %4350 = vrcp.f32 %v2466_v12 }
0x1cd3   : > { %2492 = vrot.lane.b32.xlu0 %v2491_v42, %s4452_s25  ;;  %4352 = vrcp.f32 %v2472_v47 }
0x1cdc   : > { %v4351_v48 = vpop.eup %4350 }
0x1cdd   : > { %v4353_v50 = vpop.eup %4352  ;;  %v2480_v58 = vmul.f32 %v4351_v48, %v2478_v57 }
0x1d40   : > { %v2483_v29 = vpop.permute.xlu1 %2482 }
0x1d41   : > { %v2485_v52 = vmul.f32 %v4351_v48, %v2483_v29  ;;  %v2498_v53 = vpop.permute.xlu0 %2497 }
0x1d42   : > { %v2500_v54 = vmul.f32 %v4353_v50, %v2498_v53 }
0x1d43   : > { %2487 = vrot.lane.b32.xlu0 %v2485_v52, %s4452_s25 }
0x1d44   : > { %2502 = vrot.lane.b32.xlu1 %v2500_v54, %s4452_s25 }
0x1d45   : > { %v2493_v55 = vpop.permute.xlu0 %2492 }
0x1d46   : > { %v2495_v59 = vmul.f32 %v4353_v50, %v2493_v55 }
0x1db5   : > { %v2488_v60 = vpop.permute.xlu0 %2487 }
0x1db6   : > { %v2490_v62 = vadd.f32 %v2488_v60, %v2480_v58  ;;  %v2503_v63 = vpop.permute.xlu1 %2502 }
0x1db7   : > { %v2505_v0 = vadd.f32 %v2503_v63, %v2495_v59 }
0x1db8   : > { %4354 = vtanh.f32 %v2490_v62 }
0x1db9   : > { %4356 = vtanh.f32 %v2505_v0  ;;  %v2529_v56 = vrot.slane %v2505_v0, 3 }
0x1dc2   : > { %v4355_v3 = vpop.eup %4354 }
0x1dc3   : > { %v4357_v4 = vpop.eup %4356  ;;  %2508 = vrot.lane.b32.xlu0 %v4355_v3, %s4451_s24 }
0x1dc4   : > { %2514 = vrot.lane.b32.xlu1 %v4357_v4, %s4451_s24 }
0x1e35   : > { %v2509_v5 = vpop.permute.xlu0 %2508 }
0x1e36   : > { %v2511_v6 = vmul.f32 %v4351_v48, %v2509_v5  ;;  %v2515_v8 = vpop.permute.xlu1 %2514 }
0x1e37   : > { %v5056_v10 = vmul.f32 %v4353_v50, %v2515_v8 }
0x1e38   : > { %2519 = vrot.lane.b32.xlu1 %v2511_v6, %s4451_s24 }
0x1e39   : > { %v2523_v14 = vrot.slane %v5056_v10, 3 }
0x1e3b   : > { %2524 = vrot.lane.b32.xlu0 %v2523_v14, %s4452_s25 }
0x1e3c   : > { %2530 = vrot.lane.b32.xlu1 %v2529_v56, %s4453_s26 }
0x1eaa   : > { %v2520_v9 = vpop.permute.xlu1 %2519 }
0x1eab   : > { %2534 = vst.msk [vmem:[#allocation2] sm:$0x4] %vm1012_vm4, %v2520_v9  ;;  %vm3607_vm4 = vcmask 64512  }
0x1ead   : > { %v2525_v11 = vpop.permute.xlu0 %2524 }
0x1eae   : > { %v2527_v28 = vsel %vm643_vm1, %v2520_v9, %v2525_v11 }
0x1eaf   : > { %v2539_v17 = vpack.c.bf16 %v2527_v28, %v2527_v28 }
0x1eb1   : > { %v2549_v18 = vrot.slane %v2539_v17, 1 }
0x1eb3   : > { %3982 = vmatmul.mubr.msk.bf16.vlgmr.msra.gmra.mrb[24].mxu1 %vm444_vm0, %v2549_v18 }
0x1eb4   : > { %2953 = vmatpush1.bf16.msra.mxu1 %v4862_v7  ;;  %2984 = vmatprep.mubr.bf16.mxu1 %v4450_v2 }
0x1eb5   : > { %2954 = vmatprep.subr.bf16.mxu1 %v4880_v16 }
0x1eb8   : > { %2955 = vmatpush1.bf16.msra.mxu1 %v4890_v61  ;;  %v2531_v61 = vpop.permute.xlu1 %2530 }
0x1eb9   : > { %2956 = vmatprep.subr.bf16.mxu1 %v4910_v40  ;;  %v2533_v35 = vsel %vm643_vm1, %v2490_v62, %v2531_v61 }
0x1eba   : > { %v2670_v36 = vrot.slane %v2533_v35, 6  ;;  %v2657_v48 = vrot.slane %v2533_v35, 7 }
0x1ebc   : > { %2957 = vmatpush1.bf16.msra.mxu1 %v4915_v51 }
0x1ebd   : > { %2958 = vmatprep.subr.bf16.mxu1 %v4928_v13 }
0x1ec0   : > { %2959 = vmatpush1.bf16.msra.mxu1 %v4933_v15 }
0x1f86   : > { %v2627_v19 = vpop.f32.mrb[24].mxu1 }
0x1f87   : > { %v2635_v22 = vrot.slane %v2627_v19, 5  ;;  %v2629_v23 = vpop.f32.mrb[25].mxu1 }
0x1f88   : > { %v2639_v26 = vrot.slane %v2629_v23, 4  ;;  %v2631_v27 = vpop.f32.mrb[26].mxu1 }
0x1f89   : > { %v2637_v7 = vadd.f32 %v2635_v22, %v4989_v30  ;;  %v2632_v31 = vpop.f32.mrb[27].mxu1 }
0x1f8a   : > { %v2641_v16 = vadd.f32 %v2639_v26, %v4991_v49 }
0x1f8b   : > { %4358 = vtanh.f32 %v2637_v7  ;;  %v3983_v33 = vmul.f32 -1.442695, %v2637_v7 }
0x1f8c   : > { %4360 = vtanh.f32 %v2641_v16  ;;  %v3984_v34 = vmul.f32 -1.442695, %v2641_v16 }
0x1f8d   : > { %4362 = vpow2.f32 %v3983_v33 }
0x1f8e   : > { %4364 = vpow2.f32 %v3984_v34 }
0x1f95   : > { %v4359_v32 = vpop.eup %4358 }
0x1f96   : > { %v4361_v25 = vpop.eup %4360  ;;  %2661 = vrot.lane.b32.xlu1 %v4359_v32, %s4451_s24 }
0x1f97   : > { %2676 = vrot.lane.b32.xlu0 %v4361_v25, %s4451_s24  ;;  %v4363_v37 = vpop.eup %4362 }
0x1f98   : > { %v4365_v38 = vpop.eup %4364  ;;  %v2645_v39 = vadd.f32 1.0, %v4363_v37 }
0x1f99   : > { %v2651_v41 = vadd.f32 1.0, %v4365_v38 }
0x1f9a   : > { %4366 = vrcp.f32 %v2645_v39 }
0x1f9b   : > { %2671 = vrot.lane.b32.xlu0 %v2670_v36, %s4452_s25  ;;  %4368 = vrcp.f32 %v2651_v41 }
0x1fa4   : > { %v4367_v42 = vpop.eup %4366 }
0x1fa5   : > { %v4369_v44 = vpop.eup %4368  ;;  %v2659_v29 = vmul.f32 %v4367_v42, %v2657_v48 }
0x2008   : > { %v2662_v43 = vpop.permute.xlu1 %2661 }
0x2009   : > { %v2664_v45 = vmul.f32 %v4367_v42, %v2662_v43  ;;  %v2677_v46 = vpop.permute.xlu0 %2676 }
0x200a   : > { %v2679_v12 = vmul.f32 %v4369_v44, %v2677_v46 }
0x200b   : > { %2666 = vrot.lane.b32.xlu0 %v2664_v45, %s4452_s25 }
0x200c   : > { %2681 = vrot.lane.b32.xlu1 %v2679_v12, %s4452_s25 }
0x200d   : > { %v2672_v47 = vpop.permute.xlu0 %2671 }
0x200e   : > { %v2674_v50 = vmul.f32 %v4369_v44, %v2672_v47 }
0x207d   : > { %v2667_v52 = vpop.permute.xlu0 %2666 }
0x207e   : > { %v2669_v53 = vadd.f32 %v2667_v52, %v2659_v29  ;;  %v2682_v54 = vpop.permute.xlu1 %2681 }
0x207f   : > { %v2684_v55 = vadd.f32 %v2682_v54, %v2674_v50 }
0x2080   : > { %4370 = vtanh.f32 %v2669_v53 }
0x2081   : > { %4372 = vtanh.f32 %v2684_v55  ;;  %v2708_v3 = vrot.slane %v2684_v55, 1 }
0x208a   : > { %v4371_v57 = vpop.eup %4370 }
0x208b   : > { %v4373_v58 = vpop.eup %4372  ;;  %2687 = vrot.lane.b32.xlu0 %v4371_v57, %s4451_s24 }
0x208c   : > { %2693 = vrot.lane.b32.xlu1 %v4373_v58, %s4451_s24 }
0x20fd   : > { %v2688_v59 = vpop.permute.xlu0 %2687 }
0x20fe   : > { %v2690_v60 = vmul.f32 %v4367_v42, %v2688_v59  ;;  %v2694_v62 = vpop.permute.xlu1 %2693 }
0x20ff   : > { %v5083_v63 = vmul.f32 %v4369_v44, %v2694_v62 }
0x2100   : > { %2698 = vrot.lane.b32.xlu1 %v2690_v60, %s4451_s24 }
0x2101   : > { %v2702_v0 = vrot.slane %v5083_v63, 1 }
0x2103   : > { %2703 = vrot.lane.b32.xlu0 %v2702_v0, %s4452_s25 }
0x2104   : > { %2709 = vrot.lane.b32.xlu1 %v2708_v3, %s4453_s26 }
0x2172   : > { %v2699_v4 = vpop.permute.xlu1 %2698 }
0x2173   : > { %2713 = vst.msk [vmem:[#allocation2] sm:$0x8] %vm1193_vm5, %v2699_v4  ;;  %vm3775_vm5 = vcmask 56320  }
0x2175   : > { %v2704_v5 = vpop.permute.xlu0 %2703 }
0x2176   : > { %v2706_v6 = vsel %vm643_vm1, %v2699_v4, %v2704_v5  ;;  %v2710_v7 = vpop.permute.xlu1 %2709 }
0x2177   : > { %v2718_v8 = vpack.c.bf16 %v2706_v6, %v2706_v6  ;;  %v2712_v31 = vsel %vm643_vm1, %v2669_v53, %v2710_v7 }
0x2178   : > { %v2838_v43 = vrot.slane %v2712_v31, 7 }
0x2179   : > { %v2728_v14 = vshrl.u32 %v2718_v8, 16 }
0x217b   : > { %v2730_v56 = vrot.slane %v2728_v14, 1 }
0x217d   : > { %3993 = vmatmul.mubr.msk.bf16.vlgmr.msra.gmra.mrb[28].mxu0 %vm444_vm0, %v2730_v56 }
0x217e   : > { %3165 = vmatprep.mubr.bf16.mxu0 %v4450_v2 }
0x2250   : > { %v2808_v9 = vpop.f32.mrb[28].mxu0 }
0x2251   : > { %v2816_v11 = vrot.slane %v2808_v9, 4  ;;  %v2810_v28 = vpop.f32.mrb[29].mxu0 }
0x2252   : > { %v2820_v17 = vrot.slane %v2810_v28, 5  ;;  %v2812_v18 = vpop.f32.mrb[30].mxu0 }
0x2253   : > { %v2818_v19 = vadd.f32 %v2816_v11, %v4989_v30  ;;  %v2813_v22 = vpop.f32.mrb[31].mxu0 }
0x2254   : > { %v2822_v23 = vadd.f32 %v2820_v17, %v4991_v49 }
0x2255   : > { %4374 = vtanh.f32 %v2818_v19  ;;  %v3994_v16 = vmul.f32 -1.442695, %v2818_v19 }
0x2256   : > { %4376 = vtanh.f32 %v2822_v23  ;;  %v3995_v61 = vmul.f32 -1.442695, %v2822_v23 }
0x2257   : > { %4378 = vpow2.f32 %v3994_v16 }
0x2258   : > { %4380 = vpow2.f32 %v3995_v61 }
0x225f   : > { %v4375_v26 = vpop.eup %4374 }
0x2260   : > { %v4377_v27 = vpop.eup %4376  ;;  %2842 = vrot.lane.b32.xlu1 %v4375_v26, %s4451_s24 }
0x2261   : > { %2856 = vrot.lane.b32.xlu0 %v4377_v27, %s4451_s24  ;;  %v4379_v32 = vpop.eup %4378 }
0x2262   : > { %v4381_v25 = vpop.eup %4380  ;;  %v2826_v35 = vadd.f32 1.0, %v4379_v32 }
0x2263   : > { %v2832_v36 = vadd.f32 1.0, %v4381_v25 }
0x2264   : > { %4382 = vrcp.f32 %v2826_v35 }
0x2265   : > { %2851 = vrot.lane.b32.xlu0 %v2712_v31, %s4452_s25  ;;  %4384 = vrcp.f32 %v2832_v36 }
0x226e   : > { %v4383_v33 = vpop.eup %4382 }
0x226f   : > { %v4385_v37 = vpop.eup %4384  ;;  %v2840_v44 = vmul.f32 %v4383_v33, %v2838_v43 }
0x22d2   : > { %v2843_v34 = vpop.permute.xlu1 %2842 }
0x22d3   : > { %v2845_v38 = vmul.f32 %v4383_v33, %v2843_v34  ;;  %v2857_v39 = vpop.permute.xlu0 %2856 }
0x22d4   : > { %v2859_v41 = vmul.f32 %v4385_v37, %v2857_v39 }
0x22d5   : > { %2847 = vrot.lane.b32.xlu0 %v2845_v38, %s4452_s25 }
0x22d6   : > { %2861 = vrot.lane.b32.xlu1 %v2859_v41, %s4452_s25 }
0x22d7   : > { %v2852_v42 = vpop.permute.xlu0 %2851 }
0x22d8   : > { %v2854_v45 = vmul.f32 %v4385_v37, %v2852_v42 }
0x2347   : > { %v2848_v46 = vpop.permute.xlu0 %2847 }
0x2348   : > { %v2850_v12 = vadd.f32 %v2848_v46, %v2840_v44  ;;  %v2862_v47 = vpop.permute.xlu1 %2861  ;;  %v4156_v46 = vld [vmem:[%s5294_s5 + $0x4] ss:$8 sps:$4 sm:$0xff]  }
0x2349   : > { %v2864_v48 = vadd.f32 %v2862_v47, %v2854_v45  ;;  %v4154_v45 = vld [vmem:[%s5294_s5] ss:$8 sps:$4 sm:$0xff]   ;;  %3133 = vmatprep.subr.bf16.mxu0 %v4156_v46  ;;  %3312 = vmatprep.subr.bf16.mxu1 %v4156_v46  ;;  %v4157_v47 = vld [vmem:[%s5294_s5 + $0x10] ss:$8 sps:$4 sm:$0xff]   ;;  %v4165_v46 = vld [vmem:[%s5294_s5 + $0x34] ss:$8 sps:$4 sm:$0xff]  }
0x234a   : > { %4386 = vtanh.f32 %v2850_v12  ;;  %3134 = vmatpush1.bf16.msra.mxu0 %v4154_v45 }
0x234b   : > { %4388 = vtanh.f32 %v2864_v48  ;;  %v2888_v58 = vrot.slane %v2864_v48, 7 }
0x2354   : > { %v4387_v29 = vpop.eup %4386 }
0x2355   : > { %v4389_v50 = vpop.eup %4388  ;;  %2867 = vrot.lane.b32.xlu0 %v4387_v29, %s4451_s24 }
0x2356   : > { %2873 = vrot.lane.b32.xlu1 %v4389_v50, %s4451_s24 }
0x23c7   : > { %v2868_v52 = vpop.permute.xlu0 %2867 }
0x23c8   : > { %v2870_v53 = vmul.f32 %v4383_v33, %v2868_v52  ;;  %v2874_v54 = vpop.permute.xlu1 %2873 }
0x23c9   : > { %v5103_v55 = vmul.f32 %v4385_v37, %v2874_v54 }
0x23ca   : > { %2878 = vrot.lane.b32.xlu1 %v2870_v53, %s4451_s24 }
0x23cb   : > { %v2882_v57 = vrot.slane %v5103_v55, 7 }
0x23cd   : > { %2883 = vrot.lane.b32.xlu0 %v2882_v57, %s4452_s25 }
0x23ce   : > { %2889 = vrot.lane.b32.xlu1 %v2888_v58, %s4453_s26 }
0x243c   : > { %v5109_v59 = vpop.permute.xlu1 %2878 }
0x243f   : > { %v2884_v60 = vpop.permute.xlu0 %2883 }
0x2440   : > { %v2886_v62 = vsel %vm643_vm1, %v5109_v59, %v2884_v60  ;;  %v2890_v28 = vpop.permute.xlu1 %2889 }
0x2441   : > { %v2898_v0 = vpack.c.bf16 %v2886_v62, %v2886_v62  ;;  %v2892_v19 = vsel %vm643_vm1, %v2850_v12, %v2890_v28  ;;  %v4159_v12 = vld [vmem:[%s5294_s5 + $0x14] ss:$8 sps:$4 sm:$0xff]  }
0x2442   : > { %v3029_v22 = vrot.slane %v2892_v19, 2  ;;  %v3016_v37 = vrot.slane %v2892_v19, 7  ;;  %3135 = vmatprep.subr.bf16.mxu0 %v4159_v12 }
0x2443   : > { %v2908_v3 = vrot.slane %v2898_v0, 2  ;;  %3136 = vmatpush1.bf16.msra.mxu0 %v4157_v47 }
0x2444   : > { %3137 = vmatprep.subr.bf16.mxu0 %v4910_v40 }
0x2445   : > { %4004 = vmatmul.mubr.msk.bf16.vlgmr.msra.gmra.mrb[28].mxu1 %vm444_vm0, %v2908_v3 }
0x2446   : > { %3344 = vmatprep.mubr.bf16.mxu1 %v4450_v2  ;;  %3313 = vmatpush1.bf16.msra.mxu1 %v4154_v45  ;;  %v4160_v45 = vld [vmem:[%s5294_s5 + $0x20] ss:$8 sps:$4 sm:$0xff]  }
0x2447   : > { %3314 = vmatprep.subr.bf16.mxu1 %v4159_v12  ;;  %3138 = vmatpush1.bf16.msra.mxu0 %v4915_v51  ;;  %v4163_v12 = vld [vmem:[%s5294_s5 + $0x30] ss:$8 sps:$4 sm:$0xff]  }
0x2448   : > { %3139 = vmatprep.subr.bf16.mxu0 %v4928_v13 }
0x244a   : > { %3315 = vmatpush1.bf16.msra.mxu1 %v4157_v47 }
0x244b   : > { %3140 = vmatpush1.bf16.msra.mxu0 %v4933_v15 }
0x2518   : > { %v2986_v4 = vpop.f32.mrb[28].mxu1 }
0x2519   : > { %v2994_v5 = vrot.slane %v2986_v4, 3  ;;  %v2988_v6 = vpop.f32.mrb[29].mxu1 }
0x251a   : > { %v2998_v8 = vrot.slane %v2988_v6, 6  ;;  %v2990_v14 = vpop.f32.mrb[30].mxu1 }
0x251b   : > { %v2996_v56 = vadd.f32 %v2994_v5, %v4989_v30  ;;  %v2991_v9 = vpop.f32.mrb[31].mxu1 }
0x251c   : > { %v3000_v11 = vadd.f32 %v2998_v8, %v4991_v49 }
0x251d   : > { %4390 = vtanh.f32 %v2996_v56  ;;  %v4005_v23 = vmul.f32 -1.442695, %v2996_v56 }
0x251e   : > { %4392 = vtanh.f32 %v3000_v11  ;;  %v4006_v26 = vmul.f32 -1.442695, %v3000_v11 }
0x251f   : > { %4394 = vpow2.f32 %v4005_v23 }
0x2520   : > { %4396 = vpow2.f32 %v4006_v26 }
0x2527   : > { %v4391_v17 = vpop.eup %4390 }
0x2528   : > { %v4393_v18 = vpop.eup %4392  ;;  %3020 = vrot.lane.b32.xlu1 %v4391_v17, %s4451_s24 }
0x2529   : > { %3035 = vrot.lane.b32.xlu0 %v4393_v18, %s4451_s24  ;;  %v4395_v27 = vpop.eup %4394 }
0x252a   : > { %v4397_v7 = vpop.eup %4396  ;;  %v3004_v31 = vadd.f32 1.0, %v4395_v27 }
0x252b   : > { %v3010_v16 = vadd.f32 1.0, %v4397_v7 }
0x252c   : > { %4398 = vrcp.f32 %v3004_v31 }
0x252d   : > { %3030 = vrot.lane.b32.xlu0 %v3029_v22, %s4452_s25  ;;  %4400 = vrcp.f32 %v3010_v16 }
0x2536   : > { %v4399_v61 = vpop.eup %4398 }
0x2537   : > { %v4401_v25 = vpop.eup %4400  ;;  %v3018_v38 = vmul.f32 %v4399_v61, %v3016_v37 }
0x259a   : > { %v3021_v32 = vpop.permute.xlu1 %3020 }
0x259b   : > { %v3023_v35 = vmul.f32 %v4399_v61, %v3021_v32  ;;  %v3036_v36 = vpop.permute.xlu0 %3035 }
0x259c   : > { %v3038_v33 = vmul.f32 %v4401_v25, %v3036_v36 }
0x259d   : > { %3025 = vrot.lane.b32.xlu0 %v3023_v35, %s4452_s25 }
0x259e   : > { %3040 = vrot.lane.b32.xlu1 %v3038_v33, %s4452_s25 }
0x259f   : > { %v3031_v34 = vpop.permute.xlu0 %3030 }
0x25a0   : > { %v3033_v39 = vmul.f32 %v4401_v25, %v3031_v34 }
0x260f   : > { %v3026_v41 = vpop.permute.xlu0 %3025 }
0x2610   : > { %v3028_v42 = vadd.f32 %v3026_v41, %v3018_v38  ;;  %v3041_v43 = vpop.permute.xlu1 %3040 }
0x2611   : > { %v3043_v44 = vadd.f32 %v3041_v43, %v3033_v39 }
0x2612   : > { %4402 = vtanh.f32 %v3028_v42 }
0x2613   : > { %4404 = vtanh.f32 %v3043_v44  ;;  %v3067_v58 = vrot.slane %v3043_v44, 5  ;;  %v4162_v44 = vld [vmem:[%s5294_s5 + $0x24] ss:$8 sps:$4 sm:$0xff]  }
0x2614   : > { %3316 = vmatprep.subr.bf16.mxu1 %v4162_v44 }
0x2615   : > { %3317 = vmatpush1.bf16.msra.mxu1 %v4160_v45 }
0x2616   : > { %3318 = vmatprep.subr.bf16.mxu1 %v4165_v46 }
0x2619   : > { %3319 = vmatpush1.bf16.msra.mxu1 %v4163_v12 }
0x261c   : > { %v4403_v48 = vpop.eup %4402 }
0x261d   : > { %v4405_v29 = vpop.eup %4404  ;;  %3046 = vrot.lane.b32.xlu0 %v4403_v48, %s4451_s24 }
0x261e   : > { %3052 = vrot.lane.b32.xlu1 %v4405_v29, %s4451_s24 }
0x268f   : > { %v3047_v50 = vpop.permute.xlu0 %3046 }
0x2690   : > { %v3049_v52 = vmul.f32 %v4399_v61, %v3047_v50  ;;  %v3053_v53 = vpop.permute.xlu1 %3052 }
0x2691   : > { %v5141_v54 = vmul.f32 %v4401_v25, %v3053_v53 }
0x2692   : > { %3057 = vrot.lane.b32.xlu1 %v3049_v52, %s4451_s24 }
0x2693   : > { %v3061_v57 = vrot.slane %v5141_v54, 5 }
0x2695   : > { %3062 = vrot.lane.b32.xlu0 %v3061_v57, %s4452_s25 }
0x2696   : > { %3068 = vrot.lane.b32.xlu1 %v3067_v58, %s4453_s26 }
0x2704   : > { %v5147_v40 = vpop.permute.xlu1 %3057 }
0x2707   : > { %v3063_v51 = vpop.permute.xlu0 %3062 }
0x2708   : > { %v3065_v13 = vsel %vm643_vm1, %v5147_v40, %v3063_v51  ;;  %v3069_v9 = vpop.permute.xlu1 %3068 }
0x2709   : > { %v3077_v15 = vpack.c.bf16 %v3065_v13, %v3065_v13  ;;  %v3071_v17 = vsel %vm643_vm1, %v3028_v42, %v3069_v9 }
0x270a   : > { %v3197_v36 = vrot.slane %v3071_v17, 7 }
0x270b   : > { %v3087_v60 = vshrl.u32 %v3077_v15, 16 }
0x270d   : > { %v3089_v62 = vrot.slane %v3087_v60, 2 }
0x270f   : > { %4015 = vmatmul.mubr.msk.bf16.vlgmr.msra.gmra.mrb[32].mxu0 %vm444_vm0, %v3089_v62 }
0x2710   : > { %3520 = vmatprep.mubr.bf16.mxu0 %v4450_v2  ;;  %v3210_v2 = vrot.slane %v3071_v17, 4 }
0x27e2   : > { %v3167_v0 = vpop.f32.mrb[32].mxu0 }
0x27e3   : > { %v3175_v3 = vrot.slane %v3167_v0, 2  ;;  %v3169_v4 = vpop.f32.mrb[33].mxu0 }
0x27e4   : > { %v3179_v5 = vrot.slane %v3169_v4, 7  ;;  %v3171_v6 = vpop.f32.mrb[34].mxu0 }
0x27e5   : > { %v3177_v8 = vadd.f32 %v3175_v3, %v4989_v30  ;;  %v3172_v14 = vpop.f32.mrb[35].mxu0 }
0x27e6   : > { %v3181_v56 = vadd.f32 %v3179_v5, %v4991_v49 }
0x27e7   : > { %4406 = vtanh.f32 %v3177_v8  ;;  %v4016_v18 = vmul.f32 -1.442695, %v3177_v8 }
0x27e8   : > { %4408 = vtanh.f32 %v3181_v56  ;;  %v4017_v19 = vmul.f32 -1.442695, %v3181_v56 }
0x27e9   : > { %4410 = vpow2.f32 %v4016_v18 }
0x27ea   : > { %4412 = vpow2.f32 %v4017_v19 }
0x27f1   : > { %v4407_v11 = vpop.eup %4406 }
0x27f2   : > { %v4409_v28 = vpop.eup %4408  ;;  %3201 = vrot.lane.b32.xlu1 %v4407_v11, %s4451_s24 }
0x27f3   : > { %3216 = vrot.lane.b32.xlu0 %v4409_v28, %s4451_s24  ;;  %v4411_v22 = vpop.eup %4410 }
0x27f4   : > { %v4413_v23 = vpop.eup %4412  ;;  %v3185_v26 = vadd.f32 1.0, %v4411_v22 }
0x27f5   : > { %v3191_v27 = vadd.f32 1.0, %v4413_v23 }
0x27f6   : > { %4414 = vrcp.f32 %v3185_v26 }
0x27f7   : > { %3211 = vrot.lane.b32.xlu0 %v3210_v2, %s4452_s25  ;;  %4416 = vrcp.f32 %v3191_v27 }
0x2800   : > { %v4415_v7 = vpop.eup %4414 }
0x2801   : > { %v4417_v16 = vpop.eup %4416  ;;  %v3199_v33 = vmul.f32 %v4415_v7, %v3197_v36 }
0x2864   : > { %v3202_v31 = vpop.permute.xlu1 %3201 }
0x2865   : > { %v3204_v61 = vmul.f32 %v4415_v7, %v3202_v31  ;;  %v3217_v32 = vpop.permute.xlu0 %3216 }
0x2866   : > { %v3219_v25 = vmul.f32 %v4417_v16, %v3217_v32 }
0x2867   : > { %3206 = vrot.lane.b32.xlu0 %v3204_v61, %s4452_s25 }
0x2868   : > { %3221 = vrot.lane.b32.xlu1 %v3219_v25, %s4452_s25 }
0x2869   : > { %v3212_v35 = vpop.permute.xlu0 %3211 }
0x286a   : > { %v3214_v34 = vmul.f32 %v4417_v16, %v3212_v35 }
0x28d9   : > { %v3207_v37 = vpop.permute.xlu0 %3206 }
0x28da   : > { %v3209_v38 = vadd.f32 %v3207_v37, %v3199_v33  ;;  %v3222_v39 = vpop.permute.xlu1 %3221 }
0x28db   : > { %v3224_v41 = vadd.f32 %v3222_v39, %v3214_v34  ;;  %v4168_v39 = vld [vmem:[%s5296_s7 + $0x4] ss:$8 sps:$4 sm:$0xff]  }
0x28dc   : > { %4418 = vtanh.f32 %v3209_v38  ;;  %3488 = vmatprep.subr.bf16.mxu0 %v4168_v39 }
0x28dd   : > { %4420 = vtanh.f32 %v3224_v41  ;;  %v3248_v53 = vrot.slane %v3224_v41, 3  ;;  %v4171_v41 = vld [vmem:[%s5296_s7 + $0x14] ss:$8 sps:$4 sm:$0xff]  }
0x28e6   : > { %v4419_v42 = vpop.eup %4418 }
0x28e7   : > { %v4421_v43 = vpop.eup %4420  ;;  %3227 = vrot.lane.b32.xlu0 %v4419_v42, %s4451_s24 }
0x28e8   : > { %3233 = vrot.lane.b32.xlu1 %v4421_v43, %s4451_s24 }
0x2959   : > { %v3228_v47 = vpop.permute.xlu0 %3227 }
0x295a   : > { %v3230_v48 = vmul.f32 %v4415_v7, %v3228_v47  ;;  %v3234_v29 = vpop.permute.xlu1 %3233 }
0x295b   : > { %v5175_v50 = vmul.f32 %v4417_v16, %v3234_v29 }
0x295c   : > { %3238 = vrot.lane.b32.xlu1 %v3230_v48, %s4451_s24 }
0x295d   : > { %v3242_v52 = vrot.slane %v5175_v50, 3 }
0x295f   : > { %3243 = vrot.lane.b32.xlu0 %v3242_v52, %s4452_s25 }
0x2960   : > { %3249 = vrot.lane.b32.xlu1 %v3248_v53, %s4453_s26 }
0x29ce   : > { %v5181_v57 = vpop.permute.xlu1 %3238 }
0x29d1   : > { %v3244_v58 = vpop.permute.xlu0 %3243 }
0x29d2   : > { %v3246_v51 = vsel %vm643_vm1, %v5181_v57, %v3244_v58  ;;  %v3250_v8 = vpop.permute.xlu1 %3249  ;;  %v3433_v58 = vld [vmem:[%s5297_s8] sm:$0x3] }
0x29d3   : > { %v3258_v13 = vpack.c.bf16 %v3246_v51, %v3246_v51  ;;  %v3252_v9 = vsel %vm643_vm1, %v3209_v38, %v3250_v8  ;;  %v4166_v38 = vld [vmem:[%s5296_s7] ss:$8 sps:$4 sm:$0xff]   ;;  %vm5304_vm1 = vcmask 258052   ;;  %v3438_v51 = vrot.slane %v3433_v58, %v4632_v20 }
0x29d4   : > { %v3386_v11 = vrot.slane %v3252_v9, 6  ;;  %v3373_v16 = vrot.slane %v3252_v9, 7  ;;  %3489 = vmatpush1.bf16.msra.mxu0 %v4166_v38 }
0x29d5   : > { %v3268_v15 = vrot.slane %v3258_v13, 3  ;;  %3490 = vmatprep.subr.bf16.mxu0 %v4171_v41  ;;  %v3442_v13 = vrot.slane %v3433_v58, %v4634_v21 }
0x29d7   : > { %4026 = vmatmul.mubr.msk.bf16.vlgmr.msra.gmra.mrb[32].mxu1 %vm444_vm0, %v3268_v15 }
0x2aaa   : > { %v3346_v60 = vpop.f32.mrb[32].mxu1 }
0x2aab   : > { %v3354_v62 = vrot.slane %v3346_v60, 1  ;;  %v3348_v0 = vpop.f32.mrb[33].mxu1 }
0x2aac   : > { %v3357_v3 = vadd.f32 %v3348_v0, %v4991_v49  ;;  %v3350_v4 = vpop.f32.mrb[34].mxu1 }
0x2aad   : > { %v3356_v5 = vadd.f32 %v3354_v62, %v4989_v30  ;;  %v3351_v6 = vpop.f32.mrb[35].mxu1 }
0x2aae   : > { %4422 = vtanh.f32 %v3357_v3  ;;  %v4028_v28 = vmul.f32 -1.442695, %v3357_v3 }
0x2aaf   : > { %4424 = vtanh.f32 %v3356_v5  ;;  %v4027_v49 = vmul.f32 -1.442695, %v3356_v5 }
0x2ab0   : > { %4426 = vpow2.f32 %v4028_v28 }
0x2ab1   : > { %4428 = vpow2.f32 %v4027_v49 }
0x2ab8   : > { %v4423_v14 = vpop.eup %4422 }
0x2ab9   : > { %v4425_v56 = vpop.eup %4424  ;;  %3392 = vrot.lane.b32.xlu1 %v4423_v14, %s4451_s24 }
0x2aba   : > { %3377 = vrot.lane.b32.xlu0 %v4425_v56, %s4451_s24  ;;  %v4427_v30 = vpop.eup %4426 }
0x2abb   : > { %v4429_v17 = vpop.eup %4428  ;;  %v3367_v2 = vadd.f32 1.0, %v4427_v30 }
0x2abc   : > { %v3361_v18 = vadd.f32 1.0, %v4429_v17  ;;  %v4178_v17 = vld [vmem:[%s5298_s9] sm:$0xff]  }
0x2abd   : > { %4430 = vrcp.f32 %v3367_v2 }
0x2abe   : > { %3387 = vrot.lane.b32.xlu0 %v3386_v11, %s4452_s25  ;;  %4432 = vrcp.f32 %v3361_v18  ;;  %v4179_v18 = vld [vmem:[%s5298_s9 + $0x8] sm:$0xff]  }
0x2ac7   : > { %v4431_v19 = vpop.eup %4430 }
0x2ac8   : > { %v4433_v23 = vpop.eup %4432 }
0x2ac9   : > { %v3375_v25 = vmul.f32 %v4433_v23, %v3373_v16 }
0x2b2b   : > { %v3393_v22 = vpop.permute.xlu1 %3392 }
0x2b2c   : > { %v3395_v26 = vmul.f32 %v4431_v19, %v3393_v22  ;;  %v3378_v27 = vpop.permute.xlu0 %3377  ;;  %v4181_v22 = vld [vmem:[%s5298_s9 + $0x18] sm:$0xff]  }
0x2b2d   : > { %v3380_v7 = vmul.f32 %v4433_v23, %v3378_v27 }
0x2b2e   : > { %3397 = vrot.lane.b32.xlu0 %v3395_v26, %s4452_s25 }
0x2b2f   : > { %3382 = vrot.lane.b32.xlu1 %v3380_v7, %s4452_s25  ;;  %v4041_v7 = vld [vmem:[%s5299_s10] ss:$0 sm:$0xff] }
0x2b30   : > { %v3388_v31 = vpop.permute.xlu0 %3387 }
0x2b31   : > { %v3390_v61 = vmul.f32 %v4431_v19, %v3388_v31 }
0x2ba0   : > { %v3398_v32 = vpop.permute.xlu0 %3397 }
0x2ba1   : > { %v3400_v35 = vadd.f32 %v3398_v32, %v3390_v61  ;;  %v3383_v36 = vpop.permute.xlu1 %3382 }
0x2ba2   : > { %v3385_v33 = vadd.f32 %v3383_v36, %v3375_v25 }
0x2ba3   : > { %4434 = vtanh.f32 %v3400_v35 }
0x2ba4   : > { %4436 = vtanh.f32 %v3385_v33 }
0x2bad   : > { %v4435_v34 = vpop.eup %4434 }
0x2bae   : > { %v4437_v37 = vpop.eup %4436  ;;  %3409 = vrot.lane.b32.xlu0 %v4435_v34, %s4451_s24 }
0x2baf   : > { %3403 = vrot.lane.b32.xlu1 %v4437_v37, %s4451_s24 }
0x2bb2   : > { %2355 = vrot.lane.b32.xlu0 %v5029_v1, %s4452_s25  ;;  %v4169_v1 = vld [vmem:[%s5296_s7 + $0x10] ss:$8 sps:$4 sm:$0xff]  }
0x2bb3   : > { %2178 = vrot.lane.b32.xlu1 %v5001_v24, %s4452_s25  ;;  %3491 = vmatpush1.bf16.msra.mxu0 %v4169_v1  ;;  %v4172_v24 = vld [vmem:[%s5296_s7 + $0x20] ss:$8 sps:$4 sm:$0xff]  }
0x2bb6   : > { %2714 = vrot.lane.b32.xlu0 %v5083_v63, %s4452_s25  ;;  %v4174_v63 = vld [vmem:[%s5296_s7 + $0x24] ss:$8 sps:$4 sm:$0xff]  }
0x2bb7   : > { %2535 = vrot.lane.b32.xlu1 %v5056_v10, %s4452_s25  ;;  %v4177_v10 = vld [vmem:[%s5296_s7 + $0x34] ss:$8 sps:$4 sm:$0xff]   ;;  %3492 = vmatprep.subr.bf16.mxu0 %v4174_v63 }
0x2bb8   : > { %3493 = vmatpush1.bf16.msra.mxu0 %v4172_v24 }
0x2bb9   : > { %3494 = vmatprep.subr.bf16.mxu0 %v4177_v10 }
0x2bba   : > { %3073 = vrot.lane.b32.xlu0 %v5141_v54, %s4452_s25 }
0x2bbb   : > { %2894 = vrot.lane.b32.xlu1 %v5103_v55, %s4452_s25  ;;  %v4175_v55 = vld [vmem:[%s5296_s7 + $0x30] ss:$8 sps:$4 sm:$0xff]  }
0x2bbc   : > { %3495 = vmatpush1.bf16.msra.mxu0 %v4175_v55 }
0x2bbf   : > { %3254 = vrot.lane.b32.xlu1 %v5175_v50, %s4452_s25 }
0x2c20   : > { %v3410_v54 = vpop.permute.xlu0 %3409 }
0x2c21   : > { %v3412_v42 = vmul.f32 %v4431_v19, %v3410_v54  ;;  %v3404_v43 = vpop.permute.xlu1 %3403  ;;  %v4180_v19 = vld [vmem:[%s5298_s9 + $0x10] sm:$0xff]  }
0x2c22   : > { %v3406_v44 = vmul.f32 %v4433_v23, %v3404_v43 }
0x2c23   : > { %3419 = vrot.lane.b32.xlu1 %v3412_v42, %s4452_s25 }
0x2c24   : > { %v2356_v45 = vpop.permute.xlu0 %2355  ;;  %3414 = vrot.lane.b32.xlu0 %v3406_v44, %s4451_s24 }
0x2c25   : > { %2358 = vst.msk [vmem:[#allocation2] sm:$0x40] %vm835_vm6, %v2356_v45  ;;  %v2179_v46 = vpop.permute.xlu1 %2178 }
0x2c26   : > { %3253 = vst.msk [vmem:[#allocation2] sm:$0x40] %vm1739_vm7, %v5181_v57 }
0x2c27   : > { %2181 = vst.msk [vmem:[#allocation2] sm:$0x80] %vm656_vm8, %v2179_v46 }
0x2c28   : > { %v2715_v12 = vpop.permute.xlu0 %2714 }
0x2c29   : > { %2717 = vst.msk [vmem:[#allocation2] sm:$0x10] %vm1198_vm9, %v2715_v12  ;;  %v2536_v47 = vpop.permute.xlu1 %2535 }
0x2c2a   : > { %2893 = vst.msk [vmem:[#allocation2] sm:$0x10] %vm5304_vm1, %v5109_v59 }
0x2c2b   : > { %2538 = vst.msk [vmem:[#allocation2] sm:$0x20] %vm5305_vm2, %v2536_v47 }
0x2c2c   : > { %3072 = vst.msk [vmem:[#allocation2] sm:$0x20] %vm1556_vm12, %v5147_v40  ;;  %v3074_v48 = vpop.permute.xlu0 %3073  ;;  %v4454_v40 = vmov 0.0  }
0x2c2d   : > { %3076 = vst.msk [vmem:[#allocation2] sm:$0x4] %vm1561_vm13, %v3074_v48  ;;  %v2895_v29 = vpop.permute.xlu1 %2894  ;;  %4058 = vmatprep.subr.mxu0 %v4454_v40  ;;  %4063 = vmatprep.subr.mxu1 %v4454_v40 }
0x2c2e   : > { %2897 = vst.msk [vmem:[#allocation2] sm:$0x8] %vm1380_vm14, %v2895_v29  ;;  %4065 = vmatprep.mubr.msk.f32.mxu1 %vm4455_vm3, %v4454_v40 }
0x2c31   : > { %v3255_v50 = vpop.permute.xlu1 %3254 }
0x2c32   : > { %3257 = vst.msk [vmem:[#allocation2] sm:$0x2] %vm1744_vm15, %v3255_v50 }
0x2c95   : > { %v3420_v52 = vpop.permute.xlu1 %3419 }
0x2c96   : > { %3422 = vst.msk [vmem:[#allocation2] sm:$0x1] %vm1911_vm11, %v3420_v52  ;;  %v3415_v53 = vpop.permute.xlu0 %3414 }
0x2c97   : > { %3417 = vst.msk [vmem:[#allocation2] sm:$0x80] %vm1905_vm10, %v3415_v53 }
0x2c9e   : > { %v3423_v59 = vld [vmem:[#allocation2] sm:$0xff] }
0x2c9f   : > { %v3424_v57 = vpack.c.bf16 %v3423_v59, %v3423_v59 }
0x2ca1   : > { %4037 = vmatmul.mubr.msk.bf16.vlgmr.msra.gmra.mrb[36].mxu0 %vm444_vm0, %v3424_v57 }
0x2ca2   : > { %4060 = vmatprep.mubr.msk.f32.mxu0 %vm4455_vm3, %v4454_v40 }
0x2d74   : > { %v3522_v15 = vpop.f32.mrb[36].mxu0 }
0x2d75   : > { %v3523_v60 = vadd.f32 %v3522_v15, %v3438_v51  ;;  %v3524_v62 = vpop.f32.mrb[37].mxu0 }
0x2d76   : > { %v3525_v0 = vadd.f32 %v3524_v62, %v3442_v13  ;;  %v3526_v3 = vpop.f32.mrb[38].mxu0 }
0x2d77   : > { %v3527_v4 = vpop.f32.mrb[39].mxu0  ;;  %3530 = vrot.lane.b32.xlu0 %v3523_v60, %s4451_s24  ;;  %4059 = vmatpush3.xpose.msk.msra.mxu0 %vm444_vm0, %v3523_v60 }
0x2d78   : > { %4064 = vmatpush3.msra.mxu1 %v3525_v0 }
0x2d79   : > { %4068 = vmatprep.subr.bf16.mxu1 %v4454_v40 }
0x2de9   : > { %v3531_v5 = vpop.permute.xlu0 %3530 }
0x2dea   : > { %4061 = vmatmul.mubr.msk.f32.vlgmr.msra.gmra.mrb[40].mxu0 %vm444_vm0, %v3531_v5 }
0x2ebd   : > { %v3602_v6 = vpop.f32.mrb[40].mxu0 }
0x2ebe   : > { %v3606_v20 = vmul.f32 0.125, %v3602_v6  ;;  %v4062_v8 = vpop.f32.mrb[41].mxu0 }
0x2ec0   : > { %v3608_v21 = vsel %vm3607_vm4, %v3606_v20, -inf }
0x2ec1   : > { %3609 = vmax.xlane.f32.xlu1 %v3608_v21 }
0x2f4e   : > { %v3610_v14 = vpop.xlane.xlu1 %3609 }
0x2f4f   : > { %v3611_v56 = vsub.f32 %v3606_v20, %v3610_v14 }
0x2f51   : > { %v3612_v9 = vmul.f32 1.442695, %v3611_v56 }
0x2f53   : > { %4438 = vpow2.f32 %v3612_v9 }
0x2f5d   : > { %v4439_v11 = vpop.eup %4438 }
0x2f5e   : > { %v3614_v28 = vsel %vm3607_vm4, %v4439_v11, 0.0 }
0x2f5f   : > { %3615 = vadd.xlane.f32.xlu0 %v3614_v28 }
0x2fec   : > { %v3616_v49 = vpop.xlane.xlu0 %3615 }
0x2fed   : > { %4440 = vrcp.f32 %v3616_v49 }
0x2ff7   : > { %v4441_v30 = vpop.eup %4440 }
0x2ff8   : > { %v3618_v2 = vmul.f32 %v4441_v30, %v4439_v11 }
0x2ffa   : > { %4066 = vmatmul.mubr.msk.f32.vlgmr.msra.gmra.mrb[36].mxu1 %vm3607_vm4, %v3618_v2 }
0x2ffb   : > { %4069 = vmatpush3.bf16.msra.mxu1 %v4178_v17  ;;  %4076 = vmatprep.mubr.msk.bf16.mxu1 %vm4455_vm3, %v4454_v40 }
0x2ffc   : > { %4070 = vmatprep.subr.bf16.mxu1 %v4454_v40 }
0x2fff   : > { %4071 = vmatpush3.bf16.msra.mxu1 %v4179_v18 }
0x3000   : > { %4072 = vmatprep.subr.bf16.mxu1 %v4454_v40 }
0x3003   : > { %4073 = vmatpush3.bf16.msra.mxu1 %v4180_v19 }
0x3004   : > { %4074 = vmatprep.subr.bf16.mxu1 %v4454_v40 }
0x3007   : > { %4075 = vmatpush3.bf16.msra.mxu1 %v4181_v22 }
0x30cd   : > { %v3688_v23 = vpop.f32.mrb[36].mxu1 }
0x30ce   : > { %v3692_v26 = vpack.c.bf16 %v3688_v23, %v3688_v23  ;;  %v4067_v27 = vpop.f32.mrb[37].mxu1 }
0x30d0   : > { %4077 = vmatmul.mubr.msk.bf16.vlgmr.msra.gmra.mrb[40].mxu1 %vm444_vm0, %v3692_v26 }
0x31a3   : > { %v3769_v31 = vpop.f32.mrb[40].mxu1 }
0x31a4   : > { %v3770_v16 = vadd.f32 %v4041_v7, %v3769_v31  ;;  %v4078_v61 = vpop.f32.mrb[41].mxu1 }
0x31a5   : > { %v3772_v32 = vpop.f32.mrb[42].mxu1 }
0x31a6   : > { %3776 = vst.msk [vmem:[%s381_s19] sm:$0xff] %vm3775_vm5, %v3770_v16  ;;  %v4079_v25 = vpop.f32.mrb[43].mxu1 }
0x31a7 PF: > { %s21_s17 = sadd.s32 1, %s4448_s17  }
0x31a8   : > { %p18_p4 = scmp.ge.s32.totalorder %s21_s17, 4  }
0x31aa   :  { %20 = sbr.rel (!%p18_p4) target bundleno = 1 (0x1), region = 94 }

</bundles_post_ra>
